<compile_context>
chip_gen: v7x
topology: tpu7x:2x2x1
jax: 0.10.0
libtpu: 0.0.40
codegen_flags: <defaults>
</compile_context>

<pallas_src>
import functools

import jax
import jax.numpy as jnp
from jax.experimental import pallas as pl
from jax.experimental.pallas import tpu as pltpu

EPS = 1e-5


# ----------------------------- Pallas kernel ------------------------------ #
def _residual_ms_block_kernel(
    x_ref,       # (1, DHW, Cin)   f32   — raw input (mean-pool branch + shortcut)
    p_ref,       # (1, DHW, KP)    bf16  — 5^3 im2col patches (K padded to KP)
    wy_ref,      # (KP, Cout)      bf16  — fused 1x1/3^3/5^3 weights, BN folded
    w4p_ref,     # (Cin, Cout)     f32   — pool-branch weights (BN folded, placed)
    bvec_ref,    # (1, Cout)       f32   — conv bias * bn_scale + bn_shift
    wsc_ref,     # (Cin, Cout)     f32   — shortcut conv weights * sc_scale
    scvec_ref,   # (1, Cout)       f32   — shortcut BN shift
    watt1_ref,   # (Cout, 3*Cr)    f32   — stacked attention layer-1 weights
    batt1_ref,   # (1, 3*Cr)       f32
    watt2_ref,   # (3*Cr, 3*Cout)  f32   — block-diagonal attention layer-2
    batt2_ref,   # (1, 3*Cout)     f32
    out_ref,     # (1, DHW, Cout)  f32
    *, D, HW, Cout,
):
    f32 = jnp.float32
    x = x_ref[0]                                                    # (DHW, Cin)

    # ---- multi-scale fusion: ONE bf16 MXU matmul (1x1 + 3^3 + 5^3, BN folded) ----
    y_raw = jnp.dot(p_ref[0], wy_ref[...], preferred_element_type=f32)  # (DHW, Cout)

    # global-average-pool branch + folded biases / BN shifts (constant row)
    xm = jnp.mean(x, axis=0, keepdims=True)                         # (1, Cin)
    pool_bias = jnp.dot(xm, w4p_ref[...], preferred_element_type=f32) + bvec_ref[...]

    y = jnp.maximum(y_raw + pool_bias, 0.0)                         # BN+bias folded, ReLU

    # ---- shortcut (1x1 conv + BN), f32, K=Cin — negligible MXU cost ----
    res = jnp.dot(x, wsc_ref[...], preferred_element_type=f32) + scvec_ref[...]

    # ---- enhanced spatio-temporal attention (reshape-based pooling) ----
    y3 = y.reshape(D, HW, Cout)
    t_pool = jnp.mean(y3, axis=1)                                   # (D,  Cout) mean over H,W
    s_pool = jnp.mean(y3, axis=0)                                   # (HW, Cout) mean over D
    c_pool = jnp.mean(y, axis=0, keepdims=True)                     # (1,  Cout) mean over D,H,W
    pool = jnp.concatenate([t_pool, s_pool, c_pool], axis=0)        # (D+HW+1, Cout)

    # consolidated attention MLPs: stacked layer-1, block-diagonal layer-2
    h = jnp.maximum(
        jnp.dot(pool, watt1_ref[...], preferred_element_type=f32) + batt1_ref[...],
        0.0)
    z = jnp.dot(h, watt2_ref[...], preferred_element_type=f32) + batt2_ref[...]
    a = pl.reciprocal(1.0 + jnp.exp(-z), approx=True)               # sigmoid via EUP

    t_att = a[:D, :Cout]                                            # (D,  Cout)
    s_att = a[D:D + HW, Cout:2 * Cout]                              # (HW, Cout)
    c_att = a[D + HW:, 2 * Cout:]                                   # (1,  Cout)

    out = y3 * t_att[:, None, :] * s_att[None, :, :] * c_att[None, :, :]
    out_ref[0] = (out.reshape(D * HW, Cout) + res).astype(out_ref.dtype)


# ------------------------------ glue helpers ------------------------------ #
def _conv_w_to_mat(w):
    """(Cout, Cin, kd, kh, kw) -> (kd*kh*kw*Cin, Cout), matching im2col order."""
    cout = w.shape[0]
    return jnp.transpose(w, (2, 3, 4, 1, 0)).reshape(-1, cout)


def _im2col3d(x, k, pad, pad_k_to=None):
    """x: (B, D, H, W, C) -> (B, D*H*W, Ktot); tap order (kd, kh, kw, c).

    The zero lane-padding (Kraw -> pad_k_to) is fused into the same concat so
    XLA emits a single fused write of the final patch buffer.
    """
    B, D, H, W, C = x.shape
    xp = jnp.pad(x, ((0, 0), (pad, pad), (pad, pad), (pad, pad), (0, 0)))
    cols = []
    for kd in range(k):
        for kh in range(k):
            for kw in range(k):
                cols.append(xp[:, kd:kd + D, kh:kh + H, kw:kw + W, :])
    kraw = k * k * k * C
    ktot = kraw if pad_k_to is None else pad_k_to
    if ktot > kraw:
        cols.append(jnp.zeros((B, D, H, W, ktot - kraw), x.dtype))
    patches = jnp.concatenate(cols, axis=-1)
    return patches.reshape(B, D * H * W, ktot)


def _bn_fold(gamma, beta, mean, var):
    scale = gamma / jnp.sqrt(var + EPS)
    return scale, beta - mean * scale


def residual_multiscale_block_pallas(x_ndhwc, p):
    B, D, H, W, Cin = x_ndhwc.shape
    Cout = p['bn_gamma'].shape[0]
    C4 = Cout // 4
    Cr = p['t_w1'].shape[0]
    DHW, HW = D * H * W, H * W
    f32, bf16 = jnp.float32, jnp.bfloat16

    # ---- activations --------------------------------------------------------
    x_flat = x_ndhwc.reshape(B, DHW, Cin).astype(f32)

    # single 5^3 im2col (the 3^3 / 1x1 taps are a subset), built in bf16, lane-padded.
    K5 = 125 * Cin
    KP = 128 * pl.cdiv(K5, 128)
    patches = _im2col3d(x_ndhwc.astype(bf16), 5, 2, pad_k_to=KP)     # (B, DHW, KP) bf16

    # ---- weights: BN folded, 1x1 + 3^3 folded into the 5^3 superset ---------
    bn_scale, bn_shift = _bn_fold(p['bn_gamma'], p['bn_beta'], p['bn_mean'], p['bn_var'])
    sc_scale, sc_shift = _bn_fold(p['sc_gamma'], p['sc_beta'], p['sc_mean'], p['sc_var'])

    # zero-pad the 1x1 / 3x3x3 kernels to 5x5x5 so they share the 5^3 im2col rows
    w1_as5 = jnp.pad(p['ms_w1'], ((0, 0), (0, 0), (2, 2), (2, 2), (2, 2)))
    w3_as5 = jnp.pad(p['ms_w2'], ((0, 0), (0, 0), (1, 1), (1, 1), (1, 1)))
    # NOTE: BN scale is folded before the bf16 cast; with well-conditioned running
    # stats (var >= ~1e-1) the bf16 quantization stays well inside the tolerance.
    Wy5 = jnp.concatenate(
        [
            _conv_w_to_mat(w1_as5) * bn_scale[0:C4],                 # cols 0:C4   (scale1)
            _conv_w_to_mat(w3_as5) * bn_scale[C4:2 * C4],            # cols C4:2C4 (scale2)
            _conv_w_to_mat(p['ms_w3']) * bn_scale[2 * C4:3 * C4],    # cols 2C4:3C4(scale3)
            jnp.zeros((K5, C4), f32),                                # cols 3C4:   (pool)
        ],
        axis=1)                                                      # (K5, Cout)
    Wy = jnp.pad(Wy5, ((0, KP - K5), (0, 0))).astype(bf16)           # (KP, Cout)

    # pool branch (acts on mean(x)); placed in its channel slice
    W4 = _conv_w_to_mat(p['ms_w4']) * bn_scale[3 * C4:]              # (Cin, C4)
    W4p = jnp.zeros((Cin, Cout), f32).at[:, 3 * C4:].set(W4)
    bias = jnp.concatenate([p['ms_b1'], p['ms_b2'], p['ms_b3'], p['ms_b4']])
    bvec = (bias * bn_scale + bn_shift).reshape(1, Cout)

    # shortcut conv + BN, kept in f32 (residual path)
    Wsc = _conv_w_to_mat(p['sc_w']) * sc_scale                       # (Cin, Cout)
    scvec = sc_shift.reshape(1, Cout)

    # attention MLPs consolidated: stacked first layer + block-diagonal second
    def m(w):
        return _conv_w_to_mat(w)

    Watt1 = jnp.concatenate([m(p['t_w1']), m(p['s_w1']), m(p['c_w1'])], axis=1)  # (Cout,3Cr)
    Batt1 = jnp.concatenate([p['t_b1'], p['s_b1'], p['c_b1']]).reshape(1, 3 * Cr)
    Watt2 = jnp.zeros((3 * Cr, 3 * Cout), f32)
    Watt2 = Watt2.at[0:Cr, 0:Cout].set(m(p['t_w2']))
    Watt2 = Watt2.at[Cr:2 * Cr, Cout:2 * Cout].set(m(p['s_w2']))
    Watt2 = Watt2.at[2 * Cr:, 2 * Cout:].set(m(p['c_w2']))
    Batt2 = jnp.concatenate([p['t_b2'], p['s_b2'], p['c_b2']]).reshape(1, 3 * Cout)

    kernel = functools.partial(_residual_ms_block_kernel, D=D, HW=HW, Cout=Cout)

    out_flat = pl.pallas_call(
        kernel,
        out_shape=jax.ShapeDtypeStruct((B, DHW, Cout), f32),
        grid_spec=pltpu.PrefetchScalarGridSpec(
            num_scalar_prefetch=0,
            grid=(B,),                                               # one step per batch
            in_specs=[
                pl.BlockSpec((1, DHW, Cin), lambda b: (b, 0, 0)),    # x
                pl.BlockSpec((1, DHW, KP), lambda b: (b, 0, 0)),     # 5^3 patches
                pl.BlockSpec((KP, Cout), lambda b: (0, 0)),          # Wy (fused convs)
                pl.BlockSpec((Cin, Cout), lambda b: (0, 0)),         # W4p (pool branch)
                pl.BlockSpec((1, Cout), lambda b: (0, 0)),           # bvec
                pl.BlockSpec((Cin, Cout), lambda b: (0, 0)),         # Wsc (shortcut)
                pl.BlockSpec((1, Cout), lambda b: (0, 0)),           # scvec
                pl.BlockSpec((Cout, 3 * Cr), lambda b: (0, 0)),      # Watt1
                pl.BlockSpec((1, 3 * Cr), lambda b: (0, 0)),         # Batt1
                pl.BlockSpec((3 * Cr, 3 * Cout), lambda b: (0, 0)),  # Watt2
                pl.BlockSpec((1, 3 * Cout), lambda b: (0, 0)),       # Batt2
            ],
            out_specs=pl.BlockSpec((1, DHW, Cout), lambda b: (b, 0, 0)),
        ),
        compiler_params=pltpu.CompilerParams(
            dimension_semantics=("parallel",),                       # batch on megacore / 2 TCs
            vmem_limit_bytes=32 * 1024 * 1024,
        ),
    )(x_flat, patches, Wy, W4p, bvec, Wsc, scvec, Watt1, Batt1, Watt2, Batt2)

    return out_flat.reshape(B, D, H, W, Cout)


# --------------------------- deterministic params -------------------------- #
def init_params(key, cin, cout):
    c4, cr = cout // 4, cout // 16
    keys = iter(jax.random.split(key, 32))

    def w(shape, scale=0.1):
        return scale * jax.random.normal(next(keys), shape, dtype=jnp.float32)

    return dict(
        ms_w1=w((c4, cin, 1, 1, 1)), ms_b1=w((c4,)),
        ms_w2=w((c4, cin, 3, 3, 3)), ms_b2=w((c4,)),
        ms_w3=w((c4, cin, 5, 5, 5)), ms_b3=w((c4,)),
        ms_w4=w((c4, cin, 1, 1, 1)), ms_b4=w((c4,)),
        bn_gamma=1.0 + w((cout,)), bn_beta=w((cout,)),
        bn_mean=w((cout,)), bn_var=1.0 + jnp.abs(w((cout,))),
        sc_w=w((cout, cin, 1, 1, 1)),
        sc_gamma=1.0 + w((cout,)), sc_beta=w((cout,)),
        sc_mean=w((cout,)), sc_var=1.0 + jnp.abs(w((cout,))),
        t_w1=w((cr, cout, 1, 1, 1)), t_b1=w((cr,)),
        t_w2=w((cout, cr, 1, 1, 1)), t_b2=w((cout,)),
        s_w1=w((cr, cout, 1, 1, 1)), s_b1=w((cr,)),
        s_w2=w((cout, cr, 1, 1, 1)), s_b2=w((cout,)),
        c_w1=w((cr, cout, 1, 1, 1)), c_b1=w((cr,)),
        c_w2=w((cout, cr, 1, 1, 1)), c_b2=w((cout,)),
    )


# ------------------------------ JAX reference ------------------------------ #
def _conv3d_ref(x, w, b, pad):
    w_t = jnp.transpose(w, (2, 3, 4, 1, 0))  # DHWIO
    y = jax.lax.conv_general_dilated(
        x, w_t, window_strides=(1, 1, 1), padding=[(pad, pad)] * 3,
        dimension_numbers=('NDHWC', 'DHWIO', 'NDHWC'),
        precision=jax.lax.Precision.HIGHEST)
    return y if b is None else y + b


def _conv1x1_ref(x, w, b):
    y = jnp.einsum('...c,oc->...o', x, w[:, :, 0, 0, 0],
                   precision=jax.lax.Precision.HIGHEST)
    return y if b is None else y + b


def _bn_ref(x, gamma, beta, mean, var):
    return (x - mean) / jnp.sqrt(var + EPS) * gamma + beta


def reference_forward(x, p):
    f1 = _conv3d_ref(x, p['ms_w1'], p['ms_b1'], 0)
    f2 = _conv3d_ref(x, p['ms_w2'], p['ms_b2'], 1)
    f3 = _conv3d_ref(x, p['ms_w3'], p['ms_b3'], 2)
    pooled = jnp.mean(x, axis=(1, 2, 3), keepdims=True)
    f4 = jnp.broadcast_to(_conv1x1_ref(pooled, p['ms_w4'], p['ms_b4']), f1.shape)
    fused = jnp.concatenate([f1, f2, f3, f4], axis=-1)
    fused = jnp.maximum(
        _bn_ref(fused, p['bn_gamma'], p['bn_beta'], p['bn_mean'], p['bn_var']), 0.0)

    def sig(z):
        return 1.0 / (1.0 + jnp.exp(-z))

    def branch(pool, w1, b1, w2, b2):
        h = jnp.maximum(_conv1x1_ref(pool, w1, b1), 0.0)
        return sig(_conv1x1_ref(h, w2, b2))

    t_att = branch(jnp.mean(fused, axis=(2, 3), keepdims=True),
                   p['t_w1'], p['t_b1'], p['t_w2'], p['t_b2'])
    s_att = branch(jnp.mean(fused, axis=(1,), keepdims=True),
                   p['s_w1'], p['s_b1'], p['s_w2'], p['s_b2'])
    c_att = branch(jnp.mean(fused, axis=(1, 2, 3), keepdims=True),
                   p['c_w1'], p['c_b1'], p['c_w2'], p['c_b2'])
    att = fused * t_att * s_att * c_att

    res = _bn_ref(_conv1x1_ref(x, p['sc_w'], None),
                  p['sc_gamma'], p['sc_beta'], p['sc_mean'], p['sc_var'])
    return att + res


# ----------------------------------- main ---------------------------------- #
if __name__ == "__main__":
    key = jax.random.PRNGKey(0)
    B, Cin, Cout, D, H, W = 2, 4, 32, 8, 8, 8   # PyTorch-equivalent input: (2, 4, 8, 8, 8) NCDHW
    kx, kp = jax.random.split(key)
    x = jax.random.normal(kx, (B, D, H, W, Cin), dtype=jnp.float32)
    params = init_params(kp, Cin, Cout)

    fwd = jax.jit(residual_multiscale_block_pallas)
    out = jax.block_until_ready(fwd(x, params))

    ref = reference_forward(x, params)
    assert out.shape == (B, D, H, W, Cout)
    # tolerance relaxed vs f32 reference: the multi-scale conv path (1x1/3^3/5^3
    # with BN folded) runs through the bf16 MXU, and the attention sigmoid uses
    # the approximate EUP reciprocal.
    max_err = float(jnp.max(jnp.abs(out - ref)))
    assert max_err < 3e-2, f"max abs error too large: {max_err}"
    print("KERNEL_OK")
</pallas_src>

<mosaic_0001>
module attributes {stable_mosaic.version = 11 : i64} {
  func.func @_residual_ms_block_kernel(%arg0: i32, %arg1: memref<1x512x4xf32, #tpu.memory_space<vmem>>, %arg2: memref<1x512x512xbf16, #tpu.memory_space<vmem>>, %arg3: memref<512x32xbf16, #tpu.memory_space<vmem>>, %arg4: memref<4x32xf32, #tpu.memory_space<vmem>>, %arg5: memref<1x32xf32, #tpu.memory_space<vmem>>, %arg6: memref<4x32xf32, #tpu.memory_space<vmem>>, %arg7: memref<1x32xf32, #tpu.memory_space<vmem>>, %arg8: memref<32x6xf32, #tpu.memory_space<vmem>>, %arg9: memref<1x6xf32, #tpu.memory_space<vmem>>, %arg10: memref<6x96xf32, #tpu.memory_space<vmem>>, %arg11: memref<1x96xf32, #tpu.memory_space<vmem>>, %arg12: memref<1x512x32xf32, #tpu.memory_space<vmem>>) attributes {dimension_semantics = [#tpu.dimension_semantics<parallel>], iteration_bounds = array<i64: 2>, scalar_prefetch = 0 : i64, scratch_operands = 0 : i64, tpu.core_type = #tpu.core_type<tc>, window_params = [{transform_indices = @transform_0, window_bounds = array<i64: 1, 512, 4>}, {transform_indices = @transform_1, window_bounds = array<i64: 1, 512, 512>}, {pipeline_mode = #tpu.pipeline_mode<synchronous>, transform_indices = @transform_2, window_bounds = array<i64: 512, 32>}, {pipeline_mode = #tpu.pipeline_mode<synchronous>, transform_indices = @transform_3, window_bounds = array<i64: 4, 32>}, {pipeline_mode = #tpu.pipeline_mode<synchronous>, transform_indices = @transform_4, window_bounds = array<i64: 1, 32>}, {pipeline_mode = #tpu.pipeline_mode<synchronous>, transform_indices = @transform_5, window_bounds = array<i64: 4, 32>}, {pipeline_mode = #tpu.pipeline_mode<synchronous>, transform_indices = @transform_6, window_bounds = array<i64: 1, 32>}, {pipeline_mode = #tpu.pipeline_mode<synchronous>, transform_indices = @transform_7, window_bounds = array<i64: 32, 6>}, {pipeline_mode = #tpu.pipeline_mode<synchronous>, transform_indices = @transform_8, window_bounds = array<i64: 1, 6>}, {pipeline_mode = #tpu.pipeline_mode<synchronous>, transform_indices = @transform_9, window_bounds = array<i64: 6, 96>}, {pipeline_mode = #tpu.pipeline_mode<synchronous>, transform_indices = @transform_10, window_bounds = array<i64: 1, 96>}, {transform_indices = @transform_11, window_bounds = array<i64: 1, 512, 32>}]} {
    %c0 = arith.constant 0 : index
    %c0_0 = arith.constant 0 : index
    %c0_1 = arith.constant 0 : index
    %0 = vector.load %arg1[%c0, %c0_0, %c0_1] : memref<1x512x4xf32, #tpu.memory_space<vmem>>, vector<1x512x4xf32>
    %1 = vector.shape_cast %0 : vector<1x512x4xf32> to vector<512x4xf32>
    %c0_2 = arith.constant 0 : index
    %c0_3 = arith.constant 0 : index
    %c0_4 = arith.constant 0 : index
    %2 = vector.load %arg2[%c0_2, %c0_3, %c0_4] : memref<1x512x512xbf16, #tpu.memory_space<vmem>>, vector<1x512x512xbf16>
    %3 = vector.shape_cast %2 : vector<1x512x512xbf16> to vector<512x512xbf16>
    %c0_5 = arith.constant 0 : index
    %c0_6 = arith.constant 0 : index
    %4 = vector.load %arg3[%c0_5, %c0_6] : memref<512x32xbf16, #tpu.memory_space<vmem>>, vector<512x32xbf16>
    %cst = arith.constant dense<0.000000e+00> : vector<512x32xf32>
    %5 = tpu.matmul %3, %4, %cst {dimension_numbers = #tpu.dot_dimension_numbers<[1], [0], [0], [1], [0, 0, 1, 1], [], []>} : vector<512x512xbf16>, vector<512x32xbf16>, vector<512x32xf32> -> vector<512x32xf32>
    %cst_7 = arith.constant dense<0.000000e+00> : vector<4xf32>
    %6 = vector.multi_reduction <add>, %1, %cst_7 [0] : vector<512x4xf32> to vector<4xf32>
    %7 = vector.shape_cast %6 : vector<4xf32> to vector<1x4xf32>
    %cst_8 = arith.constant 5.120000e+02 : f32
    %8 = vector.broadcast %cst_8 : f32 to vector<1x4xf32>
    %9 = arith.divf %7, %8 : vector<1x4xf32>
    %c0_9 = arith.constant 0 : index
    %c0_10 = arith.constant 0 : index
    %10 = vector.load %arg4[%c0_9, %c0_10] : memref<4x32xf32, #tpu.memory_space<vmem>>, vector<4x32xf32>
    %cst_11 = arith.constant dense<0.000000e+00> : vector<1x32xf32>
    %11 = tpu.matmul %9, %10, %cst_11 {dimension_numbers = #tpu.dot_dimension_numbers<[1], [0], [0], [1], [0, 0, 1, 1], [], []>} : vector<1x4xf32>, vector<4x32xf32>, vector<1x32xf32> -> vector<1x32xf32>
    %c0_12 = arith.constant 0 : index
    %c0_13 = arith.constant 0 : index
    %12 = vector.load %arg5[%c0_12, %c0_13] : memref<1x32xf32, #tpu.memory_space<vmem>>, vector<1x32xf32>
    %13 = arith.addf %11, %12 : vector<1x32xf32>
    %14 = vector.broadcast %13 : vector<1x32xf32> to vector<512x32xf32>
    %15 = arith.addf %5, %14 : vector<512x32xf32>
    %cst_14 = arith.constant 0.000000e+00 : f32
    %16 = vector.broadcast %cst_14 : f32 to vector<512x32xf32>
    %17 = arith.maximumf %15, %16 : vector<512x32xf32>
    %c0_15 = arith.constant 0 : index
    %c0_16 = arith.constant 0 : index
    %18 = vector.load %arg6[%c0_15, %c0_16] : memref<4x32xf32, #tpu.memory_space<vmem>>, vector<4x32xf32>
    %cst_17 = arith.constant dense<0.000000e+00> : vector<512x32xf32>
    %19 = tpu.matmul %1, %18, %cst_17 {dimension_numbers = #tpu.dot_dimension_numbers<[1], [0], [0], [1], [0, 0, 1, 1], [], []>} : vector<512x4xf32>, vector<4x32xf32>, vector<512x32xf32> -> vector<512x32xf32>
    %c0_18 = arith.constant 0 : index
    %c0_19 = arith.constant 0 : index
    %20 = vector.load %arg7[%c0_18, %c0_19] : memref<1x32xf32, #tpu.memory_space<vmem>>, vector<1x32xf32>
    %21 = vector.broadcast %20 : vector<1x32xf32> to vector<512x32xf32>
    %22 = arith.addf %19, %21 : vector<512x32xf32>
    %23 = vector.shape_cast %17 : vector<512x32xf32> to vector<8x64x32xf32>
    %cst_20 = arith.constant dense<0.000000e+00> : vector<8x32xf32>
    %24 = vector.multi_reduction <add>, %23, %cst_20 [1] : vector<8x64x32xf32> to vector<8x32xf32>
    %cst_21 = arith.constant 6.400000e+01 : f32
    %25 = vector.broadcast %cst_21 : f32 to vector<8x32xf32>
    %26 = arith.divf %24, %25 : vector<8x32xf32>
    %cst_22 = arith.constant dense<0.000000e+00> : vector<64x32xf32>
    %27 = vector.multi_reduction <add>, %23, %cst_22 [0] : vector<8x64x32xf32> to vector<64x32xf32>
    %cst_23 = arith.constant 8.000000e+00 : f32
    %28 = vector.broadcast %cst_23 : f32 to vector<64x32xf32>
    %29 = arith.divf %27, %28 : vector<64x32xf32>
    %cst_24 = arith.constant dense<0.000000e+00> : vector<32xf32>
    %30 = vector.multi_reduction <add>, %17, %cst_24 [0] : vector<512x32xf32> to vector<32xf32>
    %31 = vector.shape_cast %30 : vector<32xf32> to vector<1x32xf32>
    %cst_25 = arith.constant 5.120000e+02 : f32
    %32 = vector.broadcast %cst_25 : f32 to vector<1x32xf32>
    %33 = arith.divf %31, %32 : vector<1x32xf32>
    %34 = tpu.concatenate %26, %29, %33 in 0 : vector<8x32xf32>, vector<64x32xf32>, vector<1x32xf32> -> vector<73x32xf32>
    %c0_26 = arith.constant 0 : index
    %c0_27 = arith.constant 0 : index
    %35 = vector.load %arg8[%c0_26, %c0_27] : memref<32x6xf32, #tpu.memory_space<vmem>>, vector<32x6xf32>
    %cst_28 = arith.constant dense<0.000000e+00> : vector<73x6xf32>
    %36 = tpu.matmul %34, %35, %cst_28 {dimension_numbers = #tpu.dot_dimension_numbers<[1], [0], [0], [1], [0, 0, 1, 1], [], []>} : vector<73x32xf32>, vector<32x6xf32>, vector<73x6xf32> -> vector<73x6xf32>
    %c0_29 = arith.constant 0 : index
    %c0_30 = arith.constant 0 : index
    %37 = vector.load %arg9[%c0_29, %c0_30] : memref<1x6xf32, #tpu.memory_space<vmem>>, vector<1x6xf32>
    %38 = vector.broadcast %37 : vector<1x6xf32> to vector<73x6xf32>
    %39 = arith.addf %36, %38 : vector<73x6xf32>
    %cst_31 = arith.constant 0.000000e+00 : f32
    %40 = vector.broadcast %cst_31 : f32 to vector<73x6xf32>
    %41 = arith.maximumf %39, %40 : vector<73x6xf32>
    %c0_32 = arith.constant 0 : index
    %c0_33 = arith.constant 0 : index
    %42 = vector.load %arg10[%c0_32, %c0_33] : memref<6x96xf32, #tpu.memory_space<vmem>>, vector<6x96xf32>
    %cst_34 = arith.constant dense<0.000000e+00> : vector<73x96xf32>
    %43 = tpu.matmul %41, %42, %cst_34 {dimension_numbers = #tpu.dot_dimension_numbers<[1], [0], [0], [1], [0, 0, 1, 1], [], []>} : vector<73x6xf32>, vector<6x96xf32>, vector<73x96xf32> -> vector<73x96xf32>
    %c0_35 = arith.constant 0 : index
    %c0_36 = arith.constant 0 : index
    %44 = vector.load %arg11[%c0_35, %c0_36] : memref<1x96xf32, #tpu.memory_space<vmem>>, vector<1x96xf32>
    %45 = vector.broadcast %44 : vector<1x96xf32> to vector<73x96xf32>
    %46 = arith.addf %43, %45 : vector<73x96xf32>
    %cst_37 = arith.constant 0.000000e+00 : f32
    %47 = vector.broadcast %cst_37 : f32 to vector<73x96xf32>
    %48 = arith.subf %47, %46 : vector<73x96xf32>
    %49 = math.exp %48 : vector<73x96xf32>
    %cst_38 = arith.constant 1.000000e+00 : f32
    %50 = vector.broadcast %cst_38 : f32 to vector<73x96xf32>
    %51 = arith.addf %50, %49 : vector<73x96xf32>
    %52 = tpu.reciprocal %51 {approx = true} : vector<73x96xf32> -> vector<73x96xf32>
    %53 = vector.extract_strided_slice %52 {offsets = [0, 0], sizes = [8, 32], strides = [1, 1]} : vector<73x96xf32> to vector<8x32xf32>
    %54 = vector.extract_strided_slice %52 {offsets = [8, 32], sizes = [64, 32], strides = [1, 1]} : vector<73x96xf32> to vector<64x32xf32>
    %55 = vector.extract_strided_slice %52 {offsets = [72, 64], sizes = [1, 32], strides = [1, 1]} : vector<73x96xf32> to vector<1x32xf32>
    %56 = vector.shape_cast %53 : vector<8x32xf32> to vector<8x1x32xf32>
    %57 = vector.broadcast %56 : vector<8x1x32xf32> to vector<8x64x32xf32>
    %58 = arith.mulf %23, %57 : vector<8x64x32xf32>
    %59 = vector.shape_cast %54 : vector<64x32xf32> to vector<1x64x32xf32>
    %60 = vector.broadcast %59 : vector<1x64x32xf32> to vector<8x64x32xf32>
    %61 = arith.mulf %58, %60 : vector<8x64x32xf32>
    %62 = vector.shape_cast %55 : vector<1x32xf32> to vector<1x1x32xf32>
    %63 = vector.broadcast %62 : vector<1x1x32xf32> to vector<8x64x32xf32>
    %64 = arith.mulf %61, %63 : vector<8x64x32xf32>
    %65 = vector.shape_cast %64 : vector<8x64x32xf32> to vector<512x32xf32>
    %66 = arith.addf %65, %22 : vector<512x32xf32>
    %c0_39 = arith.constant 0 : index
    %c0_40 = arith.constant 0 : index
    %c0_41 = arith.constant 0 : index
    %67 = vector.load %arg12[%c0_39, %c0_40, %c0_41] : memref<1x512x32xf32, #tpu.memory_space<vmem>>, vector<1x512x32xf32>
    %68 = vector.shape_cast %67 : vector<1x512x32xf32> to vector<512x32xf32>
    %69 = vector.shape_cast %66 : vector<512x32xf32> to vector<1x512x32xf32>
    tpu.vector_store %arg12[%c0_39, %c0_40, %c0_41], %69 {strides = array<i32>} : memref<1x512x32xf32, #tpu.memory_space<vmem>>, vector<1x512x32xf32>,
    return
  }
  func.func @transform_0(%arg0: i32) -> (i32, i32, i32) {
    %c0_i32 = arith.constant 0 : i32
    %c0_i32_0 = arith.constant 0 : i32
    %c0_i32_1 = arith.constant 0 : i32
    return %arg0, %c0_i32, %c0_i32_0 : i32, i32, i32
  }
  func.func @transform_1(%arg0: i32) -> (i32, i32, i32) {
    %c0_i32 = arith.constant 0 : i32
    %c0_i32_0 = arith.constant 0 : i32
    %c0_i32_1 = arith.constant 0 : i32
    return %arg0, %c0_i32, %c0_i32_0 : i32, i32, i32
  }
  func.func @transform_2(%arg0: i32) -> (i32, i32) {
    %c0_i32 = arith.constant 0 : i32
    %c0_i32_0 = arith.constant 0 : i32
    %c0_i32_1 = arith.constant 0 : i32
    return %c0_i32, %c0_i32_0 : i32, i32
  }
  func.func @transform_3(%arg0: i32) -> (i32, i32) {
    %c0_i32 = arith.constant 0 : i32
    %c0_i32_0 = arith.constant 0 : i32
    %c0_i32_1 = arith.constant 0 : i32
    return %c0_i32, %c0_i32_0 : i32, i32
  }
  func.func @transform_4(%arg0: i32) -> (i32, i32) {
    %c0_i32 = arith.constant 0 : i32
    %c0_i32_0 = arith.constant 0 : i32
    %c0_i32_1 = arith.constant 0 : i32
    return %c0_i32, %c0_i32_0 : i32, i32
  }
  func.func @transform_5(%arg0: i32) -> (i32, i32) {
    %c0_i32 = arith.constant 0 : i32
    %c0_i32_0 = arith.constant 0 : i32
    %c0_i32_1 = arith.constant 0 : i32
    return %c0_i32, %c0_i32_0 : i32, i32
  }
  func.func @transform_6(%arg0: i32) -> (i32, i32) {
    %c0_i32 = arith.constant 0 : i32
    %c0_i32_0 = arith.constant 0 : i32
    %c0_i32_1 = arith.constant 0 : i32
    return %c0_i32, %c0_i32_0 : i32, i32
  }
  func.func @transform_7(%arg0: i32) -> (i32, i32) {
    %c0_i32 = arith.constant 0 : i32
    %c0_i32_0 = arith.constant 0 : i32
    %c0_i32_1 = arith.constant 0 : i32
    return %c0_i32, %c0_i32_0 : i32, i32
  }
  func.func @transform_8(%arg0: i32) -> (i32, i32) {
    %c0_i32 = arith.constant 0 : i32
    %c0_i32_0 = arith.constant 0 : i32
    %c0_i32_1 = arith.constant 0 : i32
    return %c0_i32, %c0_i32_0 : i32, i32
  }
  func.func @transform_9(%arg0: i32) -> (i32, i32) {
    %c0_i32 = arith.constant 0 : i32
    %c0_i32_0 = arith.constant 0 : i32
    %c0_i32_1 = arith.constant 0 : i32
    return %c0_i32, %c0_i32_0 : i32, i32
  }
  func.func @transform_10(%arg0: i32) -> (i32, i32) {
    %c0_i32 = arith.constant 0 : i32
    %c0_i32_0 = arith.constant 0 : i32
    %c0_i32_1 = arith.constant 0 : i32
    return %c0_i32, %c0_i32_0 : i32, i32
  }
  func.func @transform_11(%arg0: i32) -> (i32, i32, i32) {
    %c0_i32 = arith.constant 0 : i32
    %c0_i32_0 = arith.constant 0 : i32
    %c0_i32_1 = arith.constant 0 : i32
    return %arg0, %c0_i32, %c0_i32_0 : i32, i32, i32
  }
}

</mosaic_0001>

<bundles_post_ra>
// kernel: residual_multiscale_block_pallas.1
= control target key start
LH: loop header
LB: loop body
LE: loop exit
PB: predicated region body
PF: predicated region fallthrough
CT: control target
= control target key end

     0   :  { %16 = vsyncpa [#allocation3], 0  ;;  %s8504_s0 = inlined_call_operand.vmem [shape: f32[2,512,4], index: 0, kind: input, shape index: {}]   ;;  %s8505_s1 = inlined_call_operand.vmem [shape: bf16[2,512,512], index: 1, kind: input, shape index: {}]   ;;  %s8506_s2 = inlined_call_operand.vmem [shape: bf16[512,32], index: 2, kind: input, shape index: {}]   ;;  %s8507_s3 = inlined_call_operand.vmem [shape: f32[4,32], index: 3, kind: input, shape index: {}]   ;;  %s8508_s4 = inlined_call_operand.vmem [shape: f32[1,32], index: 4, kind: input, shape index: {}]   ;;  %s8509_s5 = inlined_call_operand.vmem [shape: f32[4,32], index: 5, kind: input, shape index: {}]   ;;  %s8510_s6 = inlined_call_operand.vmem [shape: f32[1,32], index: 6, kind: input, shape index: {}]   ;;  %s8511_s7 = inlined_call_operand.vmem [shape: f32[32,6], index: 7, kind: input, shape index: {}]   ;;  %s8512_s8 = inlined_call_operand.vmem [shape: f32[1,6], index: 8, kind: input, shape index: {}]   ;;  %s8513_s9 = inlined_call_operand.vmem [shape: f32[6,96], index: 9, kind: input, shape index: {}]   ;;  %s8514_s10 = inlined_call_operand.vmem [shape: f32[1,96], index: 10, kind: input, shape index: {}]   ;;  %s8515_s11 = inlined_call_operand.hbm [shape: f32[2,512,32], index: 11, kind: output, shape index: {}]  }
   0x1   :  { %18 = vsyncpa [#allocation3 + $0x1], 0  ;;  %s5384_s17 = smov 0   ;;  %s5386_s18 = smov 0  }
   0x2   :  { %s5388_s19 = smov 0   ;;  %s5390_s20 = smov 0  }
   0x3 LB: > { %s5405_s21 = sadd.s32 4294967295, %s5313_s20   ;;  %s4182_s22 = sadd.s32 4294967294, %s5313_s20   ;;  %s5313_s20 = sphi %s5390_s20, %s9137_s20   ;;  %s5309_s19 = sphi %s5388_s19, %s9136_s19   ;;  %s5305_s18 = sphi %s5386_s18, %s9135_s18   ;;  %s5301_s17 = sphi %s5384_s17, %s9134_s17  }
   0x4   : > { %s5409_s23 = sadd.s32 1, %s5313_s20   ;;  %s272_s24 = sadd.s32 1, %s5309_s19 }
   0x5   : > { %s269_s25 = ssub.s32 %s5313_s20, %s5409_s23  ;;  %p282_p0 = scmp.ne.s32.totalorder %s5309_s19, %s5305_s18 }
   0x6   : > { %p270_p1 = scmp.eq.s32.totalorder %s269_s25, 0  ;;  %p283_p2 = scmp.eq.s32.totalorder %s5405_s21, 1 }
   0x7   : > { %p288_p3 = scmp.ne.s32.totalorder %s5305_s18, %s5301_s17  ;;  %p289_p4 = scmp.eq.s32.totalorder %s4182_s22, 1 }
   0x8   : > { %s5420_s26 = scalar_select %p270_p1, %s5309_s19, %s272_s24  }
   0x9   : > { %p5422_p5 = por %p283_p2, %p282_p0  ;;  %p5426_p6 = por %p289_p4, %p288_p3 }
   0xa   : > { %p4185_p7 = scmp.ge.s32.totalorder %s5313_s20, 1  ;;  %p350_p8 = scmp.lt.s32.totalorder %s5313_s20, 3 }
   0xc   : > { %p351_p9 = pnand %p4185_p7, %p350_p8 }
   0xe   : > { %354 = sbr.rel (%p351_p9) target bundleno = 1361 (0x551), region = 64 }
  0x15   : > { %v4922_v0 = vld [vmem:[%s8506_s2] sm:$0xff]   ;;  %v5315_v1 = vmov 0   ;;  %v4923_v2 = vld [vmem:[%s8506_s2 + $0x8] sm:$0xff]   ;;  %p395_p10 = scmp.lt.s32.totalorder %s5405_s21, 1  ;;  %v4924_v3 = vld [vmem:[%s8506_s2 + $0x10] sm:$0xff]   ;;  %v5316_v5 = vmov 0.0  }
  0x16   : > { %4693 = vmatprep.subr.bf16.mxu1 %v5315_v1  ;;  %v4925_v4 = vld [vmem:[%s8506_s2 + $0x18] sm:$0xff]   ;;  %4542 = vmatprep.subr.mxu0 %v5316_v5  ;;  %v4926_v6 = vld [vmem:[%s8506_s2 + $0x20] sm:$0xff]   ;;  %v4927_v8 = vld [vmem:[%s8506_s2 + $0x28] sm:$0xff]   ;;  %vm5317_vm0 = vmmov 0   ;;  %vm803_vm1 = vcmask 1043456   ;;  %vm662_vm2 = vcmask 31744  }
  0x17   : > { %4709 = vmatpush1.bf16.msra.mxu1 %v4922_v0  ;;  %s5446_s16 = scalar_select %p395_p10, %s5405_s21, 1  ;;  %4544 = vmatprep.mubr.msk.f32.mxu0 %vm5317_vm0, %v5316_v5  ;;  %v4928_v9 = vld [vmem:[%s8506_s2 + $0x30] sm:$0xff]   ;;  %v4929_v10 = vld [vmem:[%s8506_s2 + $0x38] sm:$0xff]   ;;  %v5478_v11 = vld [vmem:[%s8506_s2 + $0x40] sm:$0xff]   ;;  %vm2943_vm3 = vcmask 261120   ;;  %vm3475_vm4 = vcmask 1045504  }
  0x18   : > { %4694 = vmatprep.subr.bf16.mxu1 %v5315_v1  ;;  %v5485_v12 = vld [vmem:[%s8506_s2 + $0x48] sm:$0xff]   ;;  %v5492_v13 = vld [vmem:[%s8506_s2 + $0x50] sm:$0xff]   ;;  %v5500_v14 = vld [vmem:[%s8506_s2 + $0x58] sm:$0xff]   ;;  %vm3257_vm5 = vcmask 1041409   ;;  %vm3259_vm6 = vcmask 1042434   ;;  %vm3261_vm7 = vcmask 1043459  }
  0x19   : > { %s4448_s25 = sshll.u32 %s5446_s16, 10  ;;  %v5511_v15 = vld [vmem:[%s8506_s2 + $0x60] sm:$0xff]   ;;  %v5533_v27 = vld [vmem:[%s8506_s2 + $0x68] sm:$0xff]   ;;  %v5544_v34 = vld [vmem:[%s8506_s2 + $0x70] sm:$0xff]   ;;  %vm3263_vm8 = vcmask 1044484   ;;  %vm3265_vm9 = vcmask 1045509  }
  0x1a   : > { %s5459_s14 = scalar_lea.vmem %s8505_s1, %s4448_s25  ;;  %s4447_s25 = sshll.u32 %s5446_s16, 9  ;;  %v798_v16 = vld [vmem:[%s8507_s3] sm:$0xf]  ;;  %v5555_v41 = vld [vmem:[%s8506_s2 + $0x78] sm:$0xff]   ;;  %v4944_v57 = vld [vmem:[%s8506_s2 + $0x88] sm:$0xff]   ;;  %vm3267_vm10 = vcmask 1046534  }
  0x1b   : > { %4710 = vmatpush1.bf16.msra.mxu1 %v4923_v2  ;;  %v4940_v7 = vld [vmem:[%s5459_s14 + $0x2a4] ss:$16 sps:$4 sm:$0xff]   ;;  %s5506_s22 = scalar_lea.vmem %s8504_s0, %s4447_s25  ;;  %4543 = vmatpush3.msk.msra.mxu0 %vm803_vm1, %v798_v16  ;;  %v4938_v47 = vld [vmem:[%s5459_s14 + $0x2a0] ss:$16 sps:$4 sm:$0xff]   ;;  %vm3269_vm11 = vcmask 1047559   ;;  %vm3444_vm12 = vcmask 48128  }
  0x1c   : > { %4695 = vmatprep.subr.bf16.mxu1 %v5315_v1  ;;  %1913 = vmatprep.mubr.bf16.mxu1 %v4940_v7  ;;  %v406_v17 = vld [vmem:[%s5506_s22] sm:$0xff]  ;;  %v407_v18 = vld [vmem:[%s5506_s22 + $0x8] sm:$0xff]  ;;  %v408_v19 = vld [vmem:[%s5506_s22 + $0x10] sm:$0xff]  ;;  %s5318_s24 = smov 96   ;;  %s5319_s29 = smov 64  }
  0x1d   : > { %1713 = vmatprep.subr.bf16.mxu0 %v5315_v1  ;;  %v409_v20 = vld [vmem:[%s5506_s22 + $0x18] sm:$0xff]  ;;  %v663_v21 = vsel %vm662_vm2, %v406_v17, 0.0  ;;  %v664_v22 = vsel %vm662_vm2, %v407_v18, 0.0  ;;  %v666_v23 = vsel %vm662_vm2, %v408_v19, 0.0  ;;  %v410_v24 = vld [vmem:[%s5506_s22 + $0x20] sm:$0xff]  ;;  %v411_v28 = vld [vmem:[%s5506_s22 + $0x28] sm:$0xff] }
  0x1e   : > { %v665_v25 = vadd.f32 %v664_v22, %v663_v21  ;;  %v668_v26 = vsel %vm662_vm2, %v409_v20, 0.0  ;;  %v670_v30 = vsel %vm662_vm2, %v410_v24, 0.0  ;;  %v412_v31 = vld [vmem:[%s5506_s22 + $0x30] sm:$0xff]  ;;  %v672_v33 = vsel %vm662_vm2, %v411_v28, 0.0  ;;  %v413_v35 = vld [vmem:[%s5506_s22 + $0x38] sm:$0xff]  ;;  %v414_v38 = vld [vmem:[%s5506_s22 + $0x40] sm:$0xff] }
  0x1f   : > { %4711 = vmatpush1.bf16.msra.mxu1 %v4924_v3  ;;  %v674_v37 = vsel %vm662_vm2, %v412_v31, 0.0  ;;  %v676_v40 = vsel %vm662_vm2, %v413_v35, 0.0  ;;  %v415_v42 = vld [vmem:[%s5506_s22 + $0x48] sm:$0xff]  ;;  %v678_v44 = vsel %vm662_vm2, %v414_v38, 0.0  ;;  %v416_v45 = vld [vmem:[%s5506_s22 + $0x50] sm:$0xff]  ;;  %v4941_v49 = vld [vmem:[%s8506_s2 + $0x80] sm:$0xff]  }
  0x20   : > { %4696 = vmatprep.subr.bf16.mxu1 %v5315_v1  ;;  %v667_v29 = vadd.f32 %v666_v23, %v665_v25  ;;  %v680_v48 = vsel %vm662_vm2, %v415_v42, 0.0  ;;  %v4942_v50 = vld [vmem:[%s5459_s14 + $0x2c4] ss:$16 sps:$4 sm:$0xff]   ;;  %v417_v51 = vld [vmem:[%s5506_s22 + $0x58] sm:$0xff]  ;;  %v682_v53 = vsel %vm662_vm2, %v416_v45, 0.0  ;;  %v419_v58 = vld [vmem:[%s5506_s22 + $0x68] sm:$0xff] }
  0x21   : > { %v418_v54 = vld [vmem:[%s5506_s22 + $0x60] sm:$0xff]  ;;  %v684_v56 = vsel %vm662_vm2, %v417_v51, 0.0  ;;  %v4946_v62 = vld [vmem:[%s8506_s2 + $0x90] sm:$0xff]   ;;  %v421_v3 = vld [vmem:[%s5506_s22 + $0x78] sm:$0xff]  ;;  %s4449_s13 = sshll.u32 %s5405_s21, 13 }
  0x22   : > { %v669_v32 = vadd.f32 %v668_v26, %v667_v29  ;;  %v4945_v60 = vld [vmem:[%s5459_s14 + $0x2c0] ss:$16 sps:$4 sm:$0xff]   ;;  %v686_v61 = vsel %vm662_vm2, %v418_v54, 0.0  ;;  %v4947_v2 = vld [vmem:[%s5459_s14 + $0x2e4] ss:$16 sps:$4 sm:$0xff]   ;;  %v692_v16 = vsel %vm662_vm2, %v421_v3, 0.0 }
  0x23   : > { %4712 = vmatpush1.bf16.msra.mxu1 %v4925_v4  ;;  %v420_v63 = vld [vmem:[%s5506_s22 + $0x70] sm:$0xff]  ;;  %v688_v4 = vsel %vm662_vm2, %v419_v58, 0.0  ;;  %v4953_v22 = vld [vmem:[%s8506_s2 + $0xa0] sm:$0xff]   ;;  %v425_v23 = vld [vmem:[%s5506_s22 + $0x98] sm:$0xff] }
  0x24   : > { %4697 = vmatprep.subr.bf16.mxu1 %v5315_v1  ;;  %v671_v36 = vadd.f32 %v670_v30, %v669_v32  ;;  %v690_v7 = vsel %vm662_vm2, %v420_v63, 0.0  ;;  %v424_v17 = vld [vmem:[%s5506_s22 + $0x90] sm:$0xff]  ;;  %v426_v28 = vld [vmem:[%s5506_s22 + $0xa0] sm:$0xff]  ;;  %v4955_v30 = vld [vmem:[%s8506_s2 + $0xa8] sm:$0xff]  }
  0x25   : > { %v4949_v19 = vld [vmem:[%s5459_s14 + $0x2e0] ss:$16 sps:$4 sm:$0xff]   ;;  %v4951_v21 = vld [vmem:[%s5459_s14 + $0x304] ss:$16 sps:$4 sm:$0xff]   ;;  %v698_v29 = vsel %vm662_vm2, %v424_v17, 0.0  ;;  %v427_v31 = vld [vmem:[%s5506_s22 + $0xa8] sm:$0xff] }
  0x26   : > { %v673_v39 = vadd.f32 %v672_v33, %v671_v36  ;;  %v700_v33 = vsel %vm662_vm2, %v425_v23, 0.0  ;;  %v428_v35 = vld [vmem:[%s5506_s22 + $0xb0] sm:$0xff]  ;;  %v702_v38 = vsel %vm662_vm2, %v426_v28, 0.0  ;;  %v429_v42 = vld [vmem:[%s5506_s22 + $0xb8] sm:$0xff]  ;;  %v439_v23 = vld [vmem:[%s5506_s22 + $0x108] sm:$0xff] }
  0x27   : > { %4713 = vmatpush1.bf16.msra.mxu1 %v4926_v6  ;;  %v422_v6 = vld [vmem:[%s5506_s22 + $0x80] sm:$0xff]  ;;  %v708_v51 = vsel %vm662_vm2, %v429_v42, 0.0  ;;  %v433_v58 = vld [vmem:[%s5506_s22 + $0xd8] sm:$0xff] }
  0x28   : > { %4698 = vmatprep.subr.bf16.mxu1 %v5315_v1  ;;  %v675_v43 = vadd.f32 %v674_v37, %v673_v39  ;;  %v694_v20 = vsel %vm662_vm2, %v422_v6, 0.0  ;;  %v4954_v37 = vld [vmem:[%s5459_s14 + $0x300] ss:$16 sps:$4 sm:$0xff]   ;;  %v4956_v39 = vld [vmem:[%s5459_s14 + $0x324] ss:$16 sps:$4 sm:$0xff]  }
  0x29   : > { %v4958_v54 = vld [vmem:[%s5459_s14 + $0x320] ss:$16 sps:$4 sm:$0xff]  }
  0x2a   : > { %v677_v46 = vadd.f32 %v676_v40, %v675_v43  ;;  %v4959_v40 = vld [vmem:[%s8506_s2 + $0xb0] sm:$0xff]  }
  0x2b   : > { %4714 = vmatpush1.bf16.msra.mxu1 %v4927_v8  ;;  %v4950_v8 = vld [vmem:[%s8506_s2 + $0x98] sm:$0xff]  }
  0x2c   : > { %4699 = vmatprep.subr.bf16.mxu1 %v5315_v1  ;;  %v679_v52 = vadd.f32 %v678_v44, %v677_v46  ;;  %v704_v44 = vsel %vm662_vm2, %v427_v31, 0.0  ;;  %v430_v46 = vld [vmem:[%s5506_s22 + $0xc0] sm:$0xff] }
  0x2d   : > { %v4967_v31 = vld [vmem:[%s5459_s14 + $0x360] ss:$16 sps:$4 sm:$0xff]  }
  0x2e   : > { %v681_v55 = vadd.f32 %v680_v48, %v679_v52  ;;  %v4963_v48 = vld [vmem:[%s8506_s2 + $0xb8] sm:$0xff]   ;;  %v432_v52 = vld [vmem:[%s5506_s22 + $0xd0] sm:$0xff] }
  0x2f   : > { %4715 = vmatpush1.bf16.msra.mxu1 %v4928_v9  ;;  %v423_v9 = vld [vmem:[%s5506_s22 + $0x88] sm:$0xff]  ;;  %v714_v63 = vsel %vm662_vm2, %v432_v52, 0.0  ;;  %v4982_v52 = vld [vmem:[%s8506_s2 + $0xf0] sm:$0xff]  }
  0x30   : > { %4700 = vmatprep.subr.bf16.mxu1 %v5315_v1  ;;  %v683_v59 = vadd.f32 %v682_v53, %v681_v55  ;;  %v696_v25 = vsel %vm662_vm2, %v423_v9, 0.0  ;;  %v710_v55 = vsel %vm662_vm2, %v430_v46, 0.0  ;;  %v4965_v9 = vld [vmem:[%s5459_s14 + $0x364] ss:$16 sps:$4 sm:$0xff]  }
  0x32   : > { %v685_v0 = vadd.f32 %v684_v56, %v683_v59  ;;  %v4960_v56 = vld [vmem:[%s5459_s14 + $0x344] ss:$16 sps:$4 sm:$0xff]  }
  0x33   : > { %4716 = vmatpush1.bf16.msra.mxu1 %v4929_v10 }
  0x34   : > { %4701 = vmatprep.subr.bf16.mxu1 %v5315_v1  ;;  %v687_v5 = vadd.f32 %v686_v61, %v685_v0  ;;  %v4968_v0 = vld [vmem:[%s8506_s2 + $0xc8] sm:$0xff]  }
  0x36   : > { %v689_v10 = vadd.f32 %v688_v4, %v687_v5  ;;  %v716_v4 = vsel %vm662_vm2, %v433_v58, 0.0  ;;  %v436_v5 = vld [vmem:[%s5506_s22 + $0xf0] sm:$0xff] }
  0x37   : > { %4717 = vmatpush1.bf16.msra.mxu1 %v5478_v11 }
  0x38   : > { %4702 = vmatprep.subr.bf16.mxu1 %v5315_v1  ;;  %v691_v18 = vadd.f32 %v690_v7, %v689_v10  ;;  %v4962_v7 = vld [vmem:[%s5459_s14 + $0x340] ss:$16 sps:$4 sm:$0xff]  }
  0x39   : > { %v4972_v10 = vld [vmem:[%s8506_s2 + $0xd0] sm:$0xff]  }
  0x3a   : > { %v693_v24 = vadd.f32 %v692_v16, %v691_v18  ;;  %v437_v16 = vld [vmem:[%s5506_s22 + $0xf8] sm:$0xff] }
  0x3b   : > { %4718 = vmatpush1.bf16.msra.mxu1 %v5485_v12 }
  0x3c   : > { %4703 = vmatprep.subr.bf16.mxu1 %v5315_v1  ;;  %v695_v26 = vadd.f32 %v694_v20, %v693_v24  ;;  %v438_v20 = vld [vmem:[%s5506_s22 + $0x100] sm:$0xff] }
  0x3d   : > { %v726_v28 = vsel %vm662_vm2, %v438_v20, 0.0 }
  0x3e   : > { %v697_v32 = vadd.f32 %v696_v25, %v695_v26  ;;  %v724_v25 = vsel %vm662_vm2, %v437_v16, 0.0  ;;  %v451_v16 = vld [vmem:[%s5506_s22 + $0x168] sm:$0xff] }
  0x3f   : > { %4719 = vmatpush1.bf16.msra.mxu1 %v5492_v13 }
  0x40   : > { %4704 = vmatprep.subr.bf16.mxu1 %v5315_v1  ;;  %v699_v36 = vadd.f32 %v698_v29, %v697_v32  ;;  %v440_v29 = vld [vmem:[%s5506_s22 + $0x110] sm:$0xff]  ;;  %v728_v32 = vsel %vm662_vm2, %v439_v23, 0.0 }
  0x41   : > { %v4983_v23 = vld [vmem:[%s5459_s14 + $0x3e4] ss:$16 sps:$4 sm:$0xff]  }
  0x42   : > { %v701_v43 = vadd.f32 %v700_v33, %v699_v36  ;;  %v4969_v33 = vld [vmem:[%s5459_s14 + $0x384] ss:$16 sps:$4 sm:$0xff]   ;;  %v5677_v36 = vld [vmem:[%s5506_s22 + $0x118] sm:$0xff] }
  0x43   : > { %4720 = vmatpush1.bf16.msra.mxu1 %v5500_v14  ;;  %v732_v42 = vsel %vm662_vm2, %v5677_v36, 0.0 }
  0x44   : > { %4705 = vmatprep.subr.bf16.mxu1 %v5315_v1  ;;  %v703_v45 = vadd.f32 %v702_v38, %v701_v43  ;;  %v730_v38 = vsel %vm662_vm2, %v440_v29, 0.0  ;;  %v4981_v43 = vld [vmem:[%s8506_s2 + $0xe8] sm:$0xff]  }
  0x47   : > { %4721 = vmatpush1.bf16.msra.mxu1 %v5511_v15 }
  0x48   : > { %4706 = vmatprep.subr.bf16.mxu1 %v5315_v1 }
  0x4b   : > { %4722 = vmatpush1.bf16.msra.mxu1 %v5533_v27 }
  0x4c   : > { %4707 = vmatprep.subr.bf16.mxu1 %v5315_v1 }
  0x4f   : > { %4723 = vmatpush1.bf16.msra.mxu1 %v5544_v34 }
  0x50   : > { %4708 = vmatprep.subr.bf16.mxu1 %v5315_v1 }
  0x53   : > { %4724 = vmatpush1.bf16.msra.mxu1 %v5555_v41 }
  0x54   : > { %2002 = vmatprep.subr.bf16.mxu1 %v5315_v1 }
  0x56   : > { %1914 = vmatmul.mubr.bf16.vlgmr.msra.gmra.mrb[0].mxu1 %v4938_v47  ;;  %v706_v47 = vsel %vm662_vm2, %v428_v35, 0.0  ;;  %v4977_v35 = vld [vmem:[%s8506_s2 + $0xe0] sm:$0xff]  }
  0x57   : > { %2003 = vmatpush1.bf16.msra.mxu1 %v4941_v49  ;;  %1921 = vmatprep.mubr.bf16.mxu1 %v4942_v50  ;;  %v431_v49 = vld [vmem:[%s5506_s22 + $0xc8] sm:$0xff]  ;;  %v705_v50 = vadd.f32 %v704_v44, %v703_v45 }
  0x58   : > { %2004 = vmatprep.subr.bf16.mxu1 %v5315_v1  ;;  %v5690_v44 = vld [vmem:[%s5506_s22 + $0x128] sm:$0xff] }
  0x59   : > { %v707_v53 = vadd.f32 %v706_v47, %v705_v50  ;;  %v5696_v47 = vld [vmem:[%s5506_s22 + $0x130] sm:$0xff]  ;;  %v736_v50 = vsel %vm662_vm2, %v5690_v44, 0.0 }
  0x5b   : > { %2005 = vmatpush1.bf16.msra.mxu1 %v4944_v57  ;;  %v4964_v57 = vld [vmem:[%s8506_s2 + $0xc0] sm:$0xff]   ;;  %v709_v59 = vadd.f32 %v708_v51, %v707_v53  ;;  %v5706_v53 = vld [vmem:[%s5506_s22 + $0x138] sm:$0xff] }
  0x5c   : > { %2006 = vmatprep.subr.bf16.mxu1 %v5315_v1  ;;  %v4974_v51 = vld [vmem:[%s5459_s14 + $0x3a4] ss:$16 sps:$4 sm:$0xff]   ;;  %v740_v58 = vsel %vm662_vm2, %v5706_v53, 0.0 }
  0x5d   : > { %v711_v61 = vadd.f32 %v710_v55, %v709_v59  ;;  %v738_v55 = vsel %vm662_vm2, %v5696_v47, 0.0  ;;  %v447_v59 = vld [vmem:[%s5506_s22 + $0x148] sm:$0xff] }
  0x5e   : > { %1922 = vmatmul.mubr.bf16.gmra.mrb[4].mxu1 %v4945_v60  ;;  %v712_v60 = vsel %vm662_vm2, %v431_v49, 0.0  ;;  %v4971_v49 = vld [vmem:[%s5459_s14 + $0x380] ss:$16 sps:$4 sm:$0xff]  }
  0x5f   : > { %2007 = vmatpush1.bf16.msra.mxu1 %v4946_v62  ;;  %1929 = vmatprep.mubr.bf16.mxu1 %v4947_v2  ;;  %v434_v62 = vld [vmem:[%s5506_s22 + $0xe0] sm:$0xff]  ;;  %v435_v2 = vld [vmem:[%s5506_s22 + $0xe8] sm:$0xff]  ;;  %v713_v3 = vadd.f32 %v712_v60, %v711_v61  ;;  %v4986_v61 = vld [vmem:[%s8506_s2 + $0xf8] sm:$0xff]  }
  0x60   : > { %2008 = vmatprep.subr.bf16.mxu1 %v5315_v1  ;;  %v720_v18 = vsel %vm662_vm2, %v435_v2, 0.0  ;;  %v4976_v2 = vld [vmem:[%s5459_s14 + $0x3a0] ss:$16 sps:$4 sm:$0xff]  }
  0x61   : > { %v715_v6 = vadd.f32 %v714_v63, %v713_v3  ;;  %v5724_v63 = vld [vmem:[%s5506_s22 + $0x150] sm:$0xff]  ;;  %v744_v3 = vsel %vm662_vm2, %v447_v59, 0.0  ;;  %v4987_v59 = vld [vmem:[%s5459_s14 + $0x8] ss:$16 sps:$4 sm:$0xff]  }
  0x63   : > { %2009 = vmatpush1.bf16.msra.mxu1 %v4950_v8  ;;  %v718_v8 = vsel %vm662_vm2, %v434_v62, 0.0  ;;  %v717_v17 = vadd.f32 %v716_v4, %v715_v6  ;;  %v4978_v4 = vld [vmem:[%s5459_s14 + $0x3c4] ss:$16 sps:$4 sm:$0xff]  }
  0x64   : > { %2010 = vmatprep.subr.bf16.mxu1 %v5315_v1 }
  0x66   : > { %1930 = vmatmul.mubr.bf16.gmra.mrb[8].mxu1 %v4949_v19  ;;  %v719_v19 = vadd.f32 %v718_v8, %v717_v17  ;;  %v450_v8 = vld [vmem:[%s5506_s22 + $0x160] sm:$0xff] }
  0x67   : > { %1937 = vmatprep.mubr.bf16.mxu1 %v4951_v21  ;;  %2011 = vmatpush1.bf16.msra.mxu1 %v4953_v22  ;;  %v722_v21 = vsel %vm662_vm2, %v436_v5, 0.0  ;;  %v4973_v22 = vld [vmem:[%s8506_s2 + $0xd8] sm:$0xff]  }
  0x68   : > { %2012 = vmatprep.subr.bf16.mxu1 %v5315_v1  ;;  %v721_v24 = vadd.f32 %v720_v18, %v719_v19  ;;  %v449_v5 = vld [vmem:[%s5506_s22 + $0x158] sm:$0xff]  ;;  %v750_v18 = vsel %vm662_vm2, %v450_v8, 0.0  ;;  %v452_v19 = vld [vmem:[%s5506_s22 + $0x170] sm:$0xff] }
  0x69   : > { %v464_v8 = vld [vmem:[%s5506_s22 + $0x1d0] sm:$0xff] }
  0x6a   : > { %v723_v26 = vadd.f32 %v722_v21, %v721_v24  ;;  %v4980_v21 = vld [vmem:[%s5459_s14 + $0x3c0] ss:$16 sps:$4 sm:$0xff]   ;;  %v453_v24 = vld [vmem:[%s5506_s22 + $0x178] sm:$0xff] }
  0x6b   : > { %2013 = vmatpush1.bf16.msra.mxu1 %v4955_v30 }
  0x6c   : > { %2014 = vmatprep.subr.bf16.mxu1 %v5315_v1  ;;  %v725_v30 = vadd.f32 %v724_v25, %v723_v26  ;;  %v754_v26 = vsel %vm662_vm2, %v452_v19, 0.0  ;;  %v4993_v19 = vld [vmem:[%s5459_s14 + $0x4c] ss:$16 sps:$4 sm:$0xff]  }
  0x6e   : > { %1938 = vmatmul.mubr.bf16.gmra.mrb[12].mxu1 %v4954_v37  ;;  %v727_v37 = vadd.f32 %v726_v28, %v725_v30  ;;  %v454_v28 = vld [vmem:[%s5506_s22 + $0x180] sm:$0xff]  ;;  %v756_v30 = vsel %vm662_vm2, %v453_v24, 0.0  ;;  %v467_v24 = vld [vmem:[%s5506_s22 + $0x1e8] sm:$0xff] }
  0x6f   : > { %1945 = vmatprep.mubr.bf16.mxu1 %v4956_v39  ;;  %2015 = vmatpush1.bf16.msra.mxu1 %v4959_v40  ;;  %v5682_v39 = vld [vmem:[%s5506_s22 + $0x120] sm:$0xff] }
  0x70   : > { %2016 = vmatprep.subr.bf16.mxu1 %v5315_v1  ;;  %v729_v40 = vadd.f32 %v728_v32, %v727_v37  ;;  %v734_v46 = vsel %vm662_vm2, %v5682_v39, 0.0 }
  0x72   : > { %v731_v45 = vadd.f32 %v730_v38, %v729_v40  ;;  %v4985_v38 = vld [vmem:[%s5459_s14 + $0x3e0] ss:$16 sps:$4 sm:$0xff]  }
  0x73   : > { %2017 = vmatpush1.bf16.msra.mxu1 %v4963_v48 }
  0x74   : > { %2018 = vmatprep.subr.bf16.mxu1 %v5315_v1  ;;  %v733_v48 = vadd.f32 %v732_v42, %v731_v45  ;;  %v457_v42 = vld [vmem:[%s5506_s22 + $0x198] sm:$0xff] }
  0x75   : > { %v4989_v45 = vld [vmem:[%s5459_s14 + $0xc] ss:$16 sps:$4 sm:$0xff]  }
  0x76   : > { %1946 = vmatmul.mubr.bf16.gmra.mrb[16].mxu1 %v4958_v54  ;;  %v735_v54 = vadd.f32 %v734_v46, %v733_v48  ;;  %v458_v48 = vld [vmem:[%s5506_s22 + $0x1a0] sm:$0xff] }
  0x77   : > { %1953 = vmatprep.mubr.bf16.mxu1 %v4960_v56  ;;  %2019 = vmatpush1.bf16.msra.mxu1 %v4964_v57  ;;  %v5712_v56 = vld [vmem:[%s5506_s22 + $0x140] sm:$0xff] }
  0x78   : > { %2020 = vmatprep.subr.bf16.mxu1 %v5315_v1  ;;  %v737_v57 = vadd.f32 %v736_v50, %v735_v54  ;;  %v742_v62 = vsel %vm662_vm2, %v5712_v56, 0.0  ;;  %v764_v50 = vsel %vm662_vm2, %v457_v42, 0.0  ;;  %v766_v54 = vsel %vm662_vm2, %v458_v48, 0.0  ;;  %v4999_v48 = vld [vmem:[%s5459_s14 + $0x8c] ss:$16 sps:$4 sm:$0xff]  }
  0x7a   : > { %v739_v60 = vadd.f32 %v738_v55, %v737_v57  ;;  %v460_v55 = vld [vmem:[%s5506_s22 + $0x1b0] sm:$0xff] }
  0x7b   : > { %2021 = vmatpush1.bf16.msra.mxu1 %v4968_v0 }
  0x7c   : > { %2022 = vmatprep.subr.bf16.mxu1 %v5315_v1  ;;  %v741_v0 = vadd.f32 %v740_v58, %v739_v60  ;;  %v461_v60 = vld [vmem:[%s5506_s22 + $0x1b8] sm:$0xff] }
  0x7e   : > { %1954 = vmatmul.mubr.bf16.gmra.mrb[20].mxu1 %v4962_v7  ;;  %v743_v6 = vadd.f32 %v742_v62, %v741_v0  ;;  %v746_v7 = vsel %vm662_vm2, %v5724_v63, 0.0  ;;  %v4990_v62 = vld [vmem:[%s5459_s14 + $0x2c] ss:$16 sps:$4 sm:$0xff]   ;;  %v770_v0 = vsel %vm662_vm2, %v460_v55, 0.0 }
  0x7f   : > { %1961 = vmatprep.mubr.bf16.mxu1 %v4965_v9  ;;  %2023 = vmatpush1.bf16.msra.mxu1 %v4972_v10  ;;  %v748_v10 = vsel %vm662_vm2, %v449_v5, 0.0  ;;  %v463_v5 = vld [vmem:[%s5506_s22 + $0x1c8] sm:$0xff] }
  0x80   : > { %2024 = vmatprep.subr.bf16.mxu1 %v5315_v1  ;;  %v745_v9 = vadd.f32 %v744_v3, %v743_v6  ;;  %v5002_v55 = vld [vmem:[%s5459_s14 + $0xac] ss:$16 sps:$4 sm:$0xff]  }
  0x82   : > { %v747_v17 = vadd.f32 %v746_v7, %v745_v9 }
  0x83   : > { %2025 = vmatpush1.bf16.msra.mxu1 %v4973_v22  ;;  %v752_v22 = vsel %vm662_vm2, %v451_v16, 0.0  ;;  %v4992_v16 = vld [vmem:[%s5459_s14 + $0x28] ss:$16 sps:$4 sm:$0xff]  }
  0x84   : > { %2026 = vmatprep.subr.bf16.mxu1 %v5315_v1  ;;  %v749_v20 = vadd.f32 %v748_v10, %v747_v17  ;;  %v776_v10 = vsel %vm662_vm2, %v463_v5, 0.0  ;;  %v465_v17 = vld [vmem:[%s5506_s22 + $0x1d8] sm:$0xff] }
  0x85   : > { %v5189_v5 = vld [vmem:[%s8506_s2 + $0x18] sm:$0xff]  }
  0x86   : > { %1962 = vmatmul.mubr.bf16.gmra.mrb[24].mxu1 %v4967_v31  ;;  %v751_v25 = vadd.f32 %v750_v18, %v749_v20  ;;  %v455_v31 = vld [vmem:[%s5506_s22 + $0x188] sm:$0xff]  ;;  %v778_v20 = vsel %vm662_vm2, %v464_v8, 0.0 }
  0x87   : > { %1969 = vmatprep.mubr.bf16.mxu1 %v4969_v33  ;;  %2027 = vmatpush1.bf16.msra.mxu1 %v4977_v35  ;;  %v758_v33 = vsel %vm662_vm2, %v454_v28, 0.0  ;;  %v456_v35 = vld [vmem:[%s5506_s22 + $0x190] sm:$0xff]  ;;  %v760_v40 = vsel %vm662_vm2, %v455_v31, 0.0  ;;  %v4995_v31 = vld [vmem:[%s5459_s14 + $0x48] ss:$16 sps:$4 sm:$0xff]  }
  0x88   : > { %2028 = vmatprep.subr.bf16.mxu1 %v5315_v1  ;;  %v753_v29 = vadd.f32 %v752_v22, %v751_v25  ;;  %v762_v46 = vsel %vm662_vm2, %v456_v35, 0.0  ;;  %v468_v28 = vld [vmem:[%s5506_s22 + $0x1f0] sm:$0xff]  ;;  %v4996_v35 = vld [vmem:[%s5459_s14 + $0x6c] ss:$16 sps:$4 sm:$0xff]  }
  0x89   : > { %v5014_v8 = vld [vmem:[%s5459_s14 + $0x10c] ss:$16 sps:$4 sm:$0xff]  }
  0x8a   : > { %v755_v32 = vadd.f32 %v754_v26, %v753_v29 }
  0x8b   : > { %2029 = vmatpush1.bf16.msra.mxu1 %v4981_v43 }
  0x8c   : > { %2030 = vmatprep.subr.bf16.mxu1 %v5315_v1  ;;  %v757_v37 = vadd.f32 %v756_v30, %v755_v32  ;;  %v784_v30 = vsel %vm662_vm2, %v467_v24, 0.0  ;;  %v469_v32 = vld [vmem:[%s5506_s22 + $0x1f8] sm:$0xff]  ;;  %v5022_v24 = vld [vmem:[%s5459_s14 + $0x44] ss:$16 sps:$4 sm:$0xff]  }
  0x8e   : > { %1970 = vmatmul.mubr.bf16.gmra.mrb[28].mxu1 %v4971_v49  ;;  %v759_v43 = vadd.f32 %v758_v33, %v757_v37  ;;  %v786_v37 = vsel %vm662_vm2, %v468_v28, 0.0  ;;  %v5025_v28 = vld [vmem:[%s5459_s14 + $0x40] ss:$16 sps:$4 sm:$0xff]  }
  0x8f   : > { %1977 = vmatprep.mubr.bf16.mxu1 %v4974_v51  ;;  %2031 = vmatpush1.bf16.msra.mxu1 %v4982_v52  ;;  %v459_v51 = vld [vmem:[%s5506_s22 + $0x1a8] sm:$0xff] }
  0x90   : > { %2032 = vmatprep.subr.bf16.mxu1 %v5315_v1  ;;  %v761_v49 = vadd.f32 %v760_v40, %v759_v43  ;;  %v768_v58 = vsel %vm662_vm2, %v459_v51, 0.0  ;;  %v788_v40 = vsel %vm662_vm2, %v469_v32, 0.0  ;;  %v5031_v32 = vld [vmem:[%s5459_s14 + $0x60] ss:$16 sps:$4 sm:$0xff]  }
  0x92   : > { %v763_v52 = vadd.f32 %v762_v46, %v761_v49 }
  0x93   : > { %2033 = vmatpush1.bf16.msra.mxu1 %v4986_v61 }
  0x94   : > { %v765_v57 = vadd.f32 %v764_v50, %v763_v52  ;;  %v5001_v52 = vld [vmem:[%s5459_s14 + $0x88] ss:$16 sps:$4 sm:$0xff]  }
  0x96   : > { %1978 = vmatmul.mubr.bf16.gmra.mrb[32].mxu1 %v4976_v2  ;;  %v767_v61 = vadd.f32 %v766_v54, %v765_v57  ;;  %v462_v2 = vld [vmem:[%s5506_s22 + $0x1c0] sm:$0xff] }
  0x97   : > { %1985 = vmatprep.mubr.bf16.mxu1 %v4978_v4  ;;  %v772_v4 = vsel %vm662_vm2, %v461_v60, 0.0  ;;  %v774_v7 = vsel %vm662_vm2, %v462_v2, 0.0  ;;  %v5186_v60 = vld [vmem:[%s8506_s2] sm:$0xff]   ;;  %v5188_v2 = vld [vmem:[%s8506_s2 + $0x10] sm:$0xff]  }
  0x98   : > { %v769_v3 = vadd.f32 %v768_v58, %v767_v61  ;;  %v5012_v58 = vld [vmem:[%s5459_s14 + $0x4] ss:$16 sps:$4 sm:$0xff]   ;;  %v5004_v61 = vld [vmem:[%s5459_s14 + $0xa8] ss:$16 sps:$4 sm:$0xff]  }
  0x9a   : > { %v771_v6 = vadd.f32 %v770_v0, %v769_v3  ;;  %v5187_v0 = vld [vmem:[%s8506_s2 + $0x8] sm:$0xff]  }
  0x9b   : > { %v5007_v3 = vld [vmem:[%s5459_s14 + $0xc8] ss:$16 sps:$4 sm:$0xff]  }
  0x9c   : > { %v773_v9 = vadd.f32 %v772_v4, %v771_v6  ;;  %v5008_v4 = vld [vmem:[%s5459_s14 + $0xec] ss:$16 sps:$4 sm:$0xff]   ;;  %v5190_v6 = vld [vmem:[%s8506_s2 + $0x20] sm:$0xff]  }
  0x9e   : > { %1986 = vmatmul.mubr.bf16.gmra.mrb[36].mxu1 %v4980_v21  ;;  %v775_v18 = vadd.f32 %v774_v7, %v773_v9  ;;  %v466_v21 = vld [vmem:[%s5506_s22 + $0x1e0] sm:$0xff]  ;;  %v5013_v7 = vld [vmem:[%s5459_s14 + $0xe8] ss:$16 sps:$4 sm:$0xff]  }
  0x9f   : > { %1993 = vmatprep.mubr.bf16.mxu1 %v4983_v23  ;;  %v780_v23 = vsel %vm662_vm2, %v465_v17, 0.0  ;;  %v782_v26 = vsel %vm662_vm2, %v466_v21, 0.0  ;;  %v5191_v9 = vld [vmem:[%s8506_s2 + $0x28] sm:$0xff]  }
  0xa0   : > { %v777_v22 = vadd.f32 %v776_v10, %v775_v18  ;;  %v5192_v10 = vld [vmem:[%s8506_s2 + $0x30] sm:$0xff]   ;;  %v5020_v17 = vld [vmem:[%s5459_s14 + $0x12c] ss:$16 sps:$4 sm:$0xff]   ;;  %v5030_v21 = vld [vmem:[%s5459_s14 + $0x148] ss:$16 sps:$4 sm:$0xff]  }
  0xa1   : > { %v5193_v18 = vld [vmem:[%s8506_s2 + $0x38] sm:$0xff]  }
  0xa2   : > { %v779_v25 = vadd.f32 %v778_v20, %v777_v22  ;;  %v5026_v20 = vld [vmem:[%s5459_s14 + $0x14c] ss:$16 sps:$4 sm:$0xff]  }
  0xa3   : > { %v5032_v22 = vld [vmem:[%s5459_s14 + $0x16c] ss:$16 sps:$4 sm:$0xff]  }
  0xa4   : > { %v781_v29 = vadd.f32 %v780_v23, %v779_v25  ;;  %v5016_v23 = vld [vmem:[%s5459_s14 + $0x24] ss:$16 sps:$4 sm:$0xff]   ;;  %v5054_v25 = vld [vmem:[%s5459_s14 + $0x1c8] ss:$16 sps:$4 sm:$0xff]  }
  0xa6   : > { %1994 = vmatmul.mubr.bf16.gmra.mrb[40].mxu1 %v4985_v38  ;;  %v783_v33 = vadd.f32 %v782_v26, %v781_v29  ;;  %v5056_v26 = vld [vmem:[%s5459_s14 + $0x1ec] ss:$16 sps:$4 sm:$0xff]   ;;  %v5028_v29 = vld [vmem:[%s5459_s14 + $0x64] ss:$16 sps:$4 sm:$0xff]  }
  0xa7   : > { %2034 = vmatprep.mubr.bf16.mxu1 %v4989_v45  ;;  %v4998_v45 = vld [vmem:[%s5459_s14 + $0x68] ss:$16 sps:$4 sm:$0xff]  }
  0xa8   : > { %v785_v38 = vadd.f32 %v784_v30, %v783_v33  ;;  %v5060_v30 = vld [vmem:[%s5459_s14 + $0x1e8] ss:$16 sps:$4 sm:$0xff]   ;;  %v5034_v33 = vld [vmem:[%s5459_s14 + $0x84] ss:$16 sps:$4 sm:$0xff]  }
  0xaa   : > { %v787_v42 = vadd.f32 %v786_v37, %v785_v38  ;;  %v5068_v37 = vld [vmem:[%s5459_s14 + $0x22c] ss:$16 sps:$4 sm:$0xff]   ;;  %v5037_v38 = vld [vmem:[%s5459_s14 + $0x80] ss:$16 sps:$4 sm:$0xff]  }
  0xac   : > { %v789_v43 = vadd.f32 %v788_v40, %v787_v42  ;;  %v5040_v40 = vld [vmem:[%s5459_s14 + $0xa4] ss:$16 sps:$4 sm:$0xff]   ;;  %v5072_v42 = vld [vmem:[%s5459_s14 + $0x228] ss:$16 sps:$4 sm:$0xff]  }
  0xae   : > { %2035 = vmatmul.mubr.bf16.vlgmr.msra.gmra.mrb[44].mxu1 %v4987_v59  ;;  %v790_v46 = vrot.slane %v789_v43, 4 }
  0xaf   : > { %2042 = vmatprep.mubr.bf16.mxu1 %v4990_v62  ;;  %v5005_v62 = vld [vmem:[%s5459_s14 + $0xcc] ss:$16 sps:$4 sm:$0xff]  }
  0xb0   : > { %v791_v49 = vadd.f32 %v790_v46, %v789_v43  ;;  %v5074_v43 = vld [vmem:[%s5459_s14 + $0x24c] ss:$16 sps:$4 sm:$0xff]   ;;  %v5046_v46 = vld [vmem:[%s5459_s14 + $0xc4] ss:$16 sps:$4 sm:$0xff]  }
  0xb2   : > { %v792_v50 = vrot.slane %v791_v49, 2 }
  0xb4   : > { %v793_v51 = vadd.f32 %v792_v50, %v791_v49  ;;  %v5080_v49 = vld [vmem:[%s5459_s14 + $0x26c] ss:$16 sps:$4 sm:$0xff]   ;;  %v5049_v50 = vld [vmem:[%s5459_s14 + $0xc0] ss:$16 sps:$4 sm:$0xff]  }
  0xb6   : > { %2043 = vmatmul.mubr.bf16.gmra.mrb[48].mxu1 %v4992_v16  ;;  %v794_v54 = vrot.slane %v793_v51, 1  ;;  %v5018_v16 = vld [vmem:[%s5459_s14 + $0x108] ss:$16 sps:$4 sm:$0xff]  }
  0xb7   : > { %2050 = vmatprep.mubr.bf16.mxu1 %v4993_v19  ;;  %v5024_v19 = vld [vmem:[%s5459_s14 + $0x128] ss:$16 sps:$4 sm:$0xff]  }
  0xb8   : > { %v795_v57 = vadd.f32 %v794_v54, %v793_v51  ;;  %v5052_v51 = vld [vmem:[%s5459_s14 + $0xe4] ss:$16 sps:$4 sm:$0xff]   ;;  %v5086_v54 = vld [vmem:[%s5459_s14 + $0x28c] ss:$16 sps:$4 sm:$0xff]  }
  0xba   : > { %v797_v59 = vmul.f32 0.001953125, %v795_v57  ;;  %v5058_v57 = vld [vmem:[%s5459_s14 + $0x104] ss:$16 sps:$4 sm:$0xff]  }
  0xbc   : > { %4545 = vmatmul.mubr.msk.f32.vlgmr.msra.gmra.mrb[0].mxu0 %vm662_vm2, %v797_v59  ;;  %v5092_v59 = vld [vmem:[%s5459_s14 + $0x2ac] ss:$16 sps:$4 sm:$0xff]  }
  0xbd   : > { %1714 = vmatpush1.bf16.msra.mxu0 %v5186_v60  ;;  %1745 = vmatprep.mubr.bf16.mxu0 %v5012_v58  ;;  %v5090_v58 = vld [vmem:[%s5459_s14 + $0x288] ss:$16 sps:$4 sm:$0xff]   ;;  %v5061_v60 = vld [vmem:[%s5459_s14 + $0x100] ss:$16 sps:$4 sm:$0xff]  }
  0xbe   : > { %2051 = vmatmul.mubr.bf16.gmra.mrb[52].mxu1 %v4995_v31  ;;  %1715 = vmatprep.subr.bf16.mxu0 %v5315_v1  ;;  %v5062_v31 = vld [vmem:[%s5459_s14 + $0x20c] ss:$16 sps:$4 sm:$0xff]  }
  0xbf   : > { %2058 = vmatprep.mubr.bf16.mxu1 %v4996_v35  ;;  %v5066_v35 = vld [vmem:[%s5459_s14 + $0x208] ss:$16 sps:$4 sm:$0xff]  }
  0xc1   : > { %1716 = vmatpush1.bf16.msra.mxu0 %v5187_v0  ;;  %v5098_v0 = vld [vmem:[%s5459_s14 + $0x2cc] ss:$16 sps:$4 sm:$0xff]  }
  0xc2   : > { %1717 = vmatprep.subr.bf16.mxu0 %v5315_v1 }
  0xc5   : > { %1718 = vmatpush1.bf16.msra.mxu0 %v5188_v2  ;;  %v5067_v2 = vld [vmem:[%s5459_s14 + $0x120] ss:$16 sps:$4 sm:$0xff]  }
  0xc6   : > { %2059 = vmatmul.mubr.bf16.gmra.mrb[56].mxu1 %v4998_v45  ;;  %1719 = vmatprep.subr.bf16.mxu0 %v5315_v1  ;;  %v5043_v45 = vld [vmem:[%s5459_s14 + $0xa0] ss:$16 sps:$4 sm:$0xff]  }
  0xc7   : > { %2066 = vmatprep.mubr.bf16.mxu1 %v4999_v48  ;;  %v5078_v48 = vld [vmem:[%s5459_s14 + $0x248] ss:$16 sps:$4 sm:$0xff]  }
  0xc9   : > { %1720 = vmatpush1.bf16.msra.mxu0 %v5189_v5  ;;  %v5104_v5 = vld [vmem:[%s5459_s14 + $0x2ec] ss:$16 sps:$4 sm:$0xff]  }
  0xca   : > { %1721 = vmatprep.subr.bf16.mxu0 %v5315_v1 }
  0xcd   : > { %1722 = vmatpush1.bf16.msra.mxu0 %v5190_v6  ;;  %v5073_v6 = vld [vmem:[%s5459_s14 + $0x140] ss:$16 sps:$4 sm:$0xff]  }
  0xce   : > { %2067 = vmatmul.mubr.bf16.gmra.mrb[60].mxu1 %v5001_v52  ;;  %1723 = vmatprep.subr.bf16.mxu0 %v5315_v1  ;;  %v5084_v52 = vld [vmem:[%s5459_s14 + $0x268] ss:$16 sps:$4 sm:$0xff]  }
  0xcf   : > { %2074 = vmatprep.mubr.bf16.mxu1 %v5002_v55  ;;  %v5055_v55 = vld [vmem:[%s5459_s14 + $0xe0] ss:$16 sps:$4 sm:$0xff]  }
  0xd1   : > { %1724 = vmatpush1.bf16.msra.mxu0 %v5191_v9  ;;  %v5110_v9 = vld [vmem:[%s5459_s14 + $0x30c] ss:$16 sps:$4 sm:$0xff]  }
  0xd2   : > { %1725 = vmatprep.subr.bf16.mxu0 %v5315_v1 }
  0xd5   : > { %1726 = vmatpush1.bf16.msra.mxu0 %v5192_v10  ;;  %v5079_v10 = vld [vmem:[%s5459_s14 + $0x160] ss:$16 sps:$4 sm:$0xff]  }
  0xd6   : > { %2075 = vmatmul.mubr.bf16.gmra.mrb[64].mxu1 %v5004_v61  ;;  %1727 = vmatprep.subr.bf16.mxu0 %v5315_v1  ;;  %v5064_v61 = vld [vmem:[%s5459_s14 + $0x124] ss:$16 sps:$4 sm:$0xff]  }
  0xd7   : > { %2082 = vmatprep.mubr.bf16.mxu1 %v5005_v62  ;;  %v5096_v62 = vld [vmem:[%s5459_s14 + $0x2a8] ss:$16 sps:$4 sm:$0xff]  }
  0xd9   : > { %1728 = vmatpush1.bf16.msra.mxu0 %v5193_v18  ;;  %v5116_v18 = vld [vmem:[%s5459_s14 + $0x32c] ss:$16 sps:$4 sm:$0xff]  }
  0xda   : > { %1729 = vmatprep.subr.bf16.mxu0 %v5315_v1 }
  0xdd   : > { %1730 = vmatpush1.bf16.msra.mxu0 %v5478_v11  ;;  %v5036_v11 = vld [vmem:[%s5459_s14 + $0x168] ss:$16 sps:$4 sm:$0xff]  }
  0xde   : > { %2083 = vmatmul.mubr.bf16.gmra.mrb[68].mxu1 %v5007_v3  ;;  %1731 = vmatprep.subr.bf16.mxu0 %v5315_v1  ;;  %v5070_v3 = vld [vmem:[%s5459_s14 + $0x144] ss:$16 sps:$4 sm:$0xff]  }
  0xdf   : > { %2090 = vmatprep.mubr.bf16.mxu1 %v5008_v4  ;;  %v5102_v4 = vld [vmem:[%s5459_s14 + $0x2c8] ss:$16 sps:$4 sm:$0xff]  }
  0xe1   : > { %1732 = vmatpush1.bf16.msra.mxu0 %v5485_v12  ;;  %v5038_v12 = vld [vmem:[%s5459_s14 + $0x18c] ss:$16 sps:$4 sm:$0xff]  }
  0xe2   : > { %1733 = vmatprep.subr.bf16.mxu0 %v5315_v1 }
  0xe5   : > { %1734 = vmatpush1.bf16.msra.mxu0 %v5492_v13  ;;  %v5042_v13 = vld [vmem:[%s5459_s14 + $0x188] ss:$16 sps:$4 sm:$0xff]  }
  0xe6   : > { %2091 = vmatmul.mubr.bf16.gmra.mrb[72].mxu1 %v5013_v7  ;;  %1735 = vmatprep.subr.bf16.mxu0 %v5315_v1  ;;  %v5076_v7 = vld [vmem:[%s5459_s14 + $0x164] ss:$16 sps:$4 sm:$0xff]  }
  0xe7   : > { %2098 = vmatprep.mubr.bf16.mxu1 %v5014_v8  ;;  %v5108_v8 = vld [vmem:[%s5459_s14 + $0x2e8] ss:$16 sps:$4 sm:$0xff]  }
  0xe9   : > { %1736 = vmatpush1.bf16.msra.mxu0 %v5500_v14  ;;  %v5044_v14 = vld [vmem:[%s5459_s14 + $0x1ac] ss:$16 sps:$4 sm:$0xff]  }
  0xea   : > { %1737 = vmatprep.subr.bf16.mxu0 %v5315_v1 }
  0xed   : > { %1738 = vmatpush1.bf16.msra.mxu0 %v5511_v15  ;;  %v5010_v15 = vld [vmem:[%s5459_s14] ss:$16 sps:$4 sm:$0xff]  }
  0xee   : > { %2099 = vmatmul.mubr.bf16.gmra.mrb[76].mxu1 %v5018_v16  ;;  %1739 = vmatprep.subr.bf16.mxu0 %v5315_v1  ;;  %v5082_v16 = vld [vmem:[%s5459_s14 + $0x184] ss:$16 sps:$4 sm:$0xff]  }
  0xef   : > { %2106 = vmatprep.mubr.bf16.mxu1 %v5020_v17  ;;  %v5114_v17 = vld [vmem:[%s5459_s14 + $0x308] ss:$16 sps:$4 sm:$0xff]  }
  0xf1   : > { %1740 = vmatpush1.bf16.msra.mxu0 %v5533_v27  ;;  %v2355_v27 = vld [vmem:[%s8509_s5] sm:$0xf] }
  0xf2   : > { %1741 = vmatprep.subr.bf16.mxu0 %v5315_v1 }
  0xf5   : > { %1742 = vmatpush1.bf16.msra.mxu0 %v5544_v34  ;;  %v5048_v34 = vld [vmem:[%s5459_s14 + $0x1a8] ss:$16 sps:$4 sm:$0xff]  }
  0xf6   : > { %2107 = vmatmul.mubr.bf16.gmra.mrb[80].mxu1 %v5024_v19  ;;  %1743 = vmatprep.subr.bf16.mxu0 %v5315_v1  ;;  %v5050_v1 = vld [vmem:[%s5459_s14 + $0x1cc] ss:$16 sps:$4 sm:$0xff]   ;;  %v5085_v19 = vld [vmem:[%s5459_s14 + $0x180] ss:$16 sps:$4 sm:$0xff]  }
  0xf7   : > { %2114 = vmatprep.mubr.bf16.mxu1 %v5026_v20  ;;  %v5088_v20 = vld [vmem:[%s5459_s14 + $0x1a4] ss:$16 sps:$4 sm:$0xff]  }
  0xf9   : > { %1744 = vmatpush1.bf16.msra.mxu0 %v5555_v41  ;;  %v5019_v41 = vld [vmem:[%s5459_s14 + $0x20] ss:$16 sps:$4 sm:$0xff]  }
  0xfa   : > { %4547 = vmatprep.subr.msk.mxu0 %vm803_vm1, %v2355_v27 }
  0xfc   : > { %1746 = vmatmul.mubr.bf16.vlgmr.msra.gmra.mrb[4].mxu0 %v5010_v15  ;;  %v5097_v15 = vld [vmem:[%s5459_s14 + $0x1c0] ss:$16 sps:$4 sm:$0xff]  }
  0xfd   : > { %1753 = vmatprep.mubr.bf16.mxu0 %v5016_v23  ;;  %4548 = vmatpush3.msk.msra.mxu0 %vm803_vm1, %v2355_v27  ;;  %v5100_v23 = vld [vmem:[%s5459_s14 + $0x1e4] ss:$16 sps:$4 sm:$0xff]  }
  0xfe   : > { %2115 = vmatmul.mubr.bf16.gmra.mrb[84].mxu1 %v5030_v21  ;;  %v5120_v21 = vld [vmem:[%s5459_s14 + $0x328] ss:$16 sps:$4 sm:$0xff]  }
  0xff   : > { %2122 = vmatprep.mubr.bf16.mxu1 %v5032_v22  ;;  %v5122_v22 = vld [vmem:[%s5459_s14 + $0x34c] ss:$16 sps:$4 sm:$0xff]  }
 0x104   : > { %1754 = vmatmul.mubr.bf16.gmra.mrb[8].mxu0 %v5019_v41 }
 0x105   : > { %1761 = vmatprep.mubr.bf16.mxu0 %v5022_v24  ;;  %v5134_v24 = vld [vmem:[%s5459_s14 + $0x38c] ss:$16 sps:$4 sm:$0xff]  }
 0x106   : > { %2123 = vmatmul.mubr.bf16.gmra.mrb[88].mxu1 %v5036_v11  ;;  %v5091_v11 = vld [vmem:[%s5459_s14 + $0x1a0] ss:$16 sps:$4 sm:$0xff]  }
 0x107   : > { %2130 = vmatprep.mubr.bf16.mxu1 %v5038_v12  ;;  %v5094_v12 = vld [vmem:[%s5459_s14 + $0x1c4] ss:$16 sps:$4 sm:$0xff]  }
 0x10c   : > { %1762 = vmatmul.mubr.bf16.gmra.mrb[12].mxu0 %v5025_v28  ;;  %v5106_v28 = vld [vmem:[%s5459_s14 + $0x204] ss:$16 sps:$4 sm:$0xff]  }
 0x10d   : > { %1769 = vmatprep.mubr.bf16.mxu0 %v5028_v29 }
 0x10e   : > { %2131 = vmatmul.mubr.bf16.gmra.mrb[92].mxu1 %v5042_v13  ;;  %v5126_v13 = vld [vmem:[%s5459_s14 + $0x348] ss:$16 sps:$4 sm:$0xff]  }
 0x10f   : > { %2138 = vmatprep.mubr.bf16.mxu1 %v5044_v14  ;;  %v5128_v14 = vld [vmem:[%s5459_s14 + $0x36c] ss:$16 sps:$4 sm:$0xff]  }
 0x114   : > { %1770 = vmatmul.mubr.bf16.gmra.mrb[16].mxu0 %v5031_v32 }
 0x115   : > { %1777 = vmatprep.mubr.bf16.mxu0 %v5034_v33  ;;  %v5137_v33 = vld [vmem:[%s5459_s14 + $0x3ac] ss:$16 sps:$4 sm:$0xff]  }
 0x116   : > { %2139 = vmatmul.mubr.bf16.gmra.mrb[96].mxu1 %v5048_v34 }
 0x117   : > { %2146 = vmatprep.mubr.bf16.mxu1 %v5050_v1  ;;  %v5132_v1 = vld [vmem:[%s5459_s14 + $0x368] ss:$16 sps:$4 sm:$0xff]  }
 0x11c   : > { %1778 = vmatmul.mubr.bf16.gmra.mrb[20].mxu0 %v5037_v38  ;;  %v5112_v38 = vld [vmem:[%s5459_s14 + $0x224] ss:$16 sps:$4 sm:$0xff]  }
 0x11d   : > { %1785 = vmatprep.mubr.bf16.mxu0 %v5040_v40 }
 0x11e   : > { %2147 = vmatmul.mubr.bf16.gmra.mrb[100].mxu1 %v5054_v25 }
 0x11f   : > { %2154 = vmatprep.mubr.bf16.mxu1 %v5056_v26  ;;  %v5103_v26 = vld [vmem:[%s5459_s14 + $0x1e0] ss:$16 sps:$4 sm:$0xff]  }
 0x124   : > { %1786 = vmatmul.mubr.bf16.gmra.mrb[24].mxu0 %v5043_v45 }
 0x125   : > { %1793 = vmatprep.mubr.bf16.mxu0 %v5046_v46  ;;  %v5140_v46 = vld [vmem:[%s5459_s14 + $0x3cc] ss:$16 sps:$4 sm:$0xff]  }
 0x126   : > { %2155 = vmatmul.mubr.bf16.gmra.mrb[104].mxu1 %v5060_v30 }
 0x127   : > { %2162 = vmatprep.mubr.bf16.mxu1 %v5062_v31  ;;  %v5136_v31 = vld [vmem:[%s5459_s14 + $0x388] ss:$16 sps:$4 sm:$0xff]  }
 0x12c   : > { %1794 = vmatmul.mubr.bf16.gmra.mrb[28].mxu0 %v5049_v50  ;;  %v5118_v50 = vld [vmem:[%s5459_s14 + $0x244] ss:$16 sps:$4 sm:$0xff]  }
 0x12d   : > { %1801 = vmatprep.mubr.bf16.mxu0 %v5052_v51 }
 0x12e   : > { %2163 = vmatmul.mubr.bf16.gmra.mrb[108].mxu1 %v5066_v35 }
 0x12f   : > { %2170 = vmatprep.mubr.bf16.mxu1 %v5068_v37  ;;  %v5109_v37 = vld [vmem:[%s5459_s14 + $0x200] ss:$16 sps:$4 sm:$0xff]  }
 0x134   : > { %1802 = vmatmul.mubr.bf16.gmra.mrb[32].mxu0 %v5055_v55 }
 0x135   : > { %1809 = vmatprep.mubr.bf16.mxu0 %v5058_v57  ;;  %v5143_v57 = vld [vmem:[%s5459_s14 + $0x3ec] ss:$16 sps:$4 sm:$0xff]  }
 0x136   : > { %2171 = vmatmul.mubr.bf16.gmra.mrb[112].mxu1 %v5072_v42 }
 0x137   : > { %2178 = vmatprep.mubr.bf16.mxu1 %v5074_v43  ;;  %v5139_v43 = vld [vmem:[%s5459_s14 + $0x3a8] ss:$16 sps:$4 sm:$0xff]  }
 0x13c   : > { %1810 = vmatmul.mubr.bf16.gmra.mrb[36].mxu0 %v5061_v60  ;;  %v5124_v60 = vld [vmem:[%s5459_s14 + $0x264] ss:$16 sps:$4 sm:$0xff]  }
 0x13d   : > { %1817 = vmatprep.mubr.bf16.mxu0 %v5064_v61 }
 0x13e   : > { %2179 = vmatmul.mubr.bf16.gmra.mrb[116].mxu1 %v5078_v48 }
 0x13f   : > { %2186 = vmatprep.mubr.bf16.mxu1 %v5080_v49  ;;  %v5115_v49 = vld [vmem:[%s5459_s14 + $0x220] ss:$16 sps:$4 sm:$0xff]  }
 0x144   : > { %1818 = vmatmul.mubr.bf16.gmra.mrb[40].mxu0 %v5067_v2 }
 0x145   : > { %1825 = vmatprep.mubr.bf16.mxu0 %v5070_v3 }
 0x146   : > { %2187 = vmatmul.mubr.bf16.gmra.mrb[120].mxu1 %v5084_v52 }
 0x147   : > { %2194 = vmatprep.mubr.bf16.mxu1 %v5086_v54  ;;  %v5142_v54 = vld [vmem:[%s5459_s14 + $0x3c8] ss:$16 sps:$4 sm:$0xff]  }
 0x14c   : > { %1826 = vmatmul.mubr.bf16.gmra.mrb[44].mxu0 %v5073_v6  ;;  %v5127_v6 = vld [vmem:[%s5459_s14 + $0x260] ss:$16 sps:$4 sm:$0xff]  }
 0x14d   : > { %1833 = vmatprep.mubr.bf16.mxu0 %v5076_v7  ;;  %v5130_v7 = vld [vmem:[%s5459_s14 + $0x284] ss:$16 sps:$4 sm:$0xff]  }
 0x14e   : > { %2195 = vmatmul.mubr.bf16.gmra.mrb[124].mxu1 %v5090_v58 }
 0x14f   : > { %2202 = vmatprep.mubr.bf16.mxu1 %v5092_v59  ;;  %v5121_v59 = vld [vmem:[%s5459_s14 + $0x240] ss:$16 sps:$4 sm:$0xff]  }
 0x154   : > { %1834 = vmatmul.mubr.bf16.gmra.mrb[48].mxu0 %v5079_v10 }
 0x155   : > { %1841 = vmatprep.mubr.bf16.mxu0 %v5082_v16 }
 0x156   : > { %2203 = vmatmul.mubr.bf16.gmra.mrb[0].mxu1 %v5096_v62 }
 0x157   : > { %2210 = vmatprep.mubr.bf16.mxu1 %v5098_v0  ;;  %v5145_v0 = vld [vmem:[%s5459_s14 + $0x3e8] ss:$16 sps:$4 sm:$0xff]  }
 0x15c   : > { %1842 = vmatmul.mubr.bf16.gmra.mrb[52].mxu0 %v5085_v19 }
 0x15d   : > { %1849 = vmatprep.mubr.bf16.mxu0 %v5088_v20  ;;  %v5194_v20 = vld [vmem:[%s5506_s22] sm:$0xff] }
 0x15e   : > { %2211 = vmatmul.mubr.bf16.gmra.mrb[4].mxu1 %v5102_v4 }
 0x15f   : > { %2218 = vmatprep.mubr.bf16.mxu1 %v5104_v5 }
 0x164   : > { %1850 = vmatmul.mubr.bf16.gmra.mrb[56].mxu0 %v5091_v11 }
 0x165   : > { %1857 = vmatprep.mubr.bf16.mxu0 %v5094_v12  ;;  %v5195_v12 = vld [vmem:[%s5506_s22 + $0x8] sm:$0xff] }
 0x166   : > { %2219 = vmatmul.mubr.bf16.gmra.mrb[8].mxu1 %v5108_v8 }
 0x167   : > { %2226 = vmatprep.mubr.bf16.mxu1 %v5110_v9 }
 0x16c   : > { %1858 = vmatmul.mubr.bf16.gmra.mrb[60].mxu0 %v5097_v15 }
 0x16d   : > { %1865 = vmatprep.mubr.bf16.mxu0 %v5100_v23 }
 0x16e   : > { %2227 = vmatmul.mubr.bf16.gmra.mrb[12].mxu1 %v5114_v17  ;;  %v5133_v17 = vld [vmem:[%s5459_s14 + $0x280] ss:$16 sps:$4 sm:$0xff]   ;;  %s5321_s14 = smov [#allocation2]  }
 0x16f   : > { %2234 = vmatprep.mubr.bf16.mxu1 %v5116_v18 }
 0x174   : > { %1866 = vmatmul.mubr.bf16.gmra.mrb[64].mxu0 %v5103_v26 }
 0x175   : > { %1873 = vmatprep.mubr.bf16.mxu0 %v5106_v28  ;;  %v5200_v28 = vld [vmem:[%s5506_s22 + $0x30] sm:$0xff] }
 0x176   : > { %2235 = vmatmul.mubr.bf16.gmra.mrb[16].mxu1 %v5120_v21 }
 0x177   : > { %2242 = vmatprep.mubr.bf16.mxu1 %v5122_v22 }
 0x17c   : > { %1874 = vmatmul.mubr.bf16.gmra.mrb[68].mxu0 %v5109_v37 }
 0x17d   : > { %1881 = vmatprep.mubr.bf16.mxu0 %v5112_v38  ;;  %v5201_v38 = vld [vmem:[%s5506_s22 + $0x38] sm:$0xff] }
 0x17e   : > { %2243 = vmatmul.mubr.bf16.gmra.mrb[20].mxu1 %v5126_v13 }
 0x17f   : > { %2250 = vmatprep.mubr.bf16.mxu1 %v5128_v14  ;;  %v5196_v14 = vld [vmem:[%s5506_s22 + $0x10] sm:$0xff] }
 0x181   : > { %v5915_v27 = vpop.f32.mrb[44].mxu1 }
 0x182   : > { %v2038_v34 = vpop.f32.mrb[45].mxu1 }
 0x183   : > { %v5918_v41 = vpop.f32.mrb[46].mxu1  ;;  %v5197_v34 = vld [vmem:[%s5506_s22 + $0x18] sm:$0xff] }
 0x184   : > { %v2041_v25 = vpop.f32.mrb[47].mxu1  ;;  %1882 = vmatmul.mubr.bf16.gmra.mrb[72].mxu0 %v5115_v49  ;;  %v5204_v49 = vld [vmem:[%s5506_s22 + $0x50] sm:$0xff] }
 0x185   : > { %1889 = vmatprep.mubr.bf16.mxu0 %v5118_v50  ;;  %v5199_v25 = vld [vmem:[%s5506_s22 + $0x28] sm:$0xff] }
 0x186   : > { %2251 = vmatmul.mubr.bf16.gmra.mrb[24].mxu1 %v5132_v1  ;;  %v5198_v1 = vld [vmem:[%s5506_s22 + $0x20] sm:$0xff] }
 0x187   : > { %2258 = vmatprep.mubr.bf16.mxu1 %v5134_v24 }
 0x189   : > { %v5923_v29 = vpop.f32.mrb[48].mxu1 }
 0x18a   : > { %v2046_v30 = vpop.f32.mrb[49].mxu1 }
 0x18b   : > { %v5926_v32 = vpop.f32.mrb[50].mxu1 }
 0x18c   : > { %v2049_v35 = vpop.f32.mrb[51].mxu1  ;;  %1890 = vmatmul.mubr.bf16.gmra.mrb[76].mxu0 %v5121_v59  ;;  %v5207_v59 = vld [vmem:[%s5506_s22 + $0x68] sm:$0xff] }
 0x18d   : > { %1897 = vmatprep.mubr.bf16.mxu0 %v5124_v60  ;;  %v3272_v35 = vld [vmem:[%s8511_s7 + $0x8] sm:$0xff] }
 0x18e   : > { %2259 = vmatmul.mubr.bf16.gmra.mrb[28].mxu1 %v5136_v31 }
 0x18f   : > { %2266 = vmatprep.mubr.bf16.mxu1 %v5137_v33  ;;  %v5952_v3 = vpop.f32.mrb[0].mxu0  ;;  %v3271_v33 = vld [vmem:[%s8511_s7] sm:$0xff] }
 0x190   : > { %v4546_v5 = vpop.f32.mrb[1].mxu0  ;;  %v4685_v37 = vpack.c.bf16 %v3272_v35, %v3271_v33 }
 0x191   : > { %v5931_v40 = vpop.f32.mrb[52].mxu1  ;;  %v5209_v5 = vld [vmem:[%s5506_s22 + $0x78] sm:$0xff] }
 0x192   : > { %v2054_v42 = vpop.f32.mrb[53].mxu1  ;;  %4686 = vmatprep.subr.bf16.mxu0 %v4685_v37 }
 0x193   : > { %v5934_v45 = vpop.f32.mrb[54].mxu1  ;;  %v5202_v42 = vld [vmem:[%s5506_s22 + $0x40] sm:$0xff] }
 0x194   : > { %v2057_v48 = vpop.f32.mrb[55].mxu1  ;;  %1898 = vmatmul.mubr.bf16.gmra.mrb[80].mxu0 %v5127_v6  ;;  %v5210_v6 = vld [vmem:[%s5506_s22 + $0x80] sm:$0xff] }
 0x195   : > { %1905 = vmatprep.mubr.bf16.mxu0 %v5130_v7  ;;  %v877_v7 = vlaneseq }
 0x196   : > { %2267 = vmatmul.mubr.bf16.gmra.mrb[32].mxu1 %v5139_v43 }
 0x197   : > { %2274 = vmatprep.mubr.bf16.mxu1 %v5140_v46  ;;  %v5203_v46 = vld [vmem:[%s5506_s22 + $0x48] sm:$0xff] }
 0x199   : > { %v5939_v51 = vpop.f32.mrb[56].mxu1 }
 0x19a   : > { %v2062_v52 = vpop.f32.mrb[57].mxu1 }
 0x19b   : > { %v5942_v55 = vpop.f32.mrb[58].mxu1 }
 0x19c   : > { %v2065_v58 = vpop.f32.mrb[59].mxu1  ;;  %1906 = vmatmul.mubr.bf16.gmra.mrb[84].mxu0 %v5133_v17 }
 0x19d   : > { %4549 = vmatprep.mubr.msk.f32.mxu0 %vm662_vm2, %v5194_v20  ;;  %v6027_v20 = vshrl.u32 %v877_v7, 7 }
 0x19e   : > { %2275 = vmatmul.mubr.bf16.gmra.mrb[36].mxu1 %v5142_v54  ;;  %v5205_v54 = vld [vmem:[%s5506_s22 + $0x58] sm:$0xff] }
 0x19f   : > { %2282 = vmatprep.mubr.bf16.mxu1 %v5143_v57  ;;  %v5206_v57 = vld [vmem:[%s5506_s22 + $0x60] sm:$0xff]  ;;  %8633 = vst [vmem:[#allocation5_spill] sm:$0xff] %v6027_v20 }
 0x1a1   : > { %v5947_v61 = vpop.f32.mrb[60].mxu1 }
 0x1a2   : > { %v2070_v62 = vpop.f32.mrb[61].mxu1 }
 0x1a3   : > { %v5950_v2 = vpop.f32.mrb[62].mxu1  ;;  %v5208_v62 = vld [vmem:[%s5506_s22 + $0x70] sm:$0xff] }
 0x1a4   : > { %v2073_v4 = vpop.f32.mrb[63].mxu1  ;;  %4550 = vmatmul.mubr.msk.f32.vlgmr.msra.gmra.mrb[2].mxu0 %vm662_vm2, %v5195_v12  ;;  %v799_v12 = vld [vmem:[%s8508_s4] sm:$0x1] }
 0x1a5   : > { %4552 = vmatprep.mubr.msk.f32.mxu0 %vm662_vm2, %v5196_v14  ;;  %4688 = vmatpush3.bf16.msra.mxu0 %v4685_v37  ;;  %v5213_v14 = vld [vmem:[%s5506_s22 + $0x98] sm:$0xff] }
 0x1a6   : > { %2283 = vmatmul.mubr.bf16.gmra.mrb[40].mxu1 %v5145_v0 }
 0x1a8   : > { %4553 = vmatmul.mubr.msk.f32.gmra.mrb[88].mxu0 %vm662_vm2, %v5197_v34  ;;  %v874_v34 = vadd.f32 %v5952_v3, %v799_v12  ;;  %v5222_v12 = vld [vmem:[%s5506_s22 + $0xe0] sm:$0xff] }
 0x1a9   : > { %v5956_v8 = vpop.f32.mrb[64].mxu1  ;;  %4555 = vmatprep.mubr.msk.f32.mxu0 %vm662_vm2, %v5198_v1  ;;  %v6040_v1 = vsub.s32 0, %v6027_v20 }
 0x1aa   : > { %v2078_v9 = vpop.f32.mrb[65].mxu1 }
 0x1ab   : > { %v5958_v10 = vpop.f32.mrb[66].mxu1  ;;  %8634 = vst [vmem:[#allocation6_spill] sm:$0xff] %v6040_v1  ;;  %v6049_v33 = vrot.slane %v874_v34, %v6040_v1 }
 0x1ac   : > { %v2081_v16 = vpop.f32.mrb[67].mxu1  ;;  %4556 = vmatmul.mubr.msk.f32.gmra.mrb[90].mxu0 %vm662_vm2, %v5199_v25 }
 0x1ad   : > { %4558 = vmatprep.mubr.msk.f32.mxu0 %vm662_vm2, %v5200_v28  ;;  %v5211_v16 = vld [vmem:[%s5506_s22 + $0x88] sm:$0xff] }
 0x1b0   : > { %4559 = vmatmul.mubr.msk.f32.gmra.mrb[92].mxu0 %vm662_vm2, %v5201_v38 }
 0x1b1   : > { %v5961_v18 = vpop.f32.mrb[68].mxu1  ;;  %4561 = vmatprep.mubr.msk.f32.mxu0 %vm662_vm2, %v5202_v42 }
 0x1b2   : > { %v2086_v19 = vpop.f32.mrb[69].mxu1 }
 0x1b3   : > { %v5965_v21 = vpop.f32.mrb[70].mxu1  ;;  %v5212_v19 = vld [vmem:[%s5506_s22 + $0x90] sm:$0xff] }
 0x1b4   : > { %v2089_v22 = vpop.f32.mrb[71].mxu1  ;;  %4562 = vmatmul.mubr.msk.f32.gmra.mrb[94].mxu0 %vm662_vm2, %v5203_v46  ;;  %v5217_v46 = vld [vmem:[%s5506_s22 + $0xb8] sm:$0xff] }
 0x1b5   : > { %4564 = vmatprep.mubr.msk.f32.mxu0 %vm662_vm2, %v5204_v49  ;;  %v5218_v49 = vld [vmem:[%s5506_s22 + $0xc0] sm:$0xff] }
 0x1b8   : > { %4565 = vmatmul.mubr.msk.f32.gmra.mrb[96].mxu0 %vm662_vm2, %v5205_v54 }
 0x1b9   : > { %v5967_v11 = vpop.f32.mrb[72].mxu1  ;;  %4567 = vmatprep.mubr.msk.f32.mxu0 %vm662_vm2, %v5206_v57 }
 0x1ba   : > { %v2094_v13 = vpop.f32.mrb[73].mxu1 }
 0x1bb   : > { %v5973_v15 = vpop.f32.mrb[74].mxu1 }
 0x1bc   : > { %v2097_v23 = vpop.f32.mrb[75].mxu1  ;;  %4568 = vmatmul.mubr.msk.f32.gmra.mrb[98].mxu0 %vm662_vm2, %v5207_v59 }
 0x1bd   : > { %4570 = vmatprep.mubr.msk.f32.mxu0 %vm662_vm2, %v5208_v62  ;;  %v5214_v23 = vld [vmem:[%s5506_s22 + $0xa0] sm:$0xff]  ;;  %v5219_v62 = vld [vmem:[%s5506_s22 + $0xc8] sm:$0xff] }
 0x1c0   : > { %4571 = vmatmul.mubr.msk.f32.gmra.mrb[100].mxu0 %vm662_vm2, %v5209_v5  ;;  %v5220_v5 = vld [vmem:[%s5506_s22 + $0xd0] sm:$0xff] }
 0x1c1   : > { %v5979_v24 = vpop.f32.mrb[76].mxu1  ;;  %4573 = vmatprep.mubr.msk.f32.mxu0 %vm662_vm2, %v5210_v6 }
 0x1c2   : > { %v2102_v26 = vpop.f32.mrb[77].mxu1 }
 0x1c3   : > { %v5985_v30 = vpop.f32.mrb[78].mxu1  ;;  %v5215_v26 = vld [vmem:[%s5506_s22 + $0xa8] sm:$0xff] }
 0x1c4   : > { %v2105_v31 = vpop.f32.mrb[79].mxu1  ;;  %4574 = vmatmul.mubr.msk.f32.gmra.mrb[102].mxu0 %vm662_vm2, %v5211_v16 }
 0x1c5   : > { %4576 = vmatprep.mubr.msk.f32.mxu0 %vm662_vm2, %v5212_v19  ;;  %v5216_v31 = vld [vmem:[%s5506_s22 + $0xb0] sm:$0xff] }
 0x1c8   : > { %4577 = vmatmul.mubr.msk.f32.gmra.mrb[104].mxu0 %vm662_vm2, %v5213_v14 }
 0x1c9   : > { %v5997_v43 = vpop.f32.mrb[80].mxu1  ;;  %4579 = vmatprep.mubr.msk.f32.mxu0 %vm662_vm2, %v5214_v23 }
 0x1ca   : > { %v2110_v48 = vpop.f32.mrb[81].mxu1 }
 0x1cb   : > { %v6003_v50 = vpop.f32.mrb[82].mxu1 }
 0x1cc   : > { %v2113_v52 = vpop.f32.mrb[83].mxu1  ;;  %4580 = vmatmul.mubr.msk.f32.gmra.mrb[106].mxu0 %vm662_vm2, %v5215_v26 }
 0x1cd   : > { %4582 = vmatprep.mubr.msk.f32.mxu0 %vm662_vm2, %v5216_v31 }
 0x1cf   : > { %v1747_v3 = vpop.f32.mrb[4].mxu0 }
 0x1d0   : > { %v1748_v38 = vadd.f32 %v1747_v3, %v6049_v33  ;;  %v1749_v42 = vpop.f32.mrb[5].mxu0  ;;  %4583 = vmatmul.mubr.msk.f32.gmra.mrb[108].mxu0 %vm662_vm2, %v5217_v46  ;;  %v5224_v3 = vld [vmem:[%s5506_s22 + $0xf0] sm:$0xff] }
 0x1d1   : > { %v6009_v58 = vpop.f32.mrb[84].mxu1  ;;  %v1750_v48 = vpop.f32.mrb[6].mxu0  ;;  %4585 = vmatprep.mubr.msk.f32.mxu0 %vm662_vm2, %v5218_v49  ;;  %v5226_v49 = vld [vmem:[%s5506_s22 + $0x100] sm:$0xff] }
 0x1d2   : > { %v2118_v60 = vpop.f32.mrb[85].mxu1  ;;  %v6059_v52 = vadd.f32 %v5915_v27, %v1748_v38  ;;  %v1751_v54 = vadd.f32 %v1750_v48, %v6049_v33  ;;  %v1752_v57 = vpop.f32.mrb[7].mxu0 }
 0x1d3   : > { %v6015_v0 = vpop.f32.mrb[86].mxu1 }
 0x1d4   : > { %v2121_v4 = vpop.f32.mrb[87].mxu1  ;;  %8635 = vst [vmem:[#allocation7_spill] sm:$0xff] %v6059_v52  ;;  %v6063_v59 = vadd.f32 %v5918_v41, %v1751_v54  ;;  %4586 = vmatmul.mubr.msk.f32.gmra.mrb[110].mxu0 %vm662_vm2, %v5219_v62  ;;  %v5221_v41 = vld [vmem:[%s5506_s22 + $0xd8] sm:$0xff] }
 0x1d5   : > { %4588 = vmatprep.mubr.msk.f32.mxu0 %vm662_vm2, %v5220_v5 }
 0x1d6   : > { %8636 = vst [vmem:[#allocation8_spill] sm:$0xff] %v6063_v59 }
 0x1d7   : > { %v1755_v27 = vpop.f32.mrb[8].mxu0 }
 0x1d8   : > { %v1756_v16 = vadd.f32 %v1755_v27, %v6049_v33  ;;  %4589 = vmatmul.mubr.msk.f32.gmra.mrb[112].mxu0 %vm662_vm2, %v5221_v41  ;;  %v5227_v27 = vld [vmem:[%s5506_s22 + $0x108] sm:$0xff] }
 0x1d9   : > { %v6021_v9 = vpop.f32.mrb[88].mxu1  ;;  %4591 = vmatprep.mubr.msk.f32.mxu0 %vm662_vm2, %v5222_v12 }
 0x1da   : > { %v2126_v17 = vpop.f32.mrb[89].mxu1 }
 0x1db   : > { %v6029_v22 = vpop.f32.mrb[90].mxu1  ;;  %v1757_v17 = vpop.f32.mrb[9].mxu0 }
 0x1dc   : > { %v2129_v13 = vpop.f32.mrb[91].mxu1  ;;  %v1758_v19 = vpop.f32.mrb[10].mxu0 }
 0x1dd   : > { %v6079_v13 = vadd.f32 %v5923_v29, %v1756_v16  ;;  %v1759_v14 = vadd.f32 %v1758_v19, %v6049_v33  ;;  %v1760_v23 = vpop.f32.mrb[11].mxu0  ;;  %v5228_v16 = vld [vmem:[%s5506_s22 + $0x110] sm:$0xff] }
 0x1df   : > { %8637 = vst [vmem:[#allocation9_spill] sm:$0xff] %v6079_v13  ;;  %v6083_v34 = vadd.f32 %v5926_v32, %v1759_v14  ;;  %v1763_v29 = vpop.f32.mrb[12].mxu0  ;;  %v5225_v32 = vld [vmem:[%s5506_s22 + $0xf8] sm:$0xff] }
 0x1e0   : > { %v1764_v42 = vadd.f32 %v1763_v29, %v6049_v33  ;;  %v1765_v46 = vpop.f32.mrb[13].mxu0 }
 0x1e1   : > { %v6042_v25 = vpop.f32.mrb[92].mxu1  ;;  %8638 = vst [vmem:[#allocation10_spill] sm:$0xff] %v6083_v34  ;;  %v1766_v48 = vpop.f32.mrb[14].mxu0 }
 0x1e2   : > { %v2134_v28 = vpop.f32.mrb[93].mxu1  ;;  %v6099_v54 = vadd.f32 %v5931_v40, %v1764_v42  ;;  %v1767_v57 = vadd.f32 %v1766_v48, %v6049_v33  ;;  %v1768_v62 = vpop.f32.mrb[15].mxu0 }
 0x1e3   : > { %v6051_v35 = vpop.f32.mrb[94].mxu1  ;;  %v5223_v28 = vld [vmem:[%s5506_s22 + $0xe8] sm:$0xff]  ;;  %v8517_v62 = vmax.f32 %v6063_v59, 0.0  ;;  %v5247_v59 = vld [vmem:[%s5506_s22 + $0x1e0] sm:$0xff] }
 0x1e4   : > { %v2137_v37 = vpop.f32.mrb[95].mxu1  ;;  %4592 = vmatmul.mubr.msk.f32.gmra.mrb[114].mxu0 %vm662_vm2, %v5223_v28  ;;  %8639 = vst [vmem:[#allocation11_spill] sm:$0xff] %v6099_v54 }
 0x1e5   : > { %4594 = vmatprep.mubr.msk.f32.mxu0 %vm662_vm2, %v5224_v3 }
 0x1e7   : > { %v1771_v41 = vpop.f32.mrb[16].mxu0 }
 0x1e8   : > { %4595 = vmatmul.mubr.msk.f32.gmra.mrb[116].mxu0 %vm662_vm2, %v5225_v32  ;;  %v1772_v19 = vadd.f32 %v1771_v41, %v6049_v33  ;;  %v1773_v12 = vpop.f32.mrb[17].mxu0  ;;  %v8523_v32 = vmax.f32 %v6059_v52, 0.0 }
 0x1e9   : > { %v6065_v60 = vpop.f32.mrb[96].mxu1  ;;  %4597 = vmatprep.mubr.msk.f32.mxu0 %vm662_vm2, %v5226_v49 }
 0x1ea   : > { %v2142_v4 = vpop.f32.mrb[97].mxu1  ;;  %v6119_v14 = vadd.f32 %v5939_v51, %v1772_v19 }
 0x1eb   : > { %v6071_v6 = vpop.f32.mrb[98].mxu1  ;;  %v6103_v4 = vadd.f32 %v5934_v45, %v1767_v57  ;;  %v1774_v45 = vpop.f32.mrb[18].mxu0 }
 0x1ec   : > { %v2145_v7 = vpop.f32.mrb[99].mxu1  ;;  %4598 = vmatmul.mubr.msk.f32.gmra.mrb[118].mxu0 %vm662_vm2, %v5227_v27  ;;  %8641 = vst [vmem:[#allocation13_spill] sm:$0xff] %v6119_v14  ;;  %v1775_v23 = vadd.f32 %v1774_v45, %v6049_v33  ;;  %v1776_v28 = vpop.f32.mrb[19].mxu0 }
 0x1ed   : > { %8640 = vst [vmem:[#allocation12_spill] sm:$0xff] %v6103_v4  ;;  %4600 = vmatprep.mubr.msk.f32.mxu0 %vm662_vm2, %v5228_v16  ;;  %v2944_v16 = vsel %vm2943_vm3, %v8523_v32, 0.0 }
 0x1f0   : > { %4601 = vmatmul.mubr.msk.f32.gmra.mrb[120].mxu0 %vm662_vm2, %v5677_v36 }
 0x1f1   : > { %v6085_v26 = vpop.f32.mrb[100].mxu1  ;;  %4603 = vmatprep.mubr.msk.f32.mxu0 %vm662_vm2, %v5682_v39  ;;  %v1779_v39 = vpop.f32.mrb[20].mxu0 }
 0x1f2   : > { %v2150_v31 = vpop.f32.mrb[101].mxu1  ;;  %v1780_v42 = vadd.f32 %v1779_v39, %v6049_v33  ;;  %v1781_v46 = vpop.f32.mrb[21].mxu0  ;;  %v5230_v39 = vld [vmem:[%s5506_s22 + $0x158] sm:$0xff] }
 0x1f3   : > { %v6091_v37 = vpop.f32.mrb[102].mxu1  ;;  %v6123_v31 = vadd.f32 %v5942_v55, %v1775_v23  ;;  %v3274_v55 = vld [vmem:[%s8511_s7 + $0x18] sm:$0xff] }
 0x1f4   : > { %v2153_v38 = vpop.f32.mrb[103].mxu1  ;;  %4604 = vmatmul.mubr.msk.f32.gmra.mrb[122].mxu0 %vm662_vm2, %v5690_v44  ;;  %v6146_v48 = vadd.f32 %v5947_v61, %v1780_v42  ;;  %v8521_v42 = vmax.f32 %v6079_v13, 0.0 }
 0x1f5   : > { %8642 = vst [vmem:[#allocation14_spill] sm:$0xff] %v6123_v31  ;;  %4606 = vmatprep.mubr.msk.f32.mxu0 %vm662_vm2, %v5696_v47  ;;  %v3273_v38 = vld [vmem:[%s8511_s7 + $0x10] sm:$0xff]  ;;  %v1782_v47 = vpop.f32.mrb[22].mxu0 }
 0x1f6   : > { %v4689_v44 = vpack.c.bf16 %v3274_v55, %v3273_v38  ;;  %8643 = vst [vmem:[#allocation15_spill] sm:$0xff] %v6146_v48  ;;  %v1783_v49 = vadd.f32 %v1782_v47, %v6049_v33  ;;  %v1784_v57 = vpop.f32.mrb[23].mxu0  ;;  %v8522_v27 = vmax.f32 %v6146_v48, 0.0  ;;  %v5231_v55 = vld [vmem:[%s5506_s22 + $0x160] sm:$0xff] }
 0x1f7   : > { %v1787_v12 = vpop.f32.mrb[24].mxu0 }
 0x1f8   : > { %4607 = vmatmul.mubr.msk.f32.gmra.mrb[124].mxu0 %vm662_vm2, %v5706_v53  ;;  %4690 = vmatprep.subr.bf16.mxu0 %v4689_v44  ;;  %v6152_v53 = vadd.f32 %v5950_v2, %v1783_v49  ;;  %v6166_v2 = vsel %vm2943_vm3, %v8522_v27, 0.0  ;;  %v1788_v28 = vadd.f32 %v1787_v12, %v6049_v33  ;;  %v8519_v49 = vmax.f32 %v6083_v34, 0.0  ;;  %v5232_v12 = vld [vmem:[%s5506_s22 + $0x168] sm:$0xff] }
 0x1f9   : > { %v6105_v5 = vpop.f32.mrb[104].mxu1  ;;  %4609 = vmatprep.mubr.msk.f32.mxu0 %vm662_vm2, %v5712_v56  ;;  %4692 = vmatpush3.bf16.msra.mxu0 %v4689_v44  ;;  %v5229_v56 = vld [vmem:[%s5506_s22 + $0x148] sm:$0xff]  ;;  %v6172_v19 = vadd.f32 %v6166_v2, %v2944_v16  ;;  %v8530_v27 = vmax.f32 %v6103_v4, 0.0  ;;  %v5239_v4 = vld [vmem:[%s5506_s22 + $0x1a0] sm:$0xff] }
 0x1fa   : > { %v2158_v7 = vpop.f32.mrb[105].mxu1  ;;  %8644 = vst [vmem:[#allocation16_spill] sm:$0xff] %v6152_v53  ;;  %v8516_v41 = vmax.f32 %v6152_v53, 0.0  ;;  %v6192_v46 = vadd.f32 %v5956_v8, %v1788_v28  ;;  %v2947_v8 = vsel %vm2943_vm3, %v8521_v42, 0.0  ;;  %v5236_v34 = vld [vmem:[%s5506_s22 + $0x188] sm:$0xff] }
 0x1fb   : > { %v6111_v17 = vpop.f32.mrb[106].mxu1  ;;  %v5240_v53 = vld [vmem:[%s5506_s22 + $0x1a8] sm:$0xff] }
 0x1fc   : > { %v2161_v40 = vpop.f32.mrb[107].mxu1  ;;  %4610 = vmatmul.mubr.msk.f32.gmra.mrb[126].mxu0 %vm662_vm2, %v5229_v56  ;;  %v6180_v23 = vsel %vm2943_vm3, %v8516_v41, 0.0  ;;  %8645 = vst [vmem:[#allocation17_spill] sm:$0xff] %v6192_v46  ;;  %v8518_v57 = vmax.f32 %v6192_v46, 0.0  ;;  %v5234_v41 = vld [vmem:[%s5506_s22 + $0x178] sm:$0xff] }
 0x1fd   : > { %4612 = vmatprep.mubr.msk.f32.mxu0 %vm662_vm2, %v5724_v63  ;;  %v2945_v63 = vsel %vm2943_vm3, %v8517_v62, 0.0 }
 0x1fe   : > { %v2946_v42 = vadd.f32 %v2945_v63, %v2944_v16 }
 0x200   : > { %4613 = vmatmul.mubr.msk.f32.gmra.mrb[128].mxu0 %vm662_vm2, %v5230_v39 }
 0x201   : > { %v6125_v3 = vpop.f32.mrb[108].mxu1  ;;  %4615 = vmatprep.mubr.msk.f32.mxu0 %vm662_vm2, %v5231_v55 }
 0x202   : > { %v2166_v29 = vpop.f32.mrb[109].mxu1 }
 0x203   : > { %v6131_v36 = vpop.f32.mrb[110].mxu1  ;;  %v1789_v29 = vpop.f32.mrb[25].mxu0 }
 0x204   : > { %v2169_v51 = vpop.f32.mrb[111].mxu1  ;;  %v1790_v38 = vpop.f32.mrb[26].mxu0  ;;  %4616 = vmatmul.mubr.msk.f32.gmra.mrb[130].mxu0 %vm662_vm2, %v5232_v12  ;;  %v5233_v29 = vld [vmem:[%s5506_s22 + $0x170] sm:$0xff] }
 0x205   : > { %v6186_v51 = vadd.f32 %v6180_v23, %v2945_v63  ;;  %v1791_v44 = vadd.f32 %v1790_v38, %v6049_v33  ;;  %v1792_v47 = vpop.f32.mrb[27].mxu0  ;;  %4618 = vmatprep.mubr.msk.f32.mxu0 %vm662_vm2, %v5233_v29 }
 0x206   : > { %v1795_v55 = vpop.f32.mrb[28].mxu0  ;;  %v2949_v47 = vsel %vm2943_vm3, %v8519_v49, 0.0  ;;  %v8527_v49 = vmax.f32 %v6099_v54, 0.0 }
 0x207   : > { %v6198_v56 = vadd.f32 %v5958_v10, %v1791_v44  ;;  %v6212_v10 = vsel %vm2943_vm3, %v8518_v57, 0.0  ;;  %v1797_v29 = vpop.f32.mrb[29].mxu0  ;;  %v5235_v57 = vld [vmem:[%s5506_s22 + $0x180] sm:$0xff] }
 0x208   : > { %v6218_v38 = vadd.f32 %v6212_v10, %v2947_v8  ;;  %4619 = vmatmul.mubr.msk.f32.gmra.mrb[132].mxu0 %vm662_vm2, %v5234_v41  ;;  %v2951_v16 = vsel %vm2943_vm3, %v8527_v49, 0.0 }
 0x209   : > { %v6154_v7 = vpop.f32.mrb[112].mxu1  ;;  %8646 = vst [vmem:[#allocation18_spill] sm:$0xff] %v6198_v56  ;;  %v8520_v28 = vmax.f32 %v6198_v56, 0.0  ;;  %4621 = vmatprep.mubr.msk.f32.mxu0 %vm662_vm2, %v5235_v57  ;;  %v2948_v57 = vadd.f32 %v2947_v8, %v2946_v42 }
 0x20a   : > { %v2174_v61 = vpop.f32.mrb[113].mxu1 }
 0x20b   : > { %v6169_v40 = vpop.f32.mrb[114].mxu1  ;;  %v6226_v12 = vsel %vm2943_vm3, %v8520_v28, 0.0  ;;  %v2950_v49 = vadd.f32 %v2949_v47, %v2948_v57 }
 0x20c   : > { %v2177_v45 = vpop.f32.mrb[115].mxu1  ;;  %v6232_v62 = vadd.f32 %v6226_v12, %v2949_v47  ;;  %4622 = vmatmul.mubr.msk.f32.gmra.mrb[134].mxu0 %vm662_vm2, %v5236_v34 }
 0x211   : > { %v6200_v61 = vpop.f32.mrb[116].mxu1 }
 0x212   : > { %v2182_v45 = vpop.f32.mrb[117].mxu1 }
 0x213   : > { %v6215_v39 = vpop.f32.mrb[118].mxu1  ;;  %v1796_v45 = vadd.f32 %v1795_v55, %v6049_v33 }
 0x214   : > { %v2185_v44 = vpop.f32.mrb[119].mxu1 }
 0x215   : > { %v1798_v44 = vpop.f32.mrb[30].mxu0  ;;  %v6238_v28 = vadd.f32 %v5961_v18, %v1796_v45  ;;  %v5237_v45 = vld [vmem:[%s5506_s22 + $0x190] sm:$0xff] }
 0x216   : > { %v1799_v55 = vadd.f32 %v1798_v44, %v6049_v33  ;;  %v1800_v29 = vpop.f32.mrb[31].mxu0  ;;  %4624 = vmatprep.mubr.msk.f32.mxu0 %vm662_vm2, %v5237_v45 }
 0x217   : > { %8647 = vst [vmem:[#allocation19_spill] sm:$0xff] %v6238_v28  ;;  %v8526_v41 = vmax.f32 %v6238_v28, 0.0  ;;  %v1803_v42 = vpop.f32.mrb[32].mxu0 }
 0x218   : > { %v6244_v32 = vadd.f32 %v5965_v21, %v1799_v55  ;;  %v2953_v55 = vsel %vm2943_vm3, %v8530_v27, 0.0  ;;  %v1805_v45 = vpop.f32.mrb[33].mxu0  ;;  %v8536_v27 = vmax.f32 %v6119_v14, 0.0  ;;  %v5245_v14 = vld [vmem:[%s5506_s22 + $0x1d0] sm:$0xff] }
 0x219   : > { %v6246_v56 = vpop.f32.mrb[120].mxu1  ;;  %v6258_v21 = vsel %vm2943_vm3, %v8526_v41, 0.0  ;;  %v5238_v41 = vld [vmem:[%s5506_s22 + $0x198] sm:$0xff] }
 0x21a   : > { %8648 = vst [vmem:[#allocation20_spill] sm:$0xff] %v6244_v32  ;;  %v2190_v18 = vpop.f32.mrb[121].mxu1  ;;  %v8531_v63 = vmax.f32 %v6244_v32, 0.0  ;;  %v6264_v34 = vadd.f32 %v6258_v21, %v2951_v16  ;;  %4625 = vmatmul.mubr.msk.f32.gmra.mrb[136].mxu0 %vm662_vm2, %v5238_v41  ;;  %v2952_v32 = vadd.f32 %v2951_v16, %v2950_v49  ;;  %v8539_v41 = vmax.f32 %v6123_v31, 0.0  ;;  %v5243_v31 = vld [vmem:[%s5506_s22 + $0x1c0] sm:$0xff] }
 0x21b   : > { %v6261_v44 = vpop.f32.mrb[122].mxu1  ;;  %v1804_v18 = vadd.f32 %v1803_v42, %v6049_v33  ;;  %4627 = vmatprep.mubr.msk.f32.mxu0 %vm662_vm2, %v5239_v4  ;;  %v2955_v49 = vsel %vm2943_vm3, %v8536_v27, 0.0 }
 0x21c   : > { %v2193_v8 = vpop.f32.mrb[123].mxu1  ;;  %v6272_v29 = vsel %vm2943_vm3, %v8531_v63, 0.0 }
 0x21d   : > { %v6278_v28 = vadd.f32 %v6272_v29, %v2953_v55  ;;  %v1806_v8 = vpop.f32.mrb[34].mxu0  ;;  %v6284_v63 = vadd.f32 %v5967_v11, %v1804_v18  ;;  %v5241_v11 = vld [vmem:[%s5506_s22 + $0x1b0] sm:$0xff] }
 0x21e   : > { %v1807_v42 = vadd.f32 %v1806_v8, %v6049_v33  ;;  %v1808_v45 = vpop.f32.mrb[35].mxu0  ;;  %4628 = vmatmul.mubr.msk.f32.gmra.mrb[138].mxu0 %vm662_vm2, %v5240_v53  ;;  %v2954_v53 = vadd.f32 %v2953_v55, %v2952_v32 }
 0x21f   : > { %8649 = vst [vmem:[#allocation21_spill] sm:$0xff] %v6284_v63  ;;  %v8535_v47 = vmax.f32 %v6284_v63, 0.0  ;;  %4630 = vmatprep.mubr.msk.f32.mxu0 %vm662_vm2, %v5241_v11  ;;  %v5242_v63 = vld [vmem:[%s5506_s22 + $0x1b8] sm:$0xff] }
 0x220   : > { %v6290_v57 = vadd.f32 %v5973_v15, %v1807_v42  ;;  %v1811_v42 = vpop.f32.mrb[36].mxu0  ;;  %v2956_v32 = vadd.f32 %v2955_v49, %v2954_v53 }
 0x221   : > { %v6292_v54 = vpop.f32.mrb[124].mxu1  ;;  %v6304_v16 = vsel %vm2943_vm3, %v8535_v47, 0.0  ;;  %v1812_v47 = vadd.f32 %v1811_v42, %v6049_v33  ;;  %v1813_v27 = vpop.f32.mrb[37].mxu0 }
 0x222   : > { %8650 = vst [vmem:[#allocation22_spill] sm:$0xff] %v6290_v57  ;;  %v2198_v4 = vpop.f32.mrb[125].mxu1  ;;  %v8540_v15 = vmax.f32 %v6290_v57, 0.0  ;;  %v6310_v8 = vadd.f32 %v6304_v16, %v2955_v49  ;;  %4631 = vmatmul.mubr.msk.f32.gmra.mrb[140].mxu0 %vm662_vm2, %v5242_v63  ;;  %v5244_v49 = vld [vmem:[%s5506_s22 + $0x1c8] sm:$0xff] }
 0x223   : > { %v6307_v18 = vpop.f32.mrb[126].mxu1  ;;  %v2957_v4 = vsel %vm2943_vm3, %v8539_v41, 0.0  ;;  %4633 = vmatprep.mubr.msk.f32.mxu0 %vm662_vm2, %v5243_v31  ;;  %v6329_v41 = vadd.f32 %v5979_v24, %v1812_v47 }
 0x224   : > { %v2201_v45 = vpop.f32.mrb[127].mxu1  ;;  %v6318_v11 = vsel %vm2943_vm3, %v8540_v15, 0.0  ;;  %v6340_v53 = vadd.f32 %v2957_v4, %v2956_v32 }
 0x225   : > { %v6324_v55 = vadd.f32 %v6318_v11, %v2957_v4  ;;  %v1814_v45 = vpop.f32.mrb[38].mxu0  ;;  %8651 = vst [vmem:[#allocation23_spill] sm:$0xff] %v6329_v41  ;;  %v8543_v27 = vmax.f32 %v6329_v41, 0.0 }
 0x226   : > { %v1815_v15 = vadd.f32 %v1814_v45, %v6049_v33  ;;  %v1816_v57 = vpop.f32.mrb[39].mxu0  ;;  %4634 = vmatmul.mubr.msk.f32.gmra.mrb[142].mxu0 %vm662_vm2, %v5244_v49 }
 0x227   : > { %4636 = vmatprep.mubr.msk.f32.mxu0 %vm662_vm2, %v5245_v14  ;;  %v6347_v24 = vsel %vm2943_vm3, %v8543_v27, 0.0  ;;  %v3186_v57 = vadd.f32 %v6166_v2, %v6340_v53  ;;  %v1819_v4 = vpop.f32.mrb[40].mxu0 }
 0x228   : > { %v6334_v42 = vadd.f32 %v5985_v30, %v1815_v15  ;;  %v6356_v15 = vadd.f32 %v6172_v19, %v6347_v24  ;;  %v1820_v45 = vadd.f32 %v1819_v4, %v6049_v33  ;;  %v1821_v49 = vpop.f32.mrb[41].mxu0 }
 0x229   : > { %v6336_v63 = vpop.f32.mrb[0].mxu1  ;;  %v1822_v19 = vpop.f32.mrb[42].mxu0  ;;  %v3187_v4 = vadd.f32 %v3186_v57, %v6180_v23 }
 0x22a   : > { %8652 = vst [vmem:[#allocation24_spill] sm:$0xff] %v6334_v42  ;;  %v2206_v31 = vpop.f32.mrb[1].mxu1  ;;  %v8545_v30 = vmax.f32 %v6334_v42, 0.0  ;;  %v1824_v42 = vpop.f32.mrb[43].mxu0 }
 0x22b   : > { %v6350_v47 = vpop.f32.mrb[2].mxu1  ;;  %v5246_v31 = vld [vmem:[%s5506_s22 + $0x1d8] sm:$0xff] }
 0x22c   : > { %v2209_v32 = vpop.f32.mrb[3].mxu1  ;;  %v6361_v14 = vsel %vm2943_vm3, %v8545_v30, 0.0  ;;  %4637 = vmatmul.mubr.msk.f32.gmra.mrb[144].mxu0 %vm662_vm2, %v5246_v31  ;;  %v1823_v30 = vadd.f32 %v1822_v19, %v6049_v33  ;;  %v1827_v19 = vpop.f32.mrb[44].mxu0 }
 0x22d   : > { %v6368_v27 = vadd.f32 %v6186_v51, %v6361_v14  ;;  %4639 = vmatprep.mubr.msk.f32.mxu0 %vm662_vm2, %v5247_v59  ;;  %v6373_v32 = vadd.f32 %v5997_v43, %v1820_v45  ;;  %v5248_v51 = vld [vmem:[%s5506_s22 + $0x1e8] sm:$0xff]  ;;  %v3188_v59 = vadd.f32 %v3187_v4, %v6212_v10  ;;  %v5249_v45 = vld [vmem:[%s5506_s22 + $0x1f0] sm:$0xff] }
 0x22e   : > { %v6379_v31 = vadd.f32 %v6003_v50, %v1823_v30 }
 0x22f   : > { %8653 = vst [vmem:[#allocation25_spill] sm:$0xff] %v6373_v32  ;;  %v8548_v49 = vmax.f32 %v6373_v32, 0.0  ;;  %v3189_v32 = vadd.f32 %v3188_v59, %v6226_v12 }
 0x230   : > { %8654 = vst [vmem:[#allocation26_spill] sm:$0xff] %v6379_v31  ;;  %4640 = vmatmul.mubr.msk.f32.gmra.mrb[146].mxu0 %vm662_vm2, %v5248_v51  ;;  %v8552_v50 = vmax.f32 %v6379_v31, 0.0 }
 0x231   : > { %v6381_v46 = vpop.f32.mrb[4].mxu1  ;;  %4642 = vmatprep.mubr.msk.f32.mxu0 %vm662_vm2, %v5249_v45  ;;  %v6391_v42 = vsel %vm2943_vm3, %v8548_v49, 0.0  ;;  %v1829_v45 = vpop.f32.mrb[45].mxu0  ;;  %v5250_v49 = vld [vmem:[%s5506_s22 + $0x1f8] sm:$0xff]  ;;  %v3190_v41 = vadd.f32 %v3189_v32, %v6258_v21  ;;  %s392_s22 = sand.u32 1, %s5305_s18  }
 0x232   : > { %v2214_v43 = vpop.f32.mrb[5].mxu1  ;;  %v6398_v57 = vadd.f32 %v6218_v38, %v6391_v42  ;;  %v6403_v4 = vsel %vm2943_vm3, %v8552_v50, 0.0  ;;  %v1830_v38 = vpop.f32.mrb[46].mxu0  ;;  %s4186_s25 = sshll.u32 %s392_s22, 9 }
 0x233   : > { %v6394_v30 = vpop.f32.mrb[6].mxu1  ;;  %v1828_v43 = vadd.f32 %v1827_v19, %v6049_v33  ;;  %v6411_v13 = vadd.f32 %v6232_v62, %v6403_v4  ;;  %v1831_v31 = vadd.f32 %v1830_v38, %v6049_v33  ;;  %v1832_v50 = vpop.f32.mrb[47].mxu0  ;;  %s8218_s12 = scalar_lea.vmem [#allocation2], %s4186_s25  ;;  %s5255_s25 = sshll.u32 %s5321_s14, 4  ;;  %s5256_s25 = int_to_ptr.vmem [resolvable:$false] %s5255_s25 }
 0x234   : > { %v2217_v51 = vpop.f32.mrb[7].mxu1  ;;  %4643 = vmatmul.mubr.msk.f32.gmra.mrb[148].mxu0 %vm662_vm2, %v5250_v49  ;;  %v3191_v50 = vadd.f32 %v3190_v41, %v6272_v29  ;;  %s4108_s15 = sshll.u32 %s8218_s12, 4  ;;  %s8427_s15 = int_to_ptr.vmem [resolvable:$true] %s4108_s15 }
 0x235   : > { %8655 = vst [vmem:[#allocation27_spill] sm:$0xff] %v6411_v13  ;;  %v6414_v51 = vadd.f32 %v6009_v58, %v1828_v43  ;;  %v6420_v45 = vadd.f32 %v6015_v0, %v1831_v31  ;;  %v1835_v0 = vpop.f32.mrb[48].mxu0  ;;  %s5251_s30 = scalar_lea.vmem %s8427_s15, 8192  ;;  %p5258_p0 = scmp.lt.s32.totalorder %s8427_s15, %s5256_s25 }
 0x236   : > { %p5252_p11 = scmp.ne.s32.totalorder %s8427_s15, %s5251_s30 }
 0x237   : > { %8656 = vst [vmem:[#allocation28_spill] sm:$0xff] %v6414_v51  ;;  %v8554_v19 = vmax.f32 %v6414_v51, 0.0  ;;  %8657 = vst [vmem:[#allocation29_spill] sm:$0xff] %v6420_v45  ;;  %v8559_v58 = vmax.f32 %v6420_v45, 0.0  ;;  %v3192_v51 = vadd.f32 %v3191_v50, %v6304_v16 }
 0x238   : > { %p5253_p12 = pnand %p5252_p11, %p5422_p5 }
 0x239   : > { %v6422_v49 = vpop.f32.mrb[8].mxu1  ;;  %v6427_v62 = vsel %vm2943_vm3, %v8554_v19, 0.0  ;;  %v6440_v38 = vsel %vm2943_vm3, %v8559_v58, 0.0  ;;  %v1837_v19 = vpop.f32.mrb[49].mxu0 }
 0x23a   : > { %v2222_v59 = vpop.f32.mrb[9].mxu1  ;;  %v6435_v32 = vadd.f32 %v6264_v34, %v6427_v62  ;;  %v6446_v48 = vadd.f32 %v6278_v28, %v6440_v38  ;;  %v1838_v41 = vpop.f32.mrb[50].mxu0  ;;  %v3193_v19 = vadd.f32 %v3192_v51, %v6318_v11  ;;  %p5254_p13 = pneg %p5253_p12 }
 0x23b   : > { %v6430_v43 = vpop.f32.mrb[10].mxu1  ;;  %v1836_v59 = vadd.f32 %v1835_v0, %v6049_v33  ;;  %v1840_v52 = vpop.f32.mrb[51].mxu0 }
 0x23c   : > { %8658 = vst [vmem:[#allocation30_spill] sm:$0xff] %v6435_v32  ;;  %v2225_v31 = vpop.f32.mrb[11].mxu1  ;;  %8659 = vst [vmem:[#allocation31_spill] sm:$0xff] %v6446_v48  ;;  %v3194_v52 = vadd.f32 %v3193_v19, %v6347_v24 }
 0x23d   : > { %v6449_v34 = vadd.f32 %v6021_v9, %v1836_v59  ;;  %v1839_v31 = vadd.f32 %v1838_v41, %v6049_v33  ;;  %v1843_v41 = vpop.f32.mrb[52].mxu0 }
 0x23f   : > { %8660 = vst [vmem:[#allocation32_spill] sm:$0xff] %v6449_v34  ;;  %v8560_v45 = vmax.f32 %v6449_v34, 0.0  ;;  %v6454_v58 = vadd.f32 %v6029_v22, %v1839_v31 }
 0x241   : > { %8661 = vst [vmem:[#allocation33_spill] sm:$0xff] %v6454_v58  ;;  %v6456_v0 = vpop.f32.mrb[12].mxu1  ;;  %v6462_v28 = vsel %vm2943_vm3, %v8560_v45, 0.0  ;;  %v8566_v9 = vmax.f32 %v6454_v58, 0.0  ;;  %v1845_v45 = vpop.f32.mrb[53].mxu0 }
 0x242   : > { %v2230_v50 = vpop.f32.mrb[13].mxu1  ;;  %v6470_v22 = vadd.f32 %v6310_v8, %v6462_v28  ;;  %v1846_v20 = vpop.f32.mrb[54].mxu0 }
 0x243   : > { %v6465_v59 = vpop.f32.mrb[14].mxu1  ;;  %v6475_v51 = vsel %vm2943_vm3, %v8566_v9, 0.0  ;;  %v1844_v50 = vadd.f32 %v1843_v41, %v6049_v33  ;;  %v1847_v8 = vadd.f32 %v1846_v20, %v6049_v33  ;;  %v1848_v1 = vpop.f32.mrb[55].mxu0 }
 0x244   : > { %8662 = vst [vmem:[#allocation34_spill] sm:$0xff] %v6470_v22  ;;  %v2233_v31 = vpop.f32.mrb[15].mxu1  ;;  %v6480_v34 = vadd.f32 %v6324_v55, %v6475_v51  ;;  %v1851_v55 = vpop.f32.mrb[56].mxu0 }
 0x245   : > { %v6483_v19 = vadd.f32 %v6042_v25, %v1844_v50  ;;  %v3195_v31 = vadd.f32 %v3194_v52, %v6361_v14  ;;  %v6488_v58 = vadd.f32 %v6051_v35, %v1847_v8  ;;  %v1852_v25 = vadd.f32 %v1851_v55, %v6049_v33  ;;  %v1853_v50 = vpop.f32.mrb[57].mxu0 }
 0x246   : > { %8663 = vst [vmem:[#allocation35_spill] sm:$0xff] %v6480_v34  ;;  %v1854_v1 = vpop.f32.mrb[58].mxu0 }
 0x247   : > { %8664 = vst [vmem:[#allocation36_spill] sm:$0xff] %v6483_v19  ;;  %8665 = vst [vmem:[#allocation37_spill] sm:$0xff] %v6488_v58  ;;  %v3196_v45 = vadd.f32 %v3195_v31, %v6391_v42  ;;  %v6498_v52 = vadd.f32 %v6065_v60, %v1852_v25  ;;  %v1855_v35 = vadd.f32 %v1854_v1, %v6049_v33  ;;  %v1856_v8 = vpop.f32.mrb[59].mxu0  ;;  %v8567_v60 = vmax.f32 %v6483_v19, 0.0 }
 0x249   : > { %v6490_v9 = vpop.f32.mrb[16].mxu1  ;;  %v3197_v20 = vadd.f32 %v3196_v45, %v6403_v4  ;;  %8666 = vst [vmem:[#allocation38_spill] sm:$0xff] %v6498_v52  ;;  %v6503_v31 = vadd.f32 %v6071_v6, %v1855_v35  ;;  %v1859_v45 = vpop.f32.mrb[60].mxu0 }
 0x24a   : > { %v2238_v41 = vpop.f32.mrb[17].mxu1  ;;  %v1860_v25 = vadd.f32 %v1859_v45, %v6049_v33  ;;  %v1861_v1 = vpop.f32.mrb[61].mxu0  ;;  %v8569_v45 = vmax.f32 %v6488_v58, 0.0 }
 0x24b   : > { %v6493_v22 = vpop.f32.mrb[18].mxu1  ;;  %v3198_v48 = vadd.f32 %v3197_v20, %v6427_v62  ;;  %8667 = vst [vmem:[#allocation39_spill] sm:$0xff] %v6503_v31  ;;  %v2967_v20 = vadd.f32 %v6180_v23, %v6166_v2  ;;  %v1862_v35 = vpop.f32.mrb[62].mxu0 }
 0x24c   : > { %v2241_v34 = vpop.f32.mrb[19].mxu1  ;;  %v6516_v8 = vadd.f32 %v6085_v26, %v1860_v25  ;;  %v1864_v13 = vpop.f32.mrb[63].mxu0  ;;  %v8570_v25 = vmax.f32 %v6498_v52, 0.0 }
 0x24d   : > { %v3199_v55 = vadd.f32 %v3198_v48, %v6440_v38  ;;  %v2969_v48 = vadd.f32 %v6212_v10, %v2967_v20  ;;  %v1867_v20 = vpop.f32.mrb[64].mxu0 }
 0x24e   : > { %8668 = vst [vmem:[#allocation40_spill] sm:$0xff] %v6516_v8  ;;  %v6547_v19 = vsel %vm2943_vm3, %v8570_v25, 0.0 }
 0x24f   : > { %v3200_v6 = vadd.f32 %v3199_v55, %v6462_v28  ;;  %v2971_v10 = vadd.f32 %v6226_v12, %v2969_v48  ;;  %v8571_v12 = vmax.f32 %v6503_v31, 0.0 }
 0x251   : > { %v6505_v41 = vpop.f32.mrb[20].mxu1  ;;  %v3201_v26 = vadd.f32 %v3200_v6, %v6475_v51  ;;  %v2973_v6 = vadd.f32 %v6258_v21, %v2971_v10  ;;  %v6561_v10 = vadd.f32 %v6465_v59, %v6049_v33  ;;  %v6580_v59 = vadd.f32 %v6490_v9, %v6049_v33 }
 0x252   : > { %v2246_v34 = vpop.f32.mrb[21].mxu1 }
 0x253   : > { %v6507_v32 = vpop.f32.mrb[22].mxu1  ;;  %v1863_v34 = vadd.f32 %v1862_v35, %v6049_v33  ;;  %8672 = vst [vmem:[#allocation44_spill] sm:$0xff] %v6561_v10  ;;  %v2975_v25 = vadd.f32 %v6272_v29, %v2973_v6  ;;  %8674 = vst [vmem:[#allocation46_spill] sm:$0xff] %v6580_v59  ;;  %v8576_v9 = vmax.f32 %v6561_v10, 0.0 }
 0x254   : > { %v2249_v50 = vpop.f32.mrb[23].mxu1 }
 0x255   : > { %v6523_v50 = vsel %vm2943_vm3, %v8567_v60, 0.0  ;;  %v6527_v2 = vadd.f32 %v6091_v37, %v1863_v34  ;;  %v6540_v37 = vsel %vm2943_vm3, %v8569_v45, 0.0  ;;  %v1868_v34 = vadd.f32 %v1867_v20, %v6049_v33  ;;  %v1869_v60 = vpop.f32.mrb[65].mxu0 }
 0x256   : > { %v3202_v1 = vadd.f32 %v3201_v26, %v6523_v50  ;;  %v8573_v60 = vmax.f32 %v6516_v8, 0.0  ;;  %v2977_v6 = vadd.f32 %v6304_v16, %v2975_v25  ;;  %v6648_v8 = vadd.f32 %v6505_v41, %v6049_v33 }
 0x257   : > { %8669 = vst [vmem:[#allocation41_spill] sm:$0xff] %v6527_v2  ;;  %v6551_v48 = vadd.f32 %v6105_v5, %v1868_v34  ;;  %v2988_v5 = vadd.f32 %v6361_v14, %v6347_v24 }
 0x258   : > { %v3203_v45 = vadd.f32 %v3202_v1, %v6540_v37  ;;  %v6571_v1 = vadd.f32 %v6456_v0, %v6049_v33  ;;  %v6587_v0 = vsel %vm2943_vm3, %v8573_v60, 0.0  ;;  %v8579_v60 = vmax.f32 %v6580_v59, 0.0  ;;  %8679 = vst [vmem:[#allocation50_spill] sm:$0xff] %v6648_v8 }
 0x259   : > { %v6529_v23 = vpop.f32.mrb[24].mxu1  ;;  %8670 = vst [vmem:[#allocation42_spill] sm:$0xff] %v6551_v48  ;;  %v2990_v24 = vadd.f32 %v6391_v42, %v2988_v5  ;;  %v8575_v42 = vmax.f32 %v6551_v48, 0.0  ;;  %v2979_v16 = vadd.f32 %v6318_v11, %v2977_v6 }
 0x25a   : > { %v2254_v55 = vpop.f32.mrb[25].mxu1  ;;  %v3204_v34 = vadd.f32 %v3203_v45, %v6547_v19  ;;  %8673 = vst [vmem:[#allocation45_spill] sm:$0xff] %v6571_v1 }
 0x25b   : > { %v6533_v13 = vpop.f32.mrb[26].mxu1  ;;  %v1870_v55 = vpop.f32.mrb[66].mxu0  ;;  %v6625_v11 = vsel %vm2943_vm3, %v8575_v42, 0.0 }
 0x25c   : > { %v2257_v35 = vpop.f32.mrb[27].mxu1  ;;  %v1871_v26 = vadd.f32 %v1870_v55, %v6049_v33 }
 0x25d   : > { %v1872_v35 = vpop.f32.mrb[67].mxu0 }
 0x25e   : > { %v6557_v21 = vadd.f32 %v6111_v17, %v1871_v26  ;;  %v6576_v17 = vsel %vm2943_vm3, %v8571_v12, 0.0  ;;  %v1875_v14 = vpop.f32.mrb[68].mxu0  ;;  %v8574_v26 = vmax.f32 %v6527_v2, 0.0 }
 0x25f   : > { %v1876_v35 = vadd.f32 %v1875_v14, %v6049_v33  ;;  %v3205_v12 = vadd.f32 %v3204_v34, %v6576_v17  ;;  %v2992_v14 = vadd.f32 %v6403_v4, %v2990_v24  ;;  %v6604_v34 = vadd.f32 %v6493_v22, %v6049_v33 }
 0x260   : > { %8671 = vst [vmem:[#allocation43_spill] sm:$0xff] %v6557_v21  ;;  %v6618_v4 = vsel %vm2943_vm3, %v8576_v9, 0.0  ;;  %v2959_v24 = vrot.slane %v6340_v53, 4 }
 0x261   : > { %v6563_v20 = vpop.f32.mrb[28].mxu1  ;;  %v6596_v25 = vadd.f32 %v6125_v3, %v1876_v35  ;;  %8676 = vst [vmem:[#allocation48_spill] sm:$0xff] %v6604_v34  ;;  %v6610_v3 = vsel %vm2943_vm3, %v8574_v26, 0.0  ;;  %v2994_v22 = vadd.f32 %v6427_v62, %v2992_v14  ;;  %v3009_v62 = vadd.f32 %v6540_v37, %v6523_v50 }
 0x262   : > { %v2262_v55 = vpop.f32.mrb[29].mxu1 }
 0x263   : > { %v2263_v29 = vpop.f32.mrb[30].mxu1  ;;  %v1877_v55 = vpop.f32.mrb[69].mxu0  ;;  %8675 = vst [vmem:[#allocation47_spill] sm:$0xff] %v6596_v25  ;;  %v2996_v10 = vadd.f32 %v6440_v38, %v2994_v22 }
 0x264   : > { %v2265_v45 = vpop.f32.mrb[31].mxu1  ;;  %v1878_v31 = vpop.f32.mrb[70].mxu0  ;;  %v3206_v55 = vadd.f32 %v3205_v12, %v6587_v0  ;;  %v6664_v38 = vadd.f32 %v2263_v29, %v6049_v33 }
 0x265   : > { %v1879_v5 = vadd.f32 %v1878_v31, %v6049_v33  ;;  %v1880_v45 = vpop.f32.mrb[71].mxu0 }
 0x266   : > { %v6636_v45 = vsel %vm2943_vm3, %v8579_v60, 0.0  ;;  %v3207_v14 = vadd.f32 %v3206_v55, %v6610_v3  ;;  %v3011_v55 = vadd.f32 %v6547_v19, %v3009_v62  ;;  %8682 = vst [vmem:[#allocation52_spill] sm:$0xff] %v6664_v38  ;;  %v8683_v62 = vmax.f32 %v6604_v34, 0.0 }
 0x267   : > { %v6613_v31 = vadd.f32 %v6131_v36, %v1879_v5  ;;  %v8678_v36 = vmax.f32 %v6571_v1, 0.0 }
 0x268   : > { %v3208_v58 = vadd.f32 %v3207_v14, %v6625_v11  ;;  %v6674_v14 = vadd.f32 %v6563_v20, %v6049_v33  ;;  %v6693_v20 = vadd.f32 %v2959_v24, %v6340_v53  ;;  %v8695_v24 = vmax.f32 %v6664_v38, 0.0 }
 0x269   : > { %8677 = vst [vmem:[#allocation49_spill] sm:$0xff] %v6613_v31  ;;  %v2268_v12 = vpop.f32.mrb[32].mxu1  ;;  %v6631_v5 = vsel %vm2943_vm3, %v8678_v36, 0.0  ;;  %v2980_v36 = vrot.slane %v2979_v16, 4  ;;  %v8689_v53 = vmax.f32 %v6613_v31, 0.0 }
 0x26a   : > { %v2270_v35 = vpop.f32.mrb[33].mxu1  ;;  %v3072_v42 = vadd.f32 %v6618_v4, %v6631_v5  ;;  %8684 = vst [vmem:[#allocation53_spill] sm:$0xff] %v6674_v14 }
 0x26b   : > { %v2271_v26 = vpop.f32.mrb[34].mxu1  ;;  %v1883_v35 = vpop.f32.mrb[72].mxu0 }
 0x26c   : > { %v2273_v6 = vpop.f32.mrb[35].mxu1  ;;  %v1884_v2 = vadd.f32 %v1883_v35, %v6049_v33  ;;  %v1885_v60 = vpop.f32.mrb[73].mxu0  ;;  %v3074_v9 = vadd.f32 %v6636_v45, %v3072_v42  ;;  %v6670_v42 = vsel %vm2943_vm3, %v8683_v62, 0.0 }
 0x26d   : > { %v1886_v59 = vpop.f32.mrb[74].mxu0  ;;  %v8680_v6 = vmax.f32 %v6557_v21, 0.0 }
 0x26e   : > { %v6660_v60 = vadd.f32 %v6154_v7, %v1884_v2  ;;  %v1887_v41 = vadd.f32 %v1886_v59, %v6049_v33  ;;  %v1888_v35 = vpop.f32.mrb[75].mxu0  ;;  %v6677_v7 = vadd.f32 %v2268_v12, %v6049_v33  ;;  %v8686_v2 = vmax.f32 %v6596_v25, 0.0 }
 0x26f   : > { %v6657_v48 = vsel %vm2943_vm3, %v8680_v6, 0.0  ;;  %v6690_v35 = vadd.f32 %v6507_v32, %v6049_v33  ;;  %v6695_v12 = vadd.f32 %v2980_v36, %v2979_v16  ;;  %v3076_v6 = vadd.f32 %v6670_v42, %v3074_v9 }
 0x270   : > { %8681 = vst [vmem:[#allocation51_spill] sm:$0xff] %v6660_v60  ;;  %8685 = vst [vmem:[#allocation54_spill] sm:$0xff] %v6677_v7  ;;  %v6682_v59 = vsel %vm2943_vm3, %v8686_v2, 0.0  ;;  %v6685_v29 = vadd.f32 %v6169_v40, %v1887_v41  ;;  %v3209_v22 = vadd.f32 %v3208_v58, %v6657_v48  ;;  %v8587_v2 = vmax.f32 %v6660_v60, 0.0  ;;  %v1891_v58 = vpop.f32.mrb[76].mxu0 }
 0x271   : > { %8688 = vst [vmem:[#allocation56_spill] sm:$0xff] %v6690_v35  ;;  %v2276_v62 = vpop.f32.mrb[36].mxu1  ;;  %v2998_v40 = vadd.f32 %v6462_v28, %v2996_v10  ;;  %v3013_v41 = vadd.f32 %v6576_v17, %v3011_v55  ;;  %v6707_v16 = vsel %vm2943_vm3, %v8689_v53, 0.0  ;;  %v1892_v10 = vadd.f32 %v1891_v58, %v6049_v33  ;;  %v1893_v36 = vpop.f32.mrb[77].mxu0 }
 0x272   : > { %8687 = vst [vmem:[#allocation55_spill] sm:$0xff] %v6685_v29  ;;  %v2278_v21 = vpop.f32.mrb[37].mxu1  ;;  %v3210_v52 = vadd.f32 %v3209_v22, %v6682_v59  ;;  %v8690_v9 = vmax.f32 %v6648_v8, 0.0  ;;  %v6719_v32 = vadd.f32 %v2271_v26, %v6049_v33  ;;  %v6724_v53 = vsel %vm2943_vm3, %v8587_v2, 0.0 }
 0x273   : > { %v2279_v34 = vpop.f32.mrb[38].mxu1  ;;  %v1894_v21 = vpop.f32.mrb[78].mxu0  ;;  %v6729_v58 = vadd.f32 %v6529_v23, %v6049_v33  ;;  %v6732_v36 = vadd.f32 %v2276_v62, %v6049_v33  ;;  %v6737_v26 = vadd.f32 %v6200_v61, %v1892_v10  ;;  %v3015_v23 = vadd.f32 %v6587_v0, %v3013_v41 }
 0x274   : > { %v2281_v28 = vpop.f32.mrb[39].mxu1  ;;  %v6715_v55 = vsel %vm2943_vm3, %v8690_v9, 0.0  ;;  %8691 = vst [vmem:[#allocation57_spill] sm:$0xff] %v6719_v32  ;;  %v3030_v9 = vadd.f32 %v6707_v16, %v6682_v59  ;;  %v1895_v22 = vadd.f32 %v1894_v21, %v6049_v33  ;;  %v1896_v2 = vpop.f32.mrb[79].mxu0  ;;  %v3211_v8 = vadd.f32 %v3210_v52, %v6707_v16 }
 0x275   : > { %8692 = vst [vmem:[#allocation58_spill] sm:$0xff] %v6729_v58  ;;  %8693 = vst [vmem:[#allocation59_spill] sm:$0xff] %v6732_v36  ;;  %v6743_v28 = vsel %vm2943_vm3, %v8695_v24, 0.0  ;;  %v8696_v62 = vmax.f32 %v6674_v14, 0.0  ;;  %v8697_v61 = vmax.f32 %v6677_v7, 0.0  ;;  %v6773_v21 = vadd.f32 %v6475_v51, %v2998_v40 }
 0x276   : > { %8694 = vst [vmem:[#allocation60_spill] sm:$0xff] %v6737_v26  ;;  %v3032_v2 = vadd.f32 %v6724_v53, %v3030_v9  ;;  %v6760_v24 = vadd.f32 %v6215_v39, %v1895_v22  ;;  %v3212_v38 = vadd.f32 %v3211_v8, %v6724_v53  ;;  %v6777_v39 = vadd.f32 %v6336_v63, %v6049_v33  ;;  %v1899_v9 = vpop.f32.mrb[80].mxu0 }
 0x277   : > { %v6750_v31 = vsel %vm2943_vm3, %v8696_v62, 0.0  ;;  %v6755_v10 = vsel %vm2943_vm3, %v8697_v61, 0.0  ;;  %v8699_v62 = vmax.f32 %v6685_v29, 0.0  ;;  %v3078_v8 = vadd.f32 %v6715_v55, %v3076_v6  ;;  %v1901_v60 = vpop.f32.mrb[81].mxu0 }
 0x278   : > { %8698 = vst [vmem:[#allocation61_spill] sm:$0xff] %v6760_v24  ;;  %v3093_v61 = vadd.f32 %v6743_v28, %v6750_v31  ;;  %8700 = vst [vmem:[#allocation62_spill] sm:$0xff] %v6777_v39  ;;  %v6781_v22 = vadd.f32 %v2279_v34, %v6049_v33  ;;  %v8702_v41 = vmax.f32 %v6737_v26, 0.0  ;;  %v1900_v34 = vadd.f32 %v1899_v9, %v6049_v33 }
 0x279   : > { %v2284_v52 = vpop.f32.mrb[40].mxu1  ;;  %v6767_v14 = vsel %vm2943_vm3, %v8699_v62, 0.0  ;;  %v8704_v1 = vmax.f32 %v6690_v35, 0.0  ;;  %v8707_v9 = vmax.f32 %v6732_v36, 0.0 }
 0x27a   : > { %v2286_v7 = vpop.f32.mrb[41].mxu1  ;;  %8701 = vst [vmem:[#allocation63_spill] sm:$0xff] %v6781_v22  ;;  %v6786_v29 = vsel %vm2943_vm3, %v8702_v41, 0.0  ;;  %v3095_v51 = vadd.f32 %v6755_v10, %v3093_v61  ;;  %v6791_v40 = vadd.f32 %v2284_v52, %v6049_v33  ;;  %v3034_v6 = vadd.f32 %v6767_v14, %v3032_v2 }
 0x27b   : > { %v2287_v62 = vpop.f32.mrb[42].mxu1  ;;  %v6798_v26 = vsel %vm2943_vm3, %v8704_v1, 0.0  ;;  %v8705_v41 = vmax.f32 %v6719_v32, 0.0  ;;  %v3017_v61 = vadd.f32 %v6610_v3, %v3015_v23  ;;  %v3213_v52 = vadd.f32 %v3212_v38, %v6767_v14  ;;  %v6822_v38 = vld [vmem:[%s8513_s9] sm:$0x3f] }
 0x27c   : > { %8703 = vst [vmem:[#allocation64_spill] sm:$0xff] %v6791_v40  ;;  %v2289_v63 = vpop.f32.mrb[43].mxu1  ;;  %v6811_v60 = vsel %vm2943_vm3, %v8707_v9, 0.0  ;;  %v3036_v1 = vadd.f32 %v6786_v29, %v3034_v6  ;;  %v6815_v35 = vadd.f32 %v6246_v56, %v1900_v34  ;;  %8710 = vst [vmem:[#allocation68_spill] sm:$0xff] %v6822_v38  ;;  %v8711_v9 = vmax.f32 %v6760_v24, 0.0  ;;  %4668 = vmatprep.subr.msk.mxu0 %vm3475_vm4, %v6822_v38 }
 0x27d   : > { %v6803_v7 = vsel %vm2943_vm3, %v8705_v41, 0.0  ;;  %v1902_v63 = vpop.f32.mrb[82].mxu0  ;;  %8708 = vst [vmem:[#allocation66_spill] sm:$0xff] %v6811_v60  ;;  %v3214_v2 = vadd.f32 %v3213_v52, %v6786_v29  ;;  %v2982_v52 = vrot.slane %v6695_v12, 2  ;;  %v3019_v23 = vadd.f32 %v6625_v11, %v3017_v61 }
 0x27e   : > { %8706 = vst [vmem:[#allocation65_spill] sm:$0xff] %v6803_v7  ;;  %8709 = vst [vmem:[#allocation67_spill] sm:$0xff] %v6815_v35  ;;  %v1903_v41 = vadd.f32 %v1902_v63, %v6049_v33  ;;  %v1904_v32 = vpop.f32.mrb[83].mxu0  ;;  %v6828_v36 = vsel %vm2943_vm3, %v8711_v9, 0.0  ;;  %v3097_v56 = vadd.f32 %v6803_v7, %v3095_v51  ;;  %v6837_v63 = vadd.f32 %v2287_v62, %v6049_v33 }
 0x27f   : > { %v8602_v32 = vmax.f32 %v6815_v35, 0.0  ;;  %v6843_v9 = vadd.f32 %v6533_v13, %v6049_v33  ;;  %v8715_v61 = vmax.f32 %v6781_v22, 0.0  ;;  %v3001_v13 = vrot.slane %v6773_v21, 4 }
 0x280   : > { %v6834_v34 = vadd.f32 %v6261_v44, %v1903_v41  ;;  %8713 = vst [vmem:[#allocation70_spill] sm:$0xff] %v6837_v63  ;;  %v3099_v51 = vadd.f32 %v6811_v60, %v3097_v56  ;;  %v3038_v44 = vadd.f32 %v6828_v36, %v3036_v1  ;;  %v3215_v56 = vadd.f32 %v3214_v2, %v6828_v36 }
 0x281   : > { %8714 = vst [vmem:[#allocation71_spill] sm:$0xff] %v6843_v9  ;;  %v6852_v62 = vsel %vm2943_vm3, %v8602_v32, 0.0  ;;  %v6858_v6 = vsel %vm2943_vm3, %v8715_v61, 0.0  ;;  %v3080_v24 = vadd.f32 %v6798_v26, %v3078_v8  ;;  %v8717_v1 = vmax.f32 %v6729_v58, 0.0  ;;  %v1907_v32 = vpop.f32.mrb[84].mxu0 }
 0x282   : > { %8712 = vst [vmem:[#allocation69_spill] sm:$0xff] %v6834_v34  ;;  %8716 = vst [vmem:[#allocation72_spill] sm:$0xff] %v6858_v6  ;;  %v3040_v25 = vadd.f32 %v6852_v62, %v3038_v44  ;;  %v1908_v41 = vadd.f32 %v1907_v32, %v6049_v33  ;;  %v1909_v22 = vpop.f32.mrb[85].mxu0  ;;  %v8718_v61 = vmax.f32 %v6791_v40, 0.0  ;;  %v3216_v8 = vadd.f32 %v3215_v56, %v6852_v62 }
 0x283   : > { %v6866_v35 = vsel %vm2943_vm3, %v8717_v1, 0.0  ;;  %v8720_v58 = vmax.f32 %v6834_v34, 0.0  ;;  %v1910_v44 = vpop.f32.mrb[86].mxu0  ;;  %v3101_v32 = vadd.f32 %v6858_v6, %v3099_v51  ;;  %v2961_v22 = vrot.slane %v6693_v20, 2 }
 0x284   : > { %v6873_v60 = vsel %vm2943_vm3, %v8718_v61, 0.0  ;;  %v3021_v40 = vadd.f32 %v6657_v48, %v3019_v23  ;;  %v6887_v61 = vadd.f32 %v6292_v54, %v1908_v41  ;;  %v1911_v2 = vadd.f32 %v1910_v44, %v6049_v33  ;;  %v1912_v56 = vpop.f32.mrb[87].mxu0 }
 0x285   : > { %8719 = vst [vmem:[#allocation73_spill] sm:$0xff] %v6873_v60  ;;  %v6880_v1 = vsel %vm2943_vm3, %v8720_v58, 0.0  ;;  %v6893_v58 = vadd.f32 %v6350_v47, %v6049_v33  ;;  %v3082_v38 = vadd.f32 %v6866_v35, %v3080_v24  ;;  %v3103_v51 = vadd.f32 %v6873_v60, %v3101_v32 }
 0x286   : > { %8721 = vst [vmem:[#allocation74_spill] sm:$0xff] %v6887_v61  ;;  %v3042_v6 = vadd.f32 %v6880_v1, %v3040_v25  ;;  %v8613_v23 = vmax.f32 %v6887_v61, 0.0  ;;  %v6900_v54 = vadd.f32 %v6307_v18, %v1911_v2  ;;  %v8724_v41 = vmax.f32 %v6837_v63, 0.0 }
 0x287   : > { %8722 = vst [vmem:[#allocation75_spill] sm:$0xff] %v6893_v58  ;;  %v2983_v56 = vadd.f32 %v2982_v52, %v6695_v12  ;;  %v3002_v47 = vadd.f32 %v3001_v13, %v6773_v21  ;;  %v3217_v24 = vadd.f32 %v3216_v8, %v6880_v1  ;;  %v8726_v32 = vmax.f32 %v6843_v9, 0.0 }
 0x288   : > { %8723 = vst [vmem:[#allocation76_spill] sm:$0xff] %v6900_v54  ;;  %v6905_v44 = vsel %vm2943_vm3, %v8724_v41, 0.0  ;;  %v6917_v18 = vadd.f32 %v6381_v46, %v6049_v33  ;;  %v3022_v2 = vrot.slane %v3021_v40, 4  ;;  %v6922_v41 = vsel %vm2943_vm3, %v8613_v23, 0.0 }
 0x289   : > { %8725 = vst [vmem:[#allocation77_spill] sm:$0xff] %v6905_v44  ;;  %v6913_v25 = vsel %vm2943_vm3, %v8726_v32, 0.0  ;;  %v8617_v12 = vmax.f32 %v6900_v54, 0.0  ;;  %v2962_v21 = vadd.f32 %v2961_v22, %v6693_v20  ;;  %v3218_v13 = vadd.f32 %v3217_v24, %v6922_v41  ;;  %v6929_v32 = vpop.f32.mrb[2].mxu0 }
 0x28a   : > { %8727 = vst [vmem:[#allocation78_spill] sm:$0xff] %v6917_v18  ;;  %v3105_v8 = vadd.f32 %v6905_v44, %v3103_v51  ;;  %8728 = vst [vmem:[#allocation79_spill] sm:$0xff] %v6929_v32  ;;  %v6933_v46 = vadd.f32 %v6394_v30, %v6049_v33  ;;  %v3043_v34 = vrot.slane %v3042_v6, 4  ;;  %v3084_v23 = vadd.f32 %v6913_v25, %v3082_v38  ;;  %v6941_v20 = vpop.f32.mrb[3].mxu0 }
 0x28b   : > { %v6939_v63 = vsel %vm2943_vm3, %v8617_v12, 0.0  ;;  %8730 = vst [vmem:[#allocation81_spill] sm:$0xff] %v6941_v20  ;;  %v3003_v22 = vrot.slane %v3002_v47, 2  ;;  %v8731_v24 = vmax.f32 %v6777_v39, 0.0  ;;  %v2984_v9 = vrot.slane %v2983_v56, 1  ;;  %v6963_v44 = vpop.f32.mrb[88].mxu0 }
 0x28c   : > { %8729 = vst [vmem:[#allocation80_spill] sm:$0xff] %v6933_v46  ;;  %v3051_v30 = vadd.f32 %v6939_v63, %v6922_v41  ;;  %v3219_v52 = vadd.f32 %v3218_v13, %v6939_v63  ;;  %v3023_v54 = vadd.f32 %v3022_v2, %v3021_v40  ;;  %v6954_v12 = vadd.f32 %v6422_v49, %v6049_v33  ;;  %v6970_v38 = vpop.f32.mrb[89].mxu0 }
 0x28d   : > { %v6946_v51 = vsel %vm2943_vm3, %v8731_v24, 0.0  ;;  %v8733_v61 = vmax.f32 %v6893_v58, 0.0  ;;  %v3106_v32 = vrot.slane %v3105_v8, 4  ;;  %8734 = vst [vmem:[#allocation83_spill] sm:$0xff] %v6963_v44  ;;  %v6968_v40 = vadd.f32 %v6430_v43, %v6049_v33  ;;  %8736 = vst [vmem:[#allocation85_spill] sm:$0xff] %v6970_v38 }
 0x28e   : > { %8732 = vst [vmem:[#allocation82_spill] sm:$0xff] %v6954_v12  ;;  %v3053_v24 = vadd.f32 %v6946_v51, %v3051_v30  ;;  %v3220_v20 = vadd.f32 %v3219_v52, %v6946_v51  ;;  %v3044_v49 = vadd.f32 %v3043_v34, %v3042_v6  ;;  %v3085_v2 = vrot.slane %v3084_v23, 4 }
 0x28f   : > { %v6959_v39 = vsel %vm2943_vm3, %v8733_v61, 0.0  ;;  %8735 = vst [vmem:[#allocation84_spill] sm:$0xff] %v6968_v40  ;;  %v3004_v58 = vadd.f32 %v3003_v22, %v3002_v47  ;;  %v2963_v60 = vrot.slane %v2962_v21, 1  ;;  %v8737_v52 = vmax.f32 %v6917_v18, 0.0  ;;  %v6982_v47 = vpop.f32.mrb[90].mxu0 }
 0x290   : > { %v3055_v61 = vadd.f32 %v6959_v39, %v3053_v24  ;;  %v3221_v30 = vadd.f32 %v3220_v20, %v6959_v39  ;;  %v3024_v13 = vrot.slane %v3023_v54, 2  ;;  %v2985_v33 = vadd.f32 %v2984_v9, %v2983_v56  ;;  %v6990_v38 = vpop.f32.mrb[91].mxu0 }
 0x291   : > { %v6977_v44 = vsel %vm2943_vm3, %v8737_v52, 0.0  ;;  %v3107_v34 = vadd.f32 %v3106_v32, %v3105_v8  ;;  %v8738_v22 = vmax.f32 %v6933_v46, 0.0  ;;  %v3045_v52 = vrot.slane %v3044_v49, 2  ;;  %8739 = vst [vmem:[#allocation86_spill] sm:$0xff] %v6990_v38 }
 0x292   : > { %v3057_v43 = vadd.f32 %v6977_v44, %v3055_v61  ;;  %v3222_v6 = vadd.f32 %v3221_v30, %v6977_v44  ;;  %v3086_v18 = vadd.f32 %v3085_v2, %v3084_v23  ;;  %v3005_v7 = vrot.slane %v3004_v58, 1  ;;  %v7001_v23 = vpop.f32.mrb[92].mxu0 }
 0x293   : > { %v6987_v20 = vsel %vm2943_vm3, %v8738_v22, 0.0  ;;  %v2964_v61 = vadd.f32 %v2963_v60, %v2962_v21  ;;  %v3025_v8 = vadd.f32 %v3024_v13, %v3023_v54  ;;  %v8740_v32 = vmax.f32 %v6954_v12, 0.0  ;;  %v7008_v21 = vpop.f32.mrb[93].mxu0 }
 0x294   : > { %v3059_v9 = vadd.f32 %v6987_v20, %v3057_v43  ;;  %v3223_v56 = vadd.f32 %v3222_v6, %v6987_v20  ;;  %v3108_v46 = vrot.slane %v3107_v34, 2  ;;  %v3114_v2 = vmul.f32 0.015625, %v2985_v33  ;;  %8742 = vst [vmem:[#allocation87_spill] sm:$0xff] %v7008_v21 }
 0x295   : > { %v6997_v30 = vsel %vm2943_vm3, %v8740_v32, 0.0  ;;  %v8741_v38 = vmax.f32 %v6968_v40, 0.0  ;;  %v3046_v60 = vadd.f32 %v3045_v52, %v3044_v49  ;;  %v3087_v54 = vrot.slane %v3086_v18, 2  ;;  %v7015_v49 = vpop.f32.mrb[94].mxu0 }
 0x296   : > { %v3061_v22 = vadd.f32 %v6997_v30, %v3059_v9  ;;  %v3224_v24 = vadd.f32 %v3223_v56, %v6997_v30  ;;  %v3006_v13 = vadd.f32 %v3005_v7, %v3004_v58  ;;  %v3113_v56 = vmul.f32 0.015625, %v2964_v61  ;;  %8743 = vst [vmem:[#allocation88_spill] sm:$0xff] %v7015_v49 }
 0x297   : > { %v7006_v43 = vsel %vm2943_vm3, %v8741_v38, 0.0  ;;  %v3026_v32 = vrot.slane %v3025_v8, 1  ;;  %v3123_v33 = vadd.f32 %v6356_v15, %v6523_v50  ;;  %v3109_v38 = vadd.f32 %v3108_v46, %v3107_v34  ;;  %v8744_v34 = vld [vmem:[#allocation27_spill] sm:$0xff] }
 0x298   : > { %v3225_v6 = vadd.f32 %v3224_v24, %v7006_v43  ;;  %v3063_v9 = vadd.f32 %v7006_v43, %v3061_v22  ;;  %v3130_v7 = vadd.f32 %v6368_v27, %v6540_v37  ;;  %v3047_v58 = vrot.slane %v3046_v60, 1  ;;  %v7019_v22 = vpop.f32.mrb[95].mxu0 }
 0x299   : > { %v3088_v24 = vadd.f32 %v3087_v54, %v3086_v18  ;;  %v3258_v52 = vsel %vm3257_vm5, %v3114_v2, %v3113_v56  ;;  %v3115_v61 = vmul.f32 0.015625, %v3006_v13  ;;  %v3124_v21 = vadd.f32 %v3123_v33, %v6682_v59 }
 0x29a   : > { %v3226_v40 = vadd.f32 %v3225_v6, %v6631_v5  ;;  %v3064_v12 = vrot.slane %v3063_v9, 4  ;;  %v3137_v46 = vadd.f32 %v6398_v57, %v6547_v19  ;;  %v3144_v6 = vadd.f32 %v8744_v34, %v6576_v17 }
 0x29b   : > { %v3027_v49 = vadd.f32 %v3026_v32, %v3025_v8  ;;  %v3131_v27 = vadd.f32 %v3130_v7, %v6707_v16  ;;  %v3125_v37 = vadd.f32 %v3124_v21, %v6922_v41  ;;  %v3110_v59 = vrot.slane %v3109_v38, 1  ;;  %v8745_v21 = vld [vmem:[#allocation30_spill] sm:$0xff] }
 0x29c   : > { %v3227_v15 = vadd.f32 %v3226_v40, %v6618_v4  ;;  %v3065_v50 = vadd.f32 %v3064_v12, %v3063_v9  ;;  %v7030_v40 = vpop.f32.mrb[96].mxu0  ;;  %v3138_v12 = vadd.f32 %v3137_v46, %v6724_v53  ;;  %v3048_v54 = vadd.f32 %v3047_v58, %v3046_v60  ;;  %v8746_v9 = vld [vmem:[#allocation31_spill] sm:$0xff] }
 0x29d   : > { %v3089_v57 = vrot.slane %v3088_v24, 1  ;;  %v3132_v19 = vadd.f32 %v3131_v27, %v6939_v63  ;;  %v7034_v17 = vpop.f32.mrb[97].mxu0  ;;  %v3260_v41 = vsel %vm3259_vm6, %v3115_v61, %v3258_v52  ;;  %v3151_v13 = vadd.f32 %v8745_v21, %v6587_v0 }
 0x29e   : > { %v3228_v18 = vadd.f32 %v3227_v15, %v6636_v45  ;;  %v3066_v2 = vrot.slane %v3065_v50, 2  ;;  %v3158_v56 = vadd.f32 %v8746_v9, %v6610_v3  ;;  %v3116_v32 = vmul.f32 0.015625, %v3027_v49  ;;  %v7045_v58 = vpop.f32.mrb[98].mxu0  ;;  %v8747_v3 = vld [vmem:[#allocation34_spill] sm:$0xff] }
 0x29f   : > { %v3145_v53 = vadd.f32 %v3144_v6, %v6767_v14  ;;  %v3126_v60 = vadd.f32 %v3125_v37, %v6631_v5  ;;  %v3111_v7 = vadd.f32 %v3110_v59, %v3109_v38  ;;  %v3139_v52 = vadd.f32 %v3138_v12, %v6946_v51  ;;  %v8748_v38 = vld [vmem:[#allocation35_spill] sm:$0xff] }
 0x2a0   : > { %v3229_v16 = vadd.f32 %v3228_v18, %v6670_v42  ;;  %v3067_v8 = vadd.f32 %v3066_v2, %v3065_v50  ;;  %v3117_v61 = vmul.f32 0.015625, %v3048_v54  ;;  %v3133_v15 = vadd.f32 %v3132_v19, %v6618_v4  ;;  %v7049_v50 = vpop.f32.mrb[99].mxu0 }
 0x2a1   : > { %v3090_v0 = vadd.f32 %v3089_v57, %v3088_v24  ;;  %v3165_v49 = vadd.f32 %v8747_v3, %v6625_v11  ;;  %v3152_v14 = vadd.f32 %v3151_v13, %v6786_v29  ;;  %v3172_v34 = vadd.f32 %v8748_v38, %v6657_v48  ;;  %v7062_v18 = vpop.f32.mrb[100].mxu0 }
 0x2a2   : > { %v3230_v63 = vadd.f32 %v3229_v16, %v6715_v55  ;;  %v3068_v33 = vrot.slane %v3067_v8, 1  ;;  %v3146_v6 = vadd.f32 %v3145_v53, %v6959_v39  ;;  %v3159_v51 = vadd.f32 %v3158_v56, %v6828_v36  ;;  %v7067_v39 = vpop.f32.mrb[101].mxu0  ;;  %v8749_v56 = vld [vmem:[#allocation65_spill] sm:$0xff] }
 0x2a3   : > { %v3262_v4 = vsel %vm3261_vm7, %v3116_v32, %v3260_v41  ;;  %v3127_v24 = vadd.f32 %v3126_v60, %v6750_v31  ;;  %v3120_v11 = vmul.f32 0.015625, %v3111_v7  ;;  %v3140_v29 = vadd.f32 %v3139_v52, %v6636_v45  ;;  %v8751_v52 = vld [vmem:[#allocation66_spill] sm:$0xff] }
 0x2a4   : > { %v3231_v5 = vadd.f32 %v3230_v63, %v6798_v26  ;;  %v3069_v46 = vadd.f32 %v3068_v33, %v3067_v8  ;;  %v3134_v2 = vadd.f32 %v3133_v15, %v6743_v28  ;;  %v3119_v59 = vmul.f32 0.015625, %v3090_v0  ;;  %v8750_v63 = vld [vmem:[#allocation68_spill] sm:$0xff] }
 0x2a5   : > { %v3264_v48 = vsel %vm3263_vm8, %v3117_v61, %v3262_v4  ;;  %v3153_v36 = vadd.f32 %v3152_v14, %v6977_v44  ;;  %v3166_v12 = vadd.f32 %v3165_v49, %v6852_v62  ;;  %v3147_v19 = vadd.f32 %v3146_v6, %v6670_v42  ;;  %v7080_v62 = vpop.f32.mrb[102].mxu0  ;;  %v8753_v14 = vld [vmem:[#allocation73_spill] sm:$0xff] }
 0x2a6   : > { %v3232_v27 = vadd.f32 %v3231_v5, %v6866_v35  ;;  %v3118_v37 = vmul.f32 0.015625, %v3069_v46  ;;  %v3160_v16 = vadd.f32 %v3159_v51, %v6987_v20  ;;  %v3173_v45 = vadd.f32 %v3172_v34, %v6880_v1  ;;  %v7084_v42 = vpop.f32.mrb[103].mxu0  ;;  %v8754_v34 = vld [vmem:[#allocation77_spill] sm:$0xff] }
 0x2a7   : > { %v3178_v41 = vmul.f32 0.125, %v3127_v24  ;;  %v3141_v13 = vadd.f32 %v3140_v29, %v6755_v10  ;;  %v3179_v9 = vmul.f32 0.125, %v3134_v2  ;;  %v3148_v32 = vadd.f32 %v3147_v19, %v8749_v56  ;;  %v7097_v61 = vpop.f32.mrb[104].mxu0 }
 0x2a8   : > { %v3233_v54 = vadd.f32 %v3232_v27, %v6913_v25  ;;  %v3266_v57 = vsel %vm3265_vm9, %v3118_v37, %v3264_v48  ;;  %v3154_v1 = vadd.f32 %v3153_v36, %v6715_v55  ;;  %v3167_v20 = vadd.f32 %v3166_v12, %v6997_v30  ;;  %v7100_v0 = vpop.f32.mrb[105].mxu0 }
 0x2a9   : > { %v3268_v8 = vsel %vm3267_vm10, %v3119_v59, %v3266_v57  ;;  %v3174_v60 = vadd.f32 %v3173_v45, %v7006_v43  ;;  %v3180_v33 = vmul.f32 0.125, %v3141_v13  ;;  %v3181_v30 = vmul.f32 0.125, %v3148_v32  ;;  %v7109_v46 = vpop.f32.mrb[106].mxu0 }
 0x2aa   : > { %v3234_v21 = vadd.f32 %v3233_v54, %v6750_v31  ;;  %v3270_v44 = vsel %vm3269_vm11, %v3120_v11, %v3268_v8  ;;  %v3161_v31 = vadd.f32 %v3160_v16, %v6798_v26  ;;  %v3155_v55 = vadd.f32 %v3154_v1, %v8751_v52  ;;  %v7112_v51 = vpop.f32.mrb[107].mxu0 }
 0x2ab   : > { %4653 = vmatprep.mubr.msk.f32.mxu0 %vm2943_vm3, %v3270_v44  ;;  %v3168_v26 = vadd.f32 %v3167_v20, %v6866_v35  ;;  %v3175_v3 = vadd.f32 %v3174_v60, %v6913_v25  ;;  %v7118_v24 = vpop.f32.mrb[108].mxu0 }
 0x2ac   : > { %v3235_v53 = vadd.f32 %v3234_v21, %v6743_v28  ;;  %4654 = vmatmul.mubr.msk.f32.vlgmr.msra.gmra.mrb[150].mxu0 %vm2943_vm3, %v3178_v41  ;;  %v8752_v28 = vld [vmem:[#allocation72_spill] sm:$0xff]  ;;  %v7120_v37 = vpop.f32.mrb[109].mxu0 }
 0x2ad   : > { %4656 = vmatprep.mubr.msk.f32.mxu0 %vm2943_vm3, %v3179_v9  ;;  %4669 = vmatpush3.msk.msra.mxu0 %vm3475_vm4, %v8750_v63  ;;  %v3162_v15 = vadd.f32 %v3161_v31, %v8752_v28  ;;  %v3169_v5 = vadd.f32 %v3168_v26, %v8753_v14  ;;  %v3176_v6 = vadd.f32 %v3175_v3, %v8754_v34  ;;  %v7125_v2 = vpop.f32.mrb[110].mxu0 }
 0x2ae   : > { %v3236_v7 = vadd.f32 %v3235_v53, %v6755_v10  ;;  %v3182_v10 = vmul.f32 0.125, %v3155_v55  ;;  %v7127_v59 = vpop.f32.mrb[111].mxu0 }
 0x2af   : > { %v3183_v38 = vmul.f32 0.125, %v3162_v15  ;;  %v3184_v25 = vmul.f32 0.125, %v3169_v5  ;;  %v3185_v27 = vmul.f32 0.125, %v3176_v6  ;;  %v7129_v12 = vpop.f32.mrb[112].mxu0 }
 0x2b0   : > { %v3237_v43 = vadd.f32 %v3236_v7, %v8749_v56  ;;  %4657 = vmatmul.mubr.msk.f32.gmra.mrb[152].mxu0 %vm2943_vm3, %v3180_v33  ;;  %v7131_v54 = vpop.f32.mrb[113].mxu0 }
 0x2b1   : > { %4659 = vmatprep.mubr.msk.f32.mxu0 %vm2943_vm3, %v3181_v30 }
 0x2b2   : > { %v3238_v49 = vadd.f32 %v3237_v43, %v8751_v52 }
 0x2b4   : > { %v3239_v35 = vadd.f32 %v3238_v49, %v8752_v28  ;;  %4660 = vmatmul.mubr.msk.f32.gmra.mrb[154].mxu0 %vm2943_vm3, %v3182_v10 }
 0x2b5   : > { %4662 = vmatprep.mubr.msk.f32.mxu0 %vm2943_vm3, %v3183_v38 }
 0x2b6   : > { %v3240_v4 = vadd.f32 %v3239_v35, %v8753_v14 }
 0x2b7   : > { %v7133_v16 = vpop.f32.mrb[114].mxu0 }
 0x2b8   : > { %v3241_v11 = vadd.f32 %v3240_v4, %v8754_v34  ;;  %4663 = vmatmul.mubr.msk.f32.gmra.mrb[156].mxu0 %vm2943_vm3, %v3184_v25  ;;  %v7135_v45 = vpop.f32.mrb[115].mxu0 }
 0x2b9   : > { %4665 = vmatprep.mubr.msk.f32.mxu0 %vm2943_vm3, %v3185_v27 }
 0x2ba   : > { %v3242_v29 = vrot.slane %v3241_v11, 4 }
 0x2bb   : > { %v7137_v21 = vpop.f32.mrb[116].mxu0 }
 0x2bc   : > { %v3243_v48 = vadd.f32 %v3242_v29, %v3241_v11  ;;  %v7139_v13 = vpop.f32.mrb[117].mxu0  ;;  %v4419_v29 = vld [vmem:[%s8512_s8] ss:$0 sm:$0xff] }
 0x2be   : > { %v3244_v36 = vrot.slane %v3243_v48, 2 }
 0x2bf   : > { %v7142_v44 = vpop.f32.mrb[118].mxu0 }
 0x2c0   : > { %v3245_v57 = vadd.f32 %v3244_v36, %v3243_v48  ;;  %v7144_v9 = vpop.f32.mrb[119].mxu0 }
 0x2c2   : > { %v3246_v19 = vrot.slane %v3245_v57, 1 }
 0x2c3   : > { %v7146_v56 = vpop.f32.mrb[120].mxu0 }
 0x2c4   : > { %v3247_v8 = vadd.f32 %v3246_v19, %v3245_v57  ;;  %v7148_v32 = vpop.f32.mrb[121].mxu0 }
 0x2c6   : > { %v3248_v41 = vmul.f32 0.001953125, %v3247_v8 }
 0x2c7   : > { %v7150_v1 = vpop.f32.mrb[122].mxu0 }
 0x2c8   : > { %4666 = vmatmul.mubr.msk.f32.gmra.mrb[158].mxu0 %vm2943_vm3, %v3248_v41  ;;  %v7152_v20 = vpop.f32.mrb[123].mxu0 }
 0x2cb   : > { %v7154_v53 = vpop.f32.mrb[124].mxu0 }
 0x2cc   : > { %v7156_v31 = vpop.f32.mrb[125].mxu0 }
 0x2cf   : > { %v7158_v60 = vpop.f32.mrb[126].mxu0 }
 0x2d0   : > { %v7160_v63 = vpop.f32.mrb[127].mxu0 }
 0x2d3   : > { %v7162_v33 = vpop.f32.mrb[128].mxu0 }
 0x2d4   : > { %v7164_v7 = vpop.f32.mrb[129].mxu0 }
 0x2d7   : > { %v7166_v52 = vpop.f32.mrb[130].mxu0 }
 0x2d8   : > { %v7168_v55 = vpop.f32.mrb[131].mxu0 }
 0x2db   : > { %v7170_v30 = vpop.f32.mrb[132].mxu0 }
 0x2dc   : > { %v7172_v28 = vpop.f32.mrb[133].mxu0 }
 0x2df   : > { %v7174_v15 = vpop.f32.mrb[134].mxu0 }
 0x2e0   : > { %v7176_v26 = vpop.f32.mrb[135].mxu0 }
 0x2e1   : > { %8755 = vst [vmem:[#allocation27_spill] sm:$0xff] %v7176_v26 }
 0x2ed   : > { %v7178_v43 = vpop.f32.mrb[136].mxu0 }
 0x2ee   : > { %8756 = vst [vmem:[#allocation30_spill] sm:$0xff] %v7178_v43  ;;  %v7180_v3 = vpop.f32.mrb[137].mxu0 }
 0x2ef   : > { %8757 = vst [vmem:[#allocation31_spill] sm:$0xff] %v7180_v3 }
 0x2f1   : > { %v7182_v10 = vpop.f32.mrb[138].mxu0 }
 0x2f2   : > { %8758 = vst [vmem:[#allocation34_spill] sm:$0xff] %v7182_v10  ;;  %v7184_v49 = vpop.f32.mrb[139].mxu0 }
 0x2f3   : > { %8759 = vst [vmem:[#allocation35_spill] sm:$0xff] %v7184_v49 }
 0x2f5   : > { %v7186_v14 = vpop.f32.mrb[140].mxu0 }
 0x2f6   : > { %8760 = vst [vmem:[#allocation65_spill] sm:$0xff] %v7186_v14  ;;  %v7188_v5 = vpop.f32.mrb[141].mxu0 }
 0x2f7   : > { %8761 = vst [vmem:[#allocation68_spill] sm:$0xff] %v7188_v5 }
 0x2f9   : > { %v7190_v38 = vpop.f32.mrb[142].mxu0 }
 0x2fa   : > { %8762 = vst [vmem:[#allocation66_spill] sm:$0xff] %v7190_v38  ;;  %v7192_v34 = vpop.f32.mrb[143].mxu0 }
 0x2fb   : > { %8763 = vst [vmem:[#allocation72_spill] sm:$0xff] %v7192_v34 }
 0x2ff   : > { %v7194_v6 = vpop.f32.mrb[144].mxu0 }
 0x300   : > { %8764 = vst [vmem:[#allocation73_spill] sm:$0xff] %v7194_v6  ;;  %v7196_v35 = vpop.f32.mrb[145].mxu0 }
 0x301   : > { %8765 = vst [vmem:[#allocation77_spill] sm:$0xff] %v7196_v35 }
 0x303   : > { %v7198_v25 = vpop.f32.mrb[146].mxu0 }
 0x304   : > { %8766 = vst [vmem:[#allocation89_spill] sm:$0xff] %v7198_v25  ;;  %v7200_v4 = vpop.f32.mrb[147].mxu0 }
 0x305   : > { %8767 = vst [vmem:[#allocation90_spill] sm:$0xff] %v7200_v4 }
 0x307   : > { %v7202_v27 = vpop.f32.mrb[148].mxu0 }
 0x308   : > { %8768 = vst [vmem:[#allocation91_spill] sm:$0xff] %v7202_v27  ;;  %v7204_v11 = vpop.f32.mrb[149].mxu0 }
 0x309   : > { %8769 = vst [vmem:[#allocation92_spill] sm:$0xff] %v7204_v11 }
 0x37f   : > { %v4655_v48 = vpop.f32.mrb[150].mxu0 }
 0x380   : > { %v3383_v36 = vadd.f32 %v4655_v48, %v4419_v29  ;;  %v3377_v57 = vpop.f32.mrb[151].mxu0 }
 0x381   : > { %v3378_v19 = vadd.f32 %v4419_v29, %v3377_v57 }
 0x382   : > { %v3427_v35 = vmax.f32 %v3383_v36, 0.0 }
 0x383   : > { %v3426_v8 = vmax.f32 %v3378_v19, 0.0  ;;  %v4658_v41 = vpop.f32.mrb[152].mxu0 }
 0x384   : > { %v3393_v6 = vadd.f32 %v4658_v41, %v4419_v29  ;;  %v3387_v25 = vpop.f32.mrb[153].mxu0 }
 0x385   : > { %v3388_v34 = vadd.f32 %v4419_v29, %v3387_v25  ;;  %4670 = vmatprep.mubr.msk.f32.mxu0 %vm3444_vm12, %v3426_v8 }
 0x386   : > { %4671 = vmatmul.mubr.msk.f32.vlgmr.msra.gmra.mrb[160].mxu0 %vm3444_vm12, %v3427_v35  ;;  %v3429_v4 = vmax.f32 %v3393_v6, 0.0 }
 0x387   : > { %v3428_v11 = vmax.f32 %v3388_v34, 0.0  ;;  %v4661_v27 = vpop.f32.mrb[154].mxu0 }
 0x388   : > { %v3403_v38 = vadd.f32 %v4661_v27, %v4419_v29  ;;  %v3397_v5 = vpop.f32.mrb[155].mxu0 }
 0x389   : > { %v3398_v14 = vadd.f32 %v4419_v29, %v3397_v5  ;;  %4673 = vmatprep.mubr.msk.f32.mxu0 %vm3444_vm12, %v3428_v11 }
 0x38a   : > { %4674 = vmatmul.mubr.msk.f32.gmra.mrb[162].mxu0 %vm3444_vm12, %v3429_v4  ;;  %v3431_v36 = vmax.f32 %v3403_v38, 0.0  ;;  %v4430_v38 = vld [vmem:[%s8514_s10] ss:$0 sm:$0xff] }
 0x38b   : > { %v3430_v48 = vmax.f32 %v3398_v14, 0.0  ;;  %v4664_v57 = vpop.f32.mrb[156].mxu0 }
 0x38c   : > { %v3413_v19 = vadd.f32 %v4664_v57, %v4419_v29  ;;  %v3407_v41 = vpop.f32.mrb[157].mxu0 }
 0x38d   : > { %v3408_v25 = vadd.f32 %v4419_v29, %v3407_v41  ;;  %4676 = vmatprep.mubr.msk.f32.mxu0 %vm3444_vm12, %v3430_v48 }
 0x38e   : > { %4677 = vmatmul.mubr.msk.f32.gmra.mrb[164].mxu0 %vm3444_vm12, %v3431_v36  ;;  %v3433_v35 = vmax.f32 %v3413_v19, 0.0 }
 0x38f   : > { %v3432_v34 = vmax.f32 %v3408_v25, 0.0 }
 0x391   : > { %4679 = vmatprep.mubr.msk.f32.mxu0 %vm3444_vm12, %v3432_v34 }
 0x392   : > { %4680 = vmatmul.mubr.msk.f32.gmra.mrb[166].mxu0 %vm3444_vm12, %v3433_v35 }
 0x39b   : > { %v4667_v5 = vpop.f32.mrb[158].mxu0 }
 0x39c   : > { %v3423_v6 = vadd.f32 %v4667_v5, %v4419_v29  ;;  %v3417_v27 = vpop.f32.mrb[159].mxu0 }
 0x39d   : > { %v3418_v4 = vadd.f32 %v4419_v29, %v3417_v27 }
 0x39e   : > { %v3435_v11 = vmax.f32 %v3423_v6, 0.0 }
 0x39f   : > { %v3434_v14 = vmax.f32 %v3418_v4, 0.0 }
 0x3a1   : > { %4682 = vmatprep.mubr.msk.f32.mxu0 %vm3444_vm12, %v3434_v14 }
 0x3a2   : > { %4683 = vmatmul.mubr.msk.f32.gmra.mrb[168].mxu0 %vm3444_vm12, %v3435_v11 }
 0x459   : > { %v4672_v8 = vpop.f32.mrb[160].mxu0 }
 0x45a   : > { %v3551_v48 = vadd.f32 %v4672_v8, %v4430_v38  ;;  %v3545_v57 = vpop.f32.mrb[161].mxu0 }
 0x45b   : > { %v7222_v36 = vadd.f32 %v4430_v38, %v3545_v57 }
 0x45c   : > { %v3595_v19 = vsub.f32 0.0, %v3551_v48 }
 0x45d   : > { %v4675_v41 = vpop.f32.mrb[162].mxu0 }
 0x45e   : > { %v3606_v25 = vmul.f32 1.442695, %v3595_v19  ;;  %v3561_v34 = vadd.f32 %v4675_v41, %v4430_v38  ;;  %v3555_v29 = vpop.f32.mrb[163].mxu0 }
 0x45f   : > { %v3556_v35 = vadd.f32 %v4430_v38, %v3555_v29 }
 0x460   : > { %5146 = vpow2.f32 %v3606_v25  ;;  %v3597_v5 = vsub.f32 0.0, %v3561_v34 }
 0x461   : > { %v3596_v6 = vsub.f32 0.0, %v3556_v35  ;;  %v4678_v27 = vpop.f32.mrb[164].mxu0 }
 0x462   : > { %v3610_v4 = vmul.f32 1.442695, %v3597_v5  ;;  %v3571_v14 = vadd.f32 %v4678_v27, %v4430_v38  ;;  %v3565_v11 = vpop.f32.mrb[165].mxu0 }
 0x463   : > { %v3608_v49 = vmul.f32 1.442695, %v3596_v6  ;;  %v3566_v10 = vadd.f32 %v4430_v38, %v3565_v11 }
 0x464   : > { %5148 = vpow2.f32 %v3610_v4  ;;  %v3599_v8 = vsub.f32 0.0, %v3571_v14 }
 0x465   : > { %5150 = vpow2.f32 %v3608_v49  ;;  %v3598_v57 = vsub.f32 0.0, %v3566_v10  ;;  %v4681_v3 = vpop.f32.mrb[166].mxu0 }
 0x466   : > { %v3614_v48 = vmul.f32 1.442695, %v3599_v8  ;;  %v3581_v43 = vadd.f32 %v4681_v3, %v4430_v38  ;;  %v3575_v19 = vpop.f32.mrb[167].mxu0 }
 0x467   : > { %v3612_v41 = vmul.f32 1.442695, %v3598_v57  ;;  %v3576_v26 = vadd.f32 %v4430_v38, %v3575_v19 }
 0x468   : > { %5152 = vpow2.f32 %v3614_v48  ;;  %v3601_v25 = vsub.f32 0.0, %v3581_v43 }
 0x469   : > { %5154 = vpow2.f32 %v3612_v41  ;;  %v3600_v34 = vsub.f32 0.0, %v3576_v26 }
 0x46a   : > { %v5147_v29 = vpop.eup %5146  ;;  %v3618_v35 = vmul.f32 1.442695, %v3601_v25 }
 0x46b   : > { %v3625_v5 = vadd.f32 1.0, %v5147_v29  ;;  %v3616_v27 = vmul.f32 1.442695, %v3600_v34 }
 0x46c   : > { %5156 = vpow2.f32 %v3618_v35 }
 0x46d   : > { %5158 = vrcp.f32 %v3625_v5 }
 0x46e   : > { %v5149_v6 = vpop.eup %5148  ;;  %5160 = vpow2.f32 %v3616_v27 }
 0x46f   : > { %v5151_v4 = vpop.eup %5150  ;;  %v3627_v49 = vadd.f32 1.0, %v5149_v6 }
 0x470   : > { %v3626_v10 = vadd.f32 1.0, %v5151_v4 }
 0x471   : > { %5162 = vrcp.f32 %v3627_v49 }
 0x472   : > { %v5153_v3 = vpop.eup %5152  ;;  %5164 = vrcp.f32 %v3626_v10 }
 0x473   : > { %v5155_v14 = vpop.eup %5154  ;;  %v3629_v11 = vadd.f32 1.0, %v5153_v3 }
 0x474   : > { %v3628_v8 = vadd.f32 1.0, %v5155_v14 }
 0x475   : > { %5166 = vrcp.f32 %v3629_v11  ;;  %v4684_v43 = vpop.f32.mrb[168].mxu0 }
 0x476   : > { %v5157_v26 = vpop.eup %5156  ;;  %5168 = vrcp.f32 %v3628_v8  ;;  %v3591_v57 = vadd.f32 %v4684_v43, %v4430_v38  ;;  %v3585_v48 = vpop.f32.mrb[169].mxu0 }
 0x477   : > { %v5159_v19 = vpop.eup %5158  ;;  %v3631_v41 = vadd.f32 1.0, %v5157_v26  ;;  %v3586_v25 = vadd.f32 %v4430_v38, %v3585_v48  ;;  %v8770_v48 = vld [vmem:[#allocation6_spill] sm:$0xff] }
 0x478   : > { %v3603_v34 = vsub.f32 0.0, %v3591_v57  ;;  %3806 = vrot.lane.b32.xlu0 %v5159_v19, %s5318_s24  ;;  %v5161_v29 = vpop.eup %5160 }
 0x479   : > { %5170 = vrcp.f32 %v3631_v41  ;;  %v3602_v35 = vsub.f32 0.0, %v3586_v25  ;;  %v3630_v5 = vadd.f32 1.0, %v5161_v29  ;;  %v3594_v25 = vsub.f32 0.0, %v7222_v36  ;;  %v8774_v36 = vld [vmem:[#allocation81_spill] sm:$0xff] }
 0x47a   : > { %v3622_v27 = vmul.f32 1.442695, %v3603_v34 }
 0x47b   : > { %v5163_v6 = vpop.eup %5162  ;;  %5172 = vrcp.f32 %v3630_v5  ;;  %v3620_v49 = vmul.f32 1.442695, %v3602_v35  ;;  %v3604_v34 = vmul.f32 1.442695, %v3594_v25  ;;  %v5320_v5 = vmov 1966171168  }
 0x47c   : > { %v5165_v4 = vpop.eup %5164  ;;  %3810 = vrot.lane.b32.xlu1 %v5163_v6, %s5318_s24  ;;  %5174 = vpow2.f32 %v3622_v27  ;;  %v3647_v27 = vunpack.c.l.s4 %v5320_v5  ;;  %v8781_v25 = vld [vmem:[#allocation86_spill] sm:$0xff] }
 0x47d   : > { %3808 = vrot.lane.b32.xlu0 %v5165_v4, %s5318_s24  ;;  %5176 = vpow2.f32 %v3620_v49  ;;  %v7237_v4 = vld [vmem:[%s8510_s6] ss:$0 sm:$0xff] }
 0x47e   : > { %v3648_v6 = vunpack.c.0.s8 %v3647_v27  ;;  %v8786_v27 = vld [vmem:[#allocation88_spill] sm:$0xff] }
 0x47f   : > { %v5167_v10 = vpop.eup %5166 }
 0x480   : > { %v5169_v38 = vpop.eup %5168 }
 0x481   : > { %3812 = vrot.lane.b32.xlu1 %v5169_v38, %s5318_s24  ;;  %3814 = vrot.lane.b32.xlu0 %v5167_v10, %s5318_s24  ;;  %v8771_v10 = vld [vmem:[#allocation5_spill] sm:$0xff] }
 0x482   : > { %v3651_v38 = vsub.s32 %v3648_v6, %v8771_v10  ;;  %v7274_v6 = vadd.f32 %v8786_v27, %v7237_v4  ;;  %v7282_v10 = vadd.f32 %v7030_v40, %v7237_v4  ;;  %v7302_v40 = vadd.f32 %v7237_v4, %v7067_v39 }
 0x483   : > { %v5171_v3 = vpop.eup %5170  ;;  %v7322_v39 = vadd.f32 %v7109_v46, %v7237_v4  ;;  %v7342_v46 = vadd.f32 %v7237_v4, %v7127_v59  ;;  %v7362_v59 = vadd.f32 %v7137_v21, %v7237_v4  ;;  %v7382_v21 = vadd.f32 %v7237_v4, %v7148_v32 }
 0x484   : > { %8787 = vst [vmem:[#allocation88_spill] sm:$0xff] %v7274_v6  ;;  %8789 = vst [vmem:[#allocation94_spill] sm:$0xff] %v7282_v10  ;;  %v7390_v27 = vadd.f32 %v7237_v4, %v7152_v20  ;;  %v7402_v32 = vadd.f32 %v7158_v60, %v7237_v4  ;;  %v7410_v20 = vadd.f32 %v7162_v33, %v7237_v4  ;;  %v8928_v10 = vld [vmem:[#allocation40_spill] sm:$0xff]  ;;  %v8933_v6 = vld [vmem:[#allocation78_spill] sm:$0xff] }
 0x485   : > { %v5173_v14 = vpop.eup %5172  ;;  %3818 = vrot.lane.b32.xlu0 %v5171_v3, %s5318_s24  ;;  %v8772_v3 = vld [vmem:[#allocation79_spill] sm:$0xff]  ;;  %8794 = vst [vmem:[#allocation99_spill] sm:$0xff] %v7302_v40  ;;  %8799 = vst [vmem:[#allocation104_spill] sm:$0xff] %v7322_v39  ;;  %v7422_v60 = vadd.f32 %v7237_v4, %v7168_v55  ;;  %v7430_v33 = vadd.f32 %v7237_v4, %v7172_v28  ;;  %v8830_v55 = vld [vmem:[#allocation30_spill] sm:$0xff] }
 0x486   : > { %3816 = vrot.lane.b32.xlu1 %v5173_v14, %s5318_s24  ;;  %v5175_v11 = vpop.eup %5174  ;;  %v7242_v14 = vadd.f32 %v8772_v3, %v7237_v4  ;;  %8804 = vst [vmem:[#allocation109_spill] sm:$0xff] %v7342_v46  ;;  %8809 = vst [vmem:[#allocation114_spill] sm:$0xff] %v7362_v59  ;;  %v8834_v28 = vld [vmem:[#allocation34_spill] sm:$0xff]  ;;  %v8922_v40 = vld [vmem:[#allocation11_spill] sm:$0xff] }
 0x487   : > { %v3633_v8 = vadd.f32 1.0, %v5175_v11  ;;  %v5177_v43 = vpop.eup %5176  ;;  %v7246_v11 = vadd.f32 %v7237_v4, %v8774_v36  ;;  %v7290_v36 = vadd.f32 %v7045_v58, %v7237_v4  ;;  %v7310_v58 = vadd.f32 %v7237_v4, %v7084_v42  ;;  %8814 = vst [vmem:[#allocation119_spill] sm:$0xff] %v7382_v21  ;;  %8816 = vst [vmem:[#allocation121_spill] sm:$0xff] %v7390_v27  ;;  %v8880_v27 = vld [vmem:[#allocation51_spill] sm:$0xff]  ;;  %v8884_v21 = vld [vmem:[#allocation62_spill] sm:$0xff] }
 0x488   : > { %v3632_v26 = vadd.f32 1.0, %v5177_v43  ;;  %8773 = vst [vmem:[#allocation6_spill] sm:$0xff] %v7242_v14  ;;  %v7330_v42 = vadd.f32 %v7118_v24, %v7237_v4  ;;  %v7350_v24 = vadd.f32 %v7237_v4, %v7131_v54  ;;  %v7370_v54 = vadd.f32 %v7142_v44, %v7237_v4  ;;  %8819 = vst [vmem:[#allocation124_spill] sm:$0xff] %v7402_v32  ;;  %v8870_v32 = vld [vmem:[#allocation45_spill] sm:$0xff]  ;;  %v8908_v39 = vld [vmem:[#allocation18_spill] sm:$0xff] }
 0x489   : > { %5178 = vrcp.f32 %v3633_v8  ;;  %8775 = vst [vmem:[#allocation5_spill] sm:$0xff] %v7246_v11  ;;  %v8776_v8 = vld [vmem:[#allocation83_spill] sm:$0xff]  ;;  %8791 = vst [vmem:[#allocation96_spill] sm:$0xff] %v7290_v36  ;;  %v8954_v14 = vld [vmem:[#allocation61_spill] sm:$0xff] }
 0x48a   : > { %5180 = vrcp.f32 %v3632_v26  ;;  %v7250_v43 = vadd.f32 %v8776_v8, %v7237_v4  ;;  %v8778_v26 = vld [vmem:[#allocation85_spill] sm:$0xff]  ;;  %v7294_v8 = vadd.f32 %v7237_v4, %v7049_v50  ;;  %8796 = vst [vmem:[#allocation101_spill] sm:$0xff] %v7310_v58  ;;  %v7314_v50 = vadd.f32 %v7097_v61, %v7237_v4  ;;  %8801 = vst [vmem:[#allocation106_spill] sm:$0xff] %v7330_v42  ;;  %v8918_v58 = vld [vmem:[#allocation48_spill] sm:$0xff] }
 0x48b   : > { %5182 = vpow2.f32 %v3604_v34  ;;  %v7262_v34 = vadd.f32 %v7237_v4, %v8781_v25  ;;  %v7334_v61 = vadd.f32 %v7237_v4, %v7120_v37  ;;  %8806 = vst [vmem:[#allocation111_spill] sm:$0xff] %v7350_v24  ;;  %v7354_v37 = vadd.f32 %v7133_v16, %v7237_v4  ;;  %8811 = vst [vmem:[#allocation116_spill] sm:$0xff] %v7370_v54  ;;  %v8924_v36 = vld [vmem:[#allocation19_spill] sm:$0xff] }
 0x48c   : > { %8777 = vst [vmem:[#allocation79_spill] sm:$0xff] %v7250_v43  ;;  %8792 = vst [vmem:[#allocation97_spill] sm:$0xff] %v7294_v8  ;;  %v7374_v16 = vadd.f32 %v7237_v4, %v7144_v9  ;;  %v7394_v9 = vadd.f32 %v7154_v53, %v7237_v4  ;;  %v7414_v53 = vadd.f32 %v7237_v4, %v7164_v7  ;;  %v8885_v54 = vmax.f32 %v8884_v21, 0.0  ;;  %v8926_v8 = vld [vmem:[#allocation28_spill] sm:$0xff]  ;;  %v8951_v43 = vld [vmem:[#allocation41_spill] sm:$0xff] }
 0x48d   : > { %8782 = vst [vmem:[#allocation85_spill] sm:$0xff] %v7262_v34  ;;  %8797 = vst [vmem:[#allocation102_spill] sm:$0xff] %v7314_v50  ;;  %v7434_v7 = vadd.f32 %v7174_v15, %v7237_v4  ;;  %v8836_v15 = vld [vmem:[#allocation35_spill] sm:$0xff]  ;;  %v8948_v34 = vld [vmem:[#allocation29_spill] sm:$0xff] }
 0x48e   : > { %8802 = vst [vmem:[#allocation107_spill] sm:$0xff] %v7334_v61  ;;  %8807 = vst [vmem:[#allocation112_spill] sm:$0xff] %v7354_v37  ;;  %v8894_v37 = vld [vmem:[#allocation24_spill] sm:$0xff]  ;;  %v8906_v61 = vld [vmem:[#allocation10_spill] sm:$0xff] }
 0x48f   : > { %8812 = vst [vmem:[#allocation117_spill] sm:$0xff] %v7374_v16  ;;  %8817 = vst [vmem:[#allocation122_spill] sm:$0xff] %v7394_v9  ;;  %v8874_v9 = vld [vmem:[#allocation17_spill] sm:$0xff]  ;;  %v8912_v50 = vld [vmem:[#allocation39_spill] sm:$0xff] }
 0x490   : > { %8821 = vst [vmem:[#allocation126_spill] sm:$0xff] %v7410_v20  ;;  %8822 = vst [vmem:[#allocation127_spill] sm:$0xff] %v7414_v53  ;;  %v8854_v20 = vld [vmem:[#allocation91_spill] sm:$0xff] }
 0x491   : > { %8824 = vst [vmem:[#allocation129_spill] sm:$0xff] %v7422_v60  ;;  %8826 = vst [vmem:[#allocation131_spill] sm:$0xff] %v7430_v33  ;;  %v7450_v33 = vadd.f32 %v8834_v28, %v7237_v4  ;;  %v8838_v60 = vld [vmem:[#allocation65_spill] sm:$0xff] }
 0x492   : > { %8827 = vst [vmem:[#allocation132_spill] sm:$0xff] %v7434_v7  ;;  %v7454_v7 = vadd.f32 %v7237_v4, %v8836_v15 }
 0x493   : > { %v5179_v57 = vpop.eup %5178  ;;  %8835 = vst [vmem:[#allocation34_spill] sm:$0xff] %v7450_v33 }
 0x494   : > { %v3897_v19 = vrot.slane %v5179_v57, %v8770_v48  ;;  %v5181_v41 = vpop.eup %5180  ;;  %v7254_v57 = vadd.f32 %v7237_v4, %v8778_v26  ;;  %8837 = vst [vmem:[#allocation35_spill] sm:$0xff] %v7454_v7  ;;  %v8848_v7 = vld [vmem:[#allocation77_spill] sm:$0xff] }
 0x495   : > { %3820 = vrot.lane.b32.xlu1 %v5181_v41, %s5318_s24  ;;  %v5183_v29 = vpop.eup %5182  ;;  %v7258_v41 = vadd.f32 %v6982_v47, %v7237_v4  ;;  %v7278_v47 = vadd.f32 %v7237_v4, %v7019_v22  ;;  %v7298_v22 = vadd.f32 %v7062_v18, %v7237_v4  ;;  %v7318_v18 = vadd.f32 %v7237_v4, %v7100_v0  ;;  %s8425_s24 = scalar_lea.hbm %s8515_s11, %s4449_s13  ;;  %s5257_s13 = scalar_lea.vmem %s5256_s25, 16384 }
 0x496   : > { %3899 = vrot.lane.b32.xlu0 %v3897_v19, %s5319_s29  ;;  %v3624_v35 = vadd.f32 1.0, %v5183_v29  ;;  %8779 = vst [vmem:[#allocation81_spill] sm:$0xff] %v7254_v57  ;;  %v7266_v29 = vadd.f32 %v7001_v23, %v7237_v4  ;;  %v7286_v23 = vadd.f32 %v7237_v4, %v7034_v17  ;;  %v7306_v17 = vadd.f32 %v7080_v62, %v7237_v4  ;;  %s8463_s29 = scalar_lea.sflag [#allocation3], %s392_s22  ;;  %p5259_p1 = scmp.lt.s32.totalorder %s5257_s13, %s5251_s30 }
 0x497   : > { %8780 = vst [vmem:[#allocation83_spill] sm:$0xff] %v7258_v41  ;;  %8788 = vst [vmem:[#allocation93_spill] sm:$0xff] %v7278_v47  ;;  %v7326_v62 = vadd.f32 %v7237_v4, %v7112_v51  ;;  %v7338_v0 = vadd.f32 %v7125_v2, %v7237_v4  ;;  %v7346_v51 = vadd.f32 %v7129_v12, %v7237_v4  ;;  %v8936_v47 = vld [vmem:[#allocation50_spill] sm:$0xff]  ;;  %v8945_v41 = vld [vmem:[#allocation20_spill] sm:$0xff] }
 0x498   : > { %5184 = vrcp.f32 %v3624_v35  ;;  %8783 = vst [vmem:[#allocation86_spill] sm:$0xff] %v7266_v29  ;;  %v8784_v35 = vld [vmem:[#allocation87_spill] sm:$0xff]  ;;  %8790 = vst [vmem:[#allocation95_spill] sm:$0xff] %v7286_v23  ;;  %v7358_v2 = vadd.f32 %v7237_v4, %v7135_v45  ;;  %v7366_v12 = vadd.f32 %v7237_v4, %v7139_v13  ;;  %v7378_v45 = vadd.f32 %v7146_v56, %v7237_v4  ;;  %v8930_v23 = vld [vmem:[#allocation60_spill] sm:$0xff]  ;;  %p5260_p2 = por %p5259_p1, %p5258_p0 }
 0x499   : > { %v7270_v5 = vadd.f32 %v7237_v4, %v8784_v35  ;;  %8793 = vst [vmem:[#allocation98_spill] sm:$0xff] %v7298_v22  ;;  %8795 = vst [vmem:[#allocation100_spill] sm:$0xff] %v7306_v17  ;;  %v7386_v13 = vadd.f32 %v7150_v1, %v7237_v4  ;;  %v7398_v56 = vadd.f32 %v7237_v4, %v7156_v31  ;;  %v8916_v17 = vld [vmem:[#allocation75_spill] sm:$0xff]  ;;  %v8920_v22 = vld [vmem:[#allocation57_spill] sm:$0xff] }
 0x49a   : > { %8798 = vst [vmem:[#allocation103_spill] sm:$0xff] %v7318_v18  ;;  %8800 = vst [vmem:[#allocation105_spill] sm:$0xff] %v7326_v62  ;;  %v7406_v1 = vadd.f32 %v7237_v4, %v7160_v63  ;;  %v7418_v31 = vadd.f32 %v7166_v52, %v7237_v4  ;;  %v7426_v63 = vadd.f32 %v7170_v30, %v7237_v4  ;;  %v8832_v30 = vld [vmem:[#allocation31_spill] sm:$0xff]  ;;  %v8910_v62 = vld [vmem:[#allocation26_spill] sm:$0xff]  ;;  %p5261_p3 = pnand %p5260_p2, %p5254_p13 }
 0x49b   : > { %8785 = vst [vmem:[#allocation87_spill] sm:$0xff] %v7270_v5  ;;  %8803 = vst [vmem:[#allocation108_spill] sm:$0xff] %v7338_v0  ;;  %v8914_v18 = vld [vmem:[#allocation55_spill] sm:$0xff]  ;;  %v8942_v5 = vld [vmem:[#allocation12_spill] sm:$0xff] }
 0x49c   : > { %8805 = vst [vmem:[#allocation110_spill] sm:$0xff] %v7346_v51  ;;  %8808 = vst [vmem:[#allocation113_spill] sm:$0xff] %v7358_v2  ;;  %v8896_v2 = vld [vmem:[#allocation37_spill] sm:$0xff]  ;;  %v8939_v29 = vld [vmem:[#allocation59_spill] sm:$0xff] }
 0x49d   : > { %8810 = vst [vmem:[#allocation115_spill] sm:$0xff] %v7366_v12  ;;  %8813 = vst [vmem:[#allocation118_spill] sm:$0xff] %v7378_v45  ;;  %v8882_v45 = vld [vmem:[#allocation53_spill] sm:$0xff] }
 0x49e   : > { %8815 = vst [vmem:[#allocation120_spill] sm:$0xff] %v7386_v13  ;;  %8818 = vst [vmem:[#allocation123_spill] sm:$0xff] %v7398_v56  ;;  %v8876_v56 = vld [vmem:[#allocation25_spill] sm:$0xff]  ;;  %v8878_v13 = vld [vmem:[#allocation38_spill] sm:$0xff] }
 0x49f   : > { %8820 = vst [vmem:[#allocation125_spill] sm:$0xff] %v7406_v1  ;;  %8823 = vst [vmem:[#allocation128_spill] sm:$0xff] %v7418_v31  ;;  %v7442_v31 = vadd.f32 %v8830_v55, %v7237_v4  ;;  %v8872_v1 = vld [vmem:[#allocation9_spill] sm:$0xff] }
 0x4a0   : > { %8825 = vst [vmem:[#allocation130_spill] sm:$0xff] %v7426_v63  ;;  %v7446_v63 = vadd.f32 %v7237_v4, %v8832_v30 }
 0x4a1   : > { %8831 = vst [vmem:[#allocation30_spill] sm:$0xff] %v7442_v31 }
 0x4a2   : > { %v5185_v49 = vpop.eup %5184  ;;  %8833 = vst [vmem:[#allocation31_spill] sm:$0xff] %v7446_v63 }
 0x4a3   : > { %v3645_v19 = vcombine.high %v5185_v49, %v5185_v49  ;;  %v3652_v3 = vrot.slane %v5185_v49, %v3651_v38 }
 0x4a5   : > { %v3659_v49 = vrot.slane %v3645_v19, %v3651_v38  ;;  %v3660_v26 = vcombine.high %v3652_v3, %v3652_v3  ;;  %v3668_v25 = vrot.slane %v3652_v3, %v3651_v38 }
 0x4a7   : > { %v3661_v19 = vcombine.high %v3659_v49, %v3659_v49  ;;  %v3675_v35 = vrot.slane %v3659_v49, %v3651_v38  ;;  %v3682_v44 = vrot.slane %v3660_v26, %v3651_v38  ;;  %v3690_v49 = vcombine.high %v3668_v25, %v3668_v25  ;;  %v8828_v26 = vld [vmem:[#allocation27_spill] sm:$0xff] }
 0x4a8   : > { %v7465_v30 = vrot.slane %v3668_v25, %v8770_v48 }
 0x4a9   : > { %v3689_v3 = vrot.slane %v3661_v19, %v3651_v38  ;;  %v3691_v38 = vcombine.high %v3675_v35, %v3675_v35  ;;  %v3692_v52 = vcombine.high %v3682_v44, %v3682_v44  ;;  %v7438_v19 = vadd.f32 %v7237_v4, %v8828_v26 }
 0x4aa   : > { %v7458_v26 = vadd.f32 %v8838_v60, %v7237_v4  ;;  %v7468_v63 = vrot.slane %v3682_v44, %v8770_v48  ;;  %v7471_v28 = vrot.slane %v3690_v49, %v8770_v48  ;;  %v7474_v15 = vrot.slane %v3675_v35, %v8770_v48  ;;  %v8842_v60 = vld [vmem:[#allocation66_spill] sm:$0xff]  ;;  %v8844_v44 = vld [vmem:[#allocation72_spill] sm:$0xff]  ;;  %v8846_v35 = vld [vmem:[#allocation73_spill] sm:$0xff] }
 0x4ab   : > { %8829 = vst [vmem:[#allocation27_spill] sm:$0xff] %v7438_v19  ;;  %v8840_v19 = vld [vmem:[#allocation68_spill] sm:$0xff]  ;;  %v3693_v31 = vcombine.high %v3689_v3, %v3689_v3  ;;  %v7487_v25 = vrot.slane %v3691_v38, %v8770_v48  ;;  %v7491_v49 = vadd.f32 %v7237_v4, %v8844_v44  ;;  %v7495_v33 = vadd.f32 %v8846_v35, %v7237_v4 }
 0x4ac   : > { %8839 = vst [vmem:[#allocation65_spill] sm:$0xff] %v7458_v26  ;;  %v7462_v55 = vadd.f32 %v7237_v4, %v8840_v19  ;;  %v7478_v26 = vadd.f32 %v8842_v60, %v7237_v4  ;;  %v7481_v19 = vrot.slane %v3692_v52, %v8770_v48  ;;  %v7499_v60 = vadd.f32 %v7237_v4, %v8848_v7  ;;  %v8850_v52 = vld [vmem:[#allocation89_spill] sm:$0xff]  ;;  %v8858_v7 = vld [vmem:[#allocation7_spill] sm:$0xff] }
 0x4ad   : > { %8845 = vst [vmem:[#allocation72_spill] sm:$0xff] %v7491_v49  ;;  %8847 = vst [vmem:[#allocation73_spill] sm:$0xff] %v7495_v33  ;;  %v7511_v44 = vadd.f32 %v8854_v20, %v7237_v4  ;;  %v8856_v49 = vld [vmem:[#allocation92_spill] sm:$0xff]  ;;  %v7518_v33 = vrot.slane %v3693_v31, %v8770_v48 }
 0x4ae   : > { %8841 = vst [vmem:[#allocation68_spill] sm:$0xff] %v7462_v55  ;;  %8843 = vst [vmem:[#allocation66_spill] sm:$0xff] %v7478_v26  ;;  %v7484_v55 = vrot.slane %v3689_v3, %v8770_v48  ;;  %v7503_v26 = vadd.f32 %v8850_v52, %v7237_v4  ;;  %v8852_v3 = vld [vmem:[#allocation90_spill] sm:$0xff]  ;;  %v7515_v35 = vadd.f32 %v7237_v4, %v8856_v49  ;;  %v8866_v31 = vld [vmem:[#allocation36_spill] sm:$0xff] }
 0x4af   : > { %8849 = vst [vmem:[#allocation77_spill] sm:$0xff] %v7499_v60  ;;  %v7507_v38 = vadd.f32 %v7237_v4, %v8852_v3  ;;  %8855 = vst [vmem:[#allocation91_spill] sm:$0xff] %v7511_v44  ;;  %v8859_v60 = vmax.f32 %v8858_v7, 0.0  ;;  %v8864_v4 = vld [vmem:[#allocation47_spill] sm:$0xff]  ;;  %v8867_v7 = vmax.f32 %v8866_v31, 0.0  ;;  %v8875_v31 = vmax.f32 %v8874_v9, 0.0 }
 0x4b0   : > { %8851 = vst [vmem:[#allocation89_spill] sm:$0xff] %v7503_v26  ;;  %8857 = vst [vmem:[#allocation92_spill] sm:$0xff] %v7515_v35  ;;  %v8860_v26 = vld [vmem:[#allocation15_spill] sm:$0xff]  ;;  %v8865_v49 = vmax.f32 %v8864_v4, 0.0  ;;  %v8868_v35 = vld [vmem:[#allocation74_spill] sm:$0xff]  ;;  %v8873_v4 = vmax.f32 %v8872_v1, 0.0 }
 0x4b1   : > { %8853 = vst [vmem:[#allocation90_spill] sm:$0xff] %v7507_v38  ;;  %v7523_v52 = vmul.f32 %v7465_v30, %v8859_v60  ;;  %v8861_v53 = vmax.f32 %v8860_v26, 0.0  ;;  %v8862_v38 = vld [vmem:[#allocation23_spill] sm:$0xff]  ;;  %v7543_v60 = vmul.f32 %v7481_v19, %v8867_v7  ;;  %v8869_v26 = vmax.f32 %v8868_v35, 0.0 }
 0x4b2   : > { %v8863_v20 = vmax.f32 %v8862_v38, 0.0  ;;  %v7538_v48 = vmul.f32 %v7474_v15, %v8865_v49  ;;  %v8871_v38 = vmax.f32 %v8870_v32, 0.0  ;;  %v7558_v49 = vmul.f32 %v7465_v30, %v8873_v4 }
 0x4b3   : > { %v7528_v3 = vmul.f32 %v7468_v63, %v8861_v53  ;;  %v7548_v53 = vmul.f32 %v7484_v55, %v8869_v26  ;;  %v7563_v7 = vmul.f32 %v7468_v63, %v8875_v31  ;;  %v8877_v35 = vmax.f32 %v8876_v56, 0.0 }
 0x4b4   : > { %v7533_v44 = vmul.f32 %v7471_v28, %v8863_v20  ;;  %v7553_v20 = vmul.f32 %v7487_v25, %v8871_v38  ;;  %v8879_v32 = vmax.f32 %v8878_v13, 0.0  ;;  %v8881_v1 = vmax.f32 %v8880_v27, 0.0 }
 0x4b5   : > { %v7568_v26 = vmul.f32 %v7471_v28, %v8877_v35  ;;  %v8883_v9 = vmax.f32 %v8882_v45, 0.0  ;;  %v7586_v56 = vmul.f32 %v7484_v55, %v8885_v54  ;;  %v8886_v35 = vld [vmem:[#allocation46_spill] sm:$0xff] }
 0x4b6   : > { %v7573_v38 = vmul.f32 %v7481_v19, %v8879_v32  ;;  %v7578_v4 = vmul.f32 %v7474_v15, %v8881_v1  ;;  %v8887_v16 = vmax.f32 %v8886_v35, 0.0  ;;  %v8888_v32 = vld [vmem:[#allocation54_spill] sm:$0xff]  ;;  %v8890_v1 = vld [vmem:[#allocation8_spill] sm:$0xff]  ;;  %v8895_v35 = vmax.f32 %v8894_v37, 0.0 }
 0x4b7   : > { %v3790_v31 = vmul.f32 %v7518_v33, %v8883_v9  ;;  %v8889_v59 = vmax.f32 %v8888_v32, 0.0  ;;  %v8891_v12 = vmax.f32 %v8890_v1, 0.0  ;;  %v8892_v9 = vld [vmem:[#allocation16_spill] sm:$0xff]  ;;  %v8897_v32 = vmax.f32 %v8896_v2, 0.0  ;;  %v8898_v1 = vld [vmem:[#allocation49_spill] sm:$0xff] }
 0x4b8   : > { %v7591_v13 = vmul.f32 %v7487_v25, %v8887_v16  ;;  %v8893_v21 = vmax.f32 %v8892_v9, 0.0  ;;  %v7611_v16 = vmul.f32 %v7471_v28, %v8895_v35  ;;  %v8899_v24 = vmax.f32 %v8898_v1, 0.0  ;;  %v8900_v9 = vld [vmem:[#allocation76_spill] sm:$0xff] }
 0x4b9   : > { %v7596_v27 = vmul.f32 %v7518_v33, %v8889_v59  ;;  %v7601_v45 = vmul.f32 %v7465_v30, %v8891_v12  ;;  %v7616_v59 = vmul.f32 %v7481_v19, %v8897_v32  ;;  %v8901_v0 = vmax.f32 %v8900_v9, 0.0  ;;  %v8902_v37 = vld [vmem:[#allocation44_spill] sm:$0xff] }
 0x4ba   : > { %v7606_v54 = vmul.f32 %v7468_v63, %v8893_v21  ;;  %v7621_v12 = vmul.f32 %v7474_v15, %v8899_v24  ;;  %v8903_v46 = vmax.f32 %v8902_v37, 0.0  ;;  %v8904_v2 = vld [vmem:[#allocation52_spill] sm:$0xff]  ;;  %v8907_v1 = vmax.f32 %v8906_v61, 0.0 }
 0x4bb   : > { %v7626_v21 = vmul.f32 %v7484_v55, %v8901_v0  ;;  %v8905_v42 = vmax.f32 %v8904_v2, 0.0  ;;  %v8909_v9 = vmax.f32 %v8908_v39, 0.0  ;;  %v8911_v37 = vmax.f32 %v8910_v62, 0.0 }
 0x4bc   : > { %v7631_v35 = vmul.f32 %v7487_v25, %v8903_v46  ;;  %v7641_v24 = vmul.f32 %v7465_v30, %v8907_v1  ;;  %v8913_v2 = vmax.f32 %v8912_v50, 0.0  ;;  %v8915_v61 = vmax.f32 %v8914_v18, 0.0 }
 0x4bd   : > { %v7636_v32 = vmul.f32 %v7518_v33, %v8905_v42  ;;  %v7646_v0 = vmul.f32 %v7468_v63, %v8909_v9  ;;  %v7651_v46 = vmul.f32 %v7471_v28, %v8911_v37  ;;  %v8917_v39 = vmax.f32 %v8916_v17, 0.0 }
 0x4be   : > { %v7656_v42 = vmul.f32 %v7481_v19, %v8913_v2  ;;  %v7661_v1 = vmul.f32 %v7474_v15, %v8915_v61  ;;  %v8919_v62 = vmax.f32 %v8918_v58, 0.0  ;;  %v8921_v50 = vmax.f32 %v8920_v22, 0.0 }
 0x4bf   : > { %v7666_v9 = vmul.f32 %v7484_v55, %v8917_v39  ;;  %v8923_v18 = vmax.f32 %v8922_v40, 0.0  ;;  %v8925_v17 = vmax.f32 %v8924_v36, 0.0  ;;  %v8927_v58 = vmax.f32 %v8926_v8, 0.0 }
 0x4c0   : > { %v7671_v37 = vmul.f32 %v7487_v25, %v8919_v62  ;;  %v7676_v2 = vmul.f32 %v7518_v33, %v8921_v50  ;;  %v8929_v22 = vmax.f32 %v8928_v10, 0.0  ;;  %v8931_v40 = vmax.f32 %v8930_v23, 0.0 }
 0x4c1   : > { %v7681_v61 = vmul.f32 %v7465_v30, %v8923_v18  ;;  %v7686_v39 = vmul.f32 %v7468_v63, %v8925_v17  ;;  %v7691_v62 = vmul.f32 %v7471_v28, %v8927_v58  ;;  %v8934_v36 = vmax.f32 %v8933_v6, 0.0 }
 0x4c2   : > { %v7696_v50 = vmul.f32 %v7481_v19, %v8929_v22  ;;  %v7701_v18 = vmul.f32 %v7474_v15, %v8931_v40  ;;  %v8937_v8 = vmax.f32 %v8936_v47, 0.0  ;;  %v8940_v10 = vmax.f32 %v8939_v29, 0.0 }
 0x4c3   : > { %v7706_v17 = vmul.f32 %v7484_v55, %v8934_v36  ;;  %v8943_v23 = vmax.f32 %v8942_v5, 0.0  ;;  %v8946_v6 = vmax.f32 %v8945_v41, 0.0  ;;  %v8949_v47 = vmax.f32 %v8948_v34, 0.0  ;;  %v8957_v41 = vld [vmem:[#allocation80_spill] sm:$0xff] }
 0x4c4   : > { %8932 = vst [vmem:[#allocation7_spill] sm:$0xff] %v7701_v18  ;;  %v7711_v58 = vmul.f32 %v7487_v25, %v8937_v8  ;;  %v7716_v22 = vmul.f32 %v7518_v33, %v8940_v10  ;;  %v8952_v29 = vmax.f32 %v8951_v43, 0.0  ;;  %v8960_v34 = vld [vmem:[#allocation56_spill] sm:$0xff]  ;;  %v8963_v43 = vld [vmem:[#allocation63_spill] sm:$0xff] }
 0x4c5   : > { %8935 = vst [vmem:[#allocation15_spill] sm:$0xff] %v7706_v17  ;;  %v7721_v40 = vmul.f32 %v7465_v30, %v8943_v23  ;;  %v7726_v36 = vmul.f32 %v7468_v63, %v8946_v6  ;;  %v7731_v8 = vmul.f32 %v7471_v28, %v8949_v47  ;;  %v8955_v23 = vmax.f32 %v8954_v14, 0.0 }
 0x4c6   : > { %8938 = vst [vmem:[#allocation23_spill] sm:$0xff] %v7711_v58  ;;  %8941 = vst [vmem:[#allocation47_spill] sm:$0xff] %v7716_v22  ;;  %v7736_v10 = vmul.f32 %v7481_v19, %v8952_v29  ;;  %v8958_v6 = vmax.f32 %v8957_v41, 0.0  ;;  %v8961_v47 = vmax.f32 %v8960_v34, 0.0  ;;  %v8964_v29 = vmax.f32 %v8963_v43, 0.0  ;;  %v8972_v58 = vld [vmem:[#allocation42_spill] sm:$0xff] }
 0x4c7   : > { %8944 = vst [vmem:[#allocation36_spill] sm:$0xff] %v7721_v40  ;;  %8947 = vst [vmem:[#allocation74_spill] sm:$0xff] %v7726_v36  ;;  %v7741_v11 = vmul.f32 %v7474_v15, %v8955_v23  ;;  %v8966_v40 = vld [vmem:[#allocation13_spill] sm:$0xff]  ;;  %v8974_v43 = vld [vmem:[#allocation67_spill] sm:$0xff] }
 0x4c8   : > { %8950 = vst [vmem:[#allocation45_spill] sm:$0xff] %v7731_v8  ;;  %8953 = vst [vmem:[#allocation9_spill] sm:$0xff] %v7736_v10  ;;  %v7746_v36 = vmul.f32 %v7484_v55, %v8958_v6  ;;  %v7751_v8 = vmul.f32 %v7487_v25, %v8961_v47  ;;  %v7756_v10 = vmul.f32 %v7518_v33, %v8964_v29  ;;  %v8967_v14 = vmax.f32 %v8966_v40, 0.0  ;;  %v8970_v6 = vld [vmem:[#allocation32_spill] sm:$0xff]  ;;  %v8977_v40 = vld [vmem:[#allocation82_spill] sm:$0xff] }
 0x4c9   : > { %8956 = vst [vmem:[#allocation17_spill] sm:$0xff] %v7741_v11  ;;  %v8968_v11 = vld [vmem:[#allocation21_spill] sm:$0xff]  ;;  %v8973_v47 = vmax.f32 %v8972_v58, 0.0  ;;  %v8975_v17 = vmax.f32 %v8974_v43, 0.0 }
 0x4ca   : > { %8959 = vst [vmem:[#allocation25_spill] sm:$0xff] %v7746_v36  ;;  %8962 = vst [vmem:[#allocation38_spill] sm:$0xff] %v7751_v8  ;;  %v3740_v23 = vmul.f32 %v7465_v30, %v8967_v14  ;;  %v8969_v22 = vmax.f32 %v8968_v11, 0.0  ;;  %v8971_v36 = vmax.f32 %v8970_v6, 0.0  ;;  %v8980_v11 = vld [vmem:[#allocation58_spill] sm:$0xff] }
 0x4cb   : > { %8965 = vst [vmem:[#allocation51_spill] sm:$0xff] %v7756_v10  ;;  %v3764_v8 = vmul.f32 %v7481_v19, %v8973_v47  ;;  %v7773_v29 = vmul.f32 %v7474_v15, %v8975_v17  ;;  %v8978_v10 = vmax.f32 %v8977_v40, 0.0  ;;  %v8986_v47 = vld [vmem:[#allocation14_spill] sm:$0xff] }
 0x4cc   : > { %v3748_v41 = vmul.f32 %v7468_v63, %v8969_v22  ;;  %v3756_v34 = vmul.f32 %v7471_v28, %v8971_v36  ;;  %v8981_v22 = vmax.f32 %v8980_v11, 0.0  ;;  %v8983_v36 = vld [vmem:[#allocation64_spill] sm:$0xff]  ;;  %v8987_v43 = vmax.f32 %v8986_v47, 0.0 }
 0x4cd   : > { %8976 = vst [vmem:[#allocation53_spill] sm:$0xff] %v7773_v29  ;;  %v7778_v14 = vmul.f32 %v7484_v55, %v8978_v10  ;;  %v8984_v18 = vmax.f32 %v8983_v36, 0.0  ;;  %v8988_v29 = vld [vmem:[#allocation22_spill] sm:$0xff] }
 0x4ce   : > { %v7783_v6 = vmul.f32 %v7487_v25, %v8981_v22  ;;  %v7793_v17 = vmul.f32 %v7465_v30, %v8987_v43  ;;  %v8989_v40 = vmax.f32 %v8988_v29, 0.0  ;;  %v8996_v43 = vld [vmem:[#allocation84_spill] sm:$0xff] }
 0x4cf   : > { %8979 = vst [vmem:[#allocation62_spill] sm:$0xff] %v7778_v14  ;;  %v7788_v58 = vmul.f32 %v7518_v33, %v8984_v18  ;;  %v8990_v14 = vld [vmem:[#allocation33_spill] sm:$0xff]  ;;  %v8997_v29 = vmax.f32 %v8996_v43, 0.0 }
 0x4d0   : > { %8982 = vst [vmem:[#allocation46_spill] sm:$0xff] %v7783_v6  ;;  %v7798_v10 = vmul.f32 %v7468_v63, %v8989_v40  ;;  %v8991_v11 = vmax.f32 %v8990_v14, 0.0  ;;  %v8992_v6 = vld [vmem:[#allocation43_spill] sm:$0xff] }
 0x4d1   : > { %8985 = vst [vmem:[#allocation54_spill] sm:$0xff] %v7788_v58  ;;  %v8993_v36 = vmax.f32 %v8992_v6, 0.0  ;;  %v8994_v58 = vld [vmem:[#allocation69_spill] sm:$0xff]  ;;  %v7818_v63 = vmul.f32 %v7484_v55, %v8997_v29  ;;  %v8998_v40 = vld [vmem:[#allocation71_spill] sm:$0xff] }
 0x4d2   : > { %v7803_v22 = vmul.f32 %v7471_v28, %v8991_v11  ;;  %v8995_v47 = vmax.f32 %v8994_v58, 0.0  ;;  %v8999_v14 = vmax.f32 %v8998_v40, 0.0  ;;  %v9000_v11 = vld [vmem:[#allocation70_spill] sm:$0xff] }
 0x4d3   : > { %v7808_v18 = vmul.f32 %v7481_v19, %v8993_v36  ;;  %v9001_v6 = vmax.f32 %v9000_v11, 0.0 }
 0x4d4   : > { %v7813_v30 = vmul.f32 %v7474_v15, %v8995_v47  ;;  %v7823_v28 = vmul.f32 %v7487_v25, %v8999_v14 }
 0x4d5   : > { %v7828_v19 = vmul.f32 %v7518_v33, %v9001_v6 }
 0x4ea   : > { %v3807_v51 = vpop.permute.xlu0 %3806 }
 0x4eb   : > { %v7831_v58 = vmul.f32 %v3807_v51, %v7523_v52  ;;  %v7834_v15 = vmul.f32 %v3807_v51, %v7528_v3  ;;  %v7837_v36 = vmul.f32 %v3807_v51, %v7533_v44  ;;  %v7840_v55 = vmul.f32 %v3807_v51, %v7543_v60 }
 0x4ec   : > { %v7843_v25 = vmul.f32 %v3807_v51, %v7538_v48  ;;  %v7846_v47 = vmul.f32 %v3807_v51, %v7548_v53  ;;  %v7849_v33 = vmul.f32 %v3807_v51, %v7553_v20  ;;  %v7851_v52 = vmul.f32 %v3807_v51, %v3790_v31 }
 0x4ee   : > { %v3811_v57 = vpop.permute.xlu1 %3810  ;;  %9002 = vst [vmem:[#allocation8_spill] sm:$0xff] %v7849_v33  ;;  %9003 = vst [vmem:[#allocation16_spill] sm:$0xff] %v7851_v52  ;;  %v9019_v52 = vld [vmem:[#allocation45_spill] sm:$0xff] }
 0x4ef   : > { %v3809_v5 = vpop.permute.xlu0 %3808  ;;  %v3832_v29 = vmul.f32 %v3811_v57, %v7558_v49  ;;  %v7855_v44 = vmul.f32 %v3811_v57, %v7563_v7  ;;  %v7858_v60 = vmul.f32 %v3811_v57, %v7568_v26  ;;  %v7861_v48 = vmul.f32 %v3811_v57, %v7573_v38  ;;  %v9022_v33 = vld [vmem:[#allocation25_spill] sm:$0xff] }
 0x4f0   : > { %v7864_v53 = vmul.f32 %v3811_v57, %v7578_v4  ;;  %v7867_v20 = vmul.f32 %v3811_v57, %v7586_v56  ;;  %v7870_v51 = vmul.f32 %v3811_v57, %v7591_v13  ;;  %v7873_v49 = vmul.f32 %v3811_v57, %v7596_v27 }
 0x4f1   : > { %v3831_v7 = vmul.f32 %v3809_v5, %v7601_v45  ;;  %v3839_v26 = vmul.f32 %v3809_v5, %v7606_v54  ;;  %v7878_v31 = vmul.f32 %v3809_v5, %v7611_v16  ;;  %v7881_v38 = vmul.f32 %v3809_v5, %v7616_v59 }
 0x4f2   : > { %9004 = vst [vmem:[#allocation24_spill] sm:$0xff] %v7870_v51  ;;  %9005 = vst [vmem:[#allocation37_spill] sm:$0xff] %v7873_v49  ;;  %v7884_v4 = vmul.f32 %v3809_v5, %v7621_v12  ;;  %v7887_v56 = vmul.f32 %v3809_v5, %v7626_v21  ;;  %v7890_v13 = vmul.f32 %v3809_v5, %v7631_v35  ;;  %v9017_v49 = vld [vmem:[#allocation36_spill] sm:$0xff] }
 0x4f3   : > { %v3813_v43 = vpop.permute.xlu1 %3812  ;;  %v3815_v3 = vpop.permute.xlu0 %3814  ;;  %v7893_v57 = vmul.f32 %v3809_v5, %v7636_v32  ;;  %v9010_v5 = vld [vmem:[#allocation7_spill] sm:$0xff] }
 0x4f4   : > { %9006 = vst [vmem:[#allocation49_spill] sm:$0xff] %v7890_v13  ;;  %v3833_v27 = vmul.f32 %v3813_v43, %v7641_v24  ;;  %v3841_v45 = vmul.f32 %v3813_v43, %v7646_v0  ;;  %v3849_v54 = vmul.f32 %v3813_v43, %v7651_v46  ;;  %v7899_v16 = vmul.f32 %v3813_v43, %v7656_v42 }
 0x4f5   : > { %9007 = vst [vmem:[#allocation76_spill] sm:$0xff] %v7893_v57  ;;  %v7902_v59 = vmul.f32 %v3813_v43, %v7661_v1  ;;  %v7905_v12 = vmul.f32 %v3813_v43, %v7666_v9  ;;  %v7908_v21 = vmul.f32 %v3813_v43, %v7671_v37  ;;  %v7911_v35 = vmul.f32 %v3813_v43, %v7676_v2  ;;  %v9011_v9 = vld [vmem:[#allocation15_spill] sm:$0xff]  ;;  %v9018_v57 = vld [vmem:[#allocation74_spill] sm:$0xff] }
 0x4f6   : > { %v3834_v0 = vmul.f32 %v3815_v3, %v7681_v61  ;;  %v3842_v46 = vmul.f32 %v3815_v3, %v7686_v39  ;;  %v3850_v42 = vmul.f32 %v3815_v3, %v7691_v62  ;;  %v3858_v1 = vmul.f32 %v3815_v3, %v7696_v50  ;;  %v9013_v37 = vld [vmem:[#allocation23_spill] sm:$0xff] }
 0x4f7   : > { %9008 = vst [vmem:[#allocation44_spill] sm:$0xff] %v7908_v21  ;;  %9009 = vst [vmem:[#allocation52_spill] sm:$0xff] %v7911_v35  ;;  %v3819_v24 = vpop.permute.xlu0 %3818  ;;  %v7918_v40 = vmul.f32 %v3815_v3, %v9010_v5  ;;  %v7921_v14 = vmul.f32 %v3815_v3, %v9011_v9  ;;  %v7924_v11 = vmul.f32 %v3815_v3, %v9013_v37  ;;  %v9015_v2 = vld [vmem:[#allocation47_spill] sm:$0xff]  ;;  %v9020_v21 = vld [vmem:[#allocation9_spill] sm:$0xff] }
 0x4f8   : > { %v3817_v32 = vpop.permute.xlu1 %3816  ;;  %v7927_v6 = vmul.f32 %v3815_v3, %v9015_v2  ;;  %v3836_v43 = vmul.f32 %v3819_v24, %v3740_v23  ;;  %v3844_v61 = vmul.f32 %v3819_v24, %v3748_v41  ;;  %v3852_v35 = vmul.f32 %v3819_v24, %v3756_v34  ;;  %v9021_v9 = vld [vmem:[#allocation17_spill] sm:$0xff]  ;;  %v9024_v23 = vld [vmem:[#allocation51_spill] sm:$0xff] }
 0x4f9   : > { %9012 = vst [vmem:[#allocation10_spill] sm:$0xff] %v7921_v14  ;;  %9014 = vst [vmem:[#allocation18_spill] sm:$0xff] %v7924_v11  ;;  %v3860_v39 = vmul.f32 %v3819_v24, %v3764_v8  ;;  %v3835_v62 = vmul.f32 %v3817_v32, %v9017_v49  ;;  %v3843_v50 = vmul.f32 %v3817_v32, %v9018_v57  ;;  %v9023_v11 = vld [vmem:[#allocation38_spill] sm:$0xff]  ;;  %v9025_v8 = vld [vmem:[#allocation53_spill] sm:$0xff] }
 0x4fa   : > { %9016 = vst [vmem:[#allocation26_spill] sm:$0xff] %v7927_v6  ;;  %v3851_v5 = vmul.f32 %v3817_v32, %v9019_v52  ;;  %v3859_v51 = vmul.f32 %v3817_v32, %v9020_v21  ;;  %v3867_v13 = vmul.f32 %v3817_v32, %v9021_v9  ;;  %v7935_v37 = vmul.f32 %v3817_v32, %v9022_v33  ;;  %v9026_v49 = vld [vmem:[#allocation62_spill] sm:$0xff] }
 0x4fb   : > { %v7938_v3 = vmul.f32 %v3817_v32, %v9023_v11  ;;  %v7941_v41 = vmul.f32 %v3817_v32, %v9024_v23  ;;  %v3868_v34 = vmul.f32 %v3819_v24, %v9025_v8  ;;  %v3876_v2 = vmul.f32 %v3819_v24, %v9026_v49  ;;  %v9027_v57 = vld [vmem:[#allocation46_spill] sm:$0xff] }
 0x4fc   : > { %v7946_v6 = vmul.f32 %v3819_v24, %v9027_v57  ;;  %v9028_v52 = vld [vmem:[#allocation54_spill] sm:$0xff] }
 0x4fd   : > { %v7949_v21 = vmul.f32 %v3819_v24, %v9028_v52 }
 0x507   : > { %v3821_v9 = vpop.permute.xlu1 %3820 }
 0x508   : > { %v7951_v14 = vpop.permute.xlu0 %3899  ;;  %v3837_v33 = vmul.f32 %v3821_v9, %v7793_v17  ;;  %v3845_v11 = vmul.f32 %v3821_v9, %v7798_v10  ;;  %v3853_v32 = vmul.f32 %v3821_v9, %v7803_v22  ;;  %v3861_v23 = vmul.f32 %v3821_v9, %v7808_v18 }
 0x509   : > { %v3869_v8 = vmul.f32 %v3821_v9, %v7813_v30  ;;  %v3877_v49 = vmul.f32 %v3821_v9, %v7818_v63  ;;  %v3885_v57 = vmul.f32 %v3821_v9, %v7823_v28  ;;  %v7961_v24 = vmul.f32 %v3821_v9, %v7828_v19 }
 0x50a   : > { %v7965_v52 = vmul.f32 %v7951_v14, %v7831_v58  ;;  %v7968_v17 = vmul.f32 %v7951_v14, %v3831_v7  ;;  %v7971_v10 = vmul.f32 %v7951_v14, %v3832_v29  ;;  %v7974_v22 = vmul.f32 %v7951_v14, %v3833_v27 }
 0x50b   : > { %v7977_v18 = vmul.f32 %v7951_v14, %v3834_v0  ;;  %v7980_v30 = vmul.f32 %v7951_v14, %v3835_v62  ;;  %v7983_v63 = vmul.f32 %v7951_v14, %v3836_v43  ;;  %v7986_v28 = vmul.f32 %v7951_v14, %v3837_v33 }
 0x50c   : > { %v7990_v19 = vmul.f32 %v7951_v14, %v7834_v15  ;;  %v7993_v58 = vmul.f32 %v7951_v14, %v3839_v26  ;;  %v7997_v29 = vmul.f32 %v7951_v14, %v7855_v44  ;;  %v8000_v7 = vmul.f32 %v7951_v14, %v3841_v45 }
 0x50d   : > { %v8003_v27 = vmul.f32 %v7951_v14, %v3842_v46  ;;  %v8006_v0 = vmul.f32 %v7951_v14, %v3843_v50  ;;  %v8009_v43 = vmul.f32 %v7951_v14, %v3844_v61  ;;  %v8012_v15 = vmul.f32 %v7951_v14, %v3845_v11 }
 0x50e   : > { %v8016_v26 = vmul.f32 %v7951_v14, %v7837_v36  ;;  %v8020_v44 = vmul.f32 %v7951_v14, %v7878_v31  ;;  %v8024_v45 = vmul.f32 %v7951_v14, %v7858_v60  ;;  %v8027_v46 = vmul.f32 %v7951_v14, %v3849_v54 }
 0x50f   : > { %v8030_v61 = vmul.f32 %v7951_v14, %v3850_v42  ;;  %v8033_v62 = vmul.f32 %v7951_v14, %v3851_v5  ;;  %v8036_v36 = vmul.f32 %v7951_v14, %v3852_v35  ;;  %v8039_v31 = vmul.f32 %v7951_v14, %v3853_v32  ;;  %v9032_v32 = vld [vmem:[#allocation49_spill] sm:$0xff] }
 0x510   : > { %v8043_v60 = vmul.f32 %v7951_v14, %v7840_v55  ;;  %v8047_v54 = vmul.f32 %v7951_v14, %v7881_v38  ;;  %v8051_v42 = vmul.f32 %v7951_v14, %v7861_v48  ;;  %v8055_v50 = vmul.f32 %v7951_v14, %v7899_v16 }
 0x511   : > { %v8058_v35 = vmul.f32 %v7951_v14, %v3858_v1  ;;  %v8061_v5 = vmul.f32 %v7951_v14, %v3859_v51  ;;  %v8064_v55 = vmul.f32 %v7951_v14, %v3860_v39  ;;  %v8067_v38 = vmul.f32 %v7951_v14, %v3861_v23 }
 0x512   : > { %v8071_v48 = vmul.f32 %v7951_v14, %v7843_v25  ;;  %v8075_v16 = vmul.f32 %v7951_v14, %v7884_v4  ;;  %v8079_v1 = vmul.f32 %v7951_v14, %v7864_v53  ;;  %v8083_v51 = vmul.f32 %v7951_v14, %v7902_v59 }
 0x513   : > { %v8088_v39 = vmul.f32 %v7951_v14, %v7918_v40  ;;  %v8091_v25 = vmul.f32 %v7951_v14, %v3867_v13  ;;  %v8094_v4 = vmul.f32 %v7951_v14, %v3868_v34  ;;  %v8097_v9 = vmul.f32 %v7951_v14, %v3869_v8  ;;  %v9029_v34 = vld [vmem:[#allocation10_spill] sm:$0xff]  ;;  %v9034_v8 = vld [vmem:[#allocation24_spill] sm:$0xff] }
 0x514   : > { %v8101_v53 = vmul.f32 %v7951_v14, %v7846_v47  ;;  %v8105_v59 = vmul.f32 %v7951_v14, %v7887_v56  ;;  %v8109_v40 = vmul.f32 %v7951_v14, %v7867_v20  ;;  %v8113_v13 = vmul.f32 %v7951_v14, %v7905_v12  ;;  %v9031_v20 = vld [vmem:[#allocation8_spill] sm:$0xff] }
 0x515   : > { %v8117_v33 = vmul.f32 %v7951_v14, %v9029_v34  ;;  %v8121_v47 = vmul.f32 %v7951_v14, %v7935_v37  ;;  %v8124_v11 = vmul.f32 %v7951_v14, %v3876_v2  ;;  %v8127_v56 = vmul.f32 %v7951_v14, %v3877_v49  ;;  %v9036_v34 = vld [vmem:[#allocation44_spill] sm:$0xff]  ;;  %v9038_v49 = vld [vmem:[#allocation18_spill] sm:$0xff] }
 0x516   : > { %v8133_v12 = vmul.f32 %v7951_v14, %v9031_v20  ;;  %v8137_v23 = vmul.f32 %v7951_v14, %v9032_v32  ;;  %v8141_v37 = vmul.f32 %v7951_v14, %v9034_v8  ;;  %v8145_v2 = vmul.f32 %v7951_v14, %v9036_v34  ;;  %v9042_v8 = vld [vmem:[#allocation16_spill] sm:$0xff] }
 0x517   : > { %9030 = vst [vmem:[#allocation39_spill] sm:$0xff] %v8127_v56  ;;  %v8149_v56 = vmul.f32 %v7951_v14, %v9038_v49  ;;  %v8153_v20 = vmul.f32 %v7951_v14, %v7938_v3  ;;  %v8157_v32 = vmul.f32 %v7951_v14, %v7946_v6  ;;  %v9044_v34 = vld [vmem:[#allocation76_spill] sm:$0xff]  ;;  %v9046_v49 = vld [vmem:[#allocation37_spill] sm:$0xff]  ;;  %v9050_v6 = vld [vmem:[#allocation26_spill] sm:$0xff] }
 0x518   : > { %9033 = vst [vmem:[#allocation55_spill] sm:$0xff] %v8137_v23  ;;  %9035 = vst [vmem:[#allocation75_spill] sm:$0xff] %v8141_v37  ;;  %v8160_v23 = vmul.f32 %v7951_v14, %v3885_v57  ;;  %v8164_v37 = vmul.f32 %v7951_v14, %v9042_v8  ;;  %v9048_v3 = vld [vmem:[#allocation52_spill] sm:$0xff]  ;;  %v8180_v57 = vmul.f32 %v7951_v14, %v9050_v6  ;;  %v9057_v6 = vld [vmem:[#allocation81_spill] sm:$0xff] }
 0x519   : > { %9037 = vst [vmem:[#allocation48_spill] sm:$0xff] %v8145_v2  ;;  %9039 = vst [vmem:[#allocation57_spill] sm:$0xff] %v8149_v56  ;;  %v8168_v2 = vmul.f32 %v7951_v14, %v9044_v34  ;;  %v8172_v56 = vmul.f32 %v7951_v14, %v9046_v49  ;;  %v8184_v8 = vmul.f32 %v7951_v14, %v7941_v41 }
 0x51a   : > { %9040 = vst [vmem:[#allocation11_spill] sm:$0xff] %v8153_v20  ;;  %9041 = vst [vmem:[#allocation19_spill] sm:$0xff] %v8160_v23  ;;  %v8176_v20 = vmul.f32 %v7951_v14, %v9048_v3  ;;  %v8188_v34 = vmul.f32 %v7951_v14, %v7949_v21  ;;  %v8192_v49 = vmul.f32 %v7951_v14, %v7961_v24  ;;  %v9061_v14 = vld [vmem:[#allocation87_spill] sm:$0xff] }
 0x51b   : > { %9043 = vst [vmem:[#allocation28_spill] sm:$0xff] %v8164_v37  ;;  %9045 = vst [vmem:[#allocation40_spill] sm:$0xff] %v8168_v2  ;;  %v9058_v37 = vld [vmem:[#allocation79_spill] sm:$0xff]  ;;  %v3972_v24 = vadd.f32 %v7983_v63, %v9061_v14  ;;  %v9080_v14 = vld [vmem:[#allocation108_spill] sm:$0xff] }
 0x51c   : > { %9047 = vst [vmem:[#allocation60_spill] sm:$0xff] %v8172_v56  ;;  %9049 = vst [vmem:[#allocation78_spill] sm:$0xff] %v8176_v20  ;;  %v9055_v56 = vld [vmem:[#allocation5_spill] sm:$0xff]  ;;  %v9056_v20 = vld [vmem:[#allocation6_spill] sm:$0xff]  ;;  %v3969_v41 = vadd.f32 %v7974_v22, %v9058_v37 }
 0x51d   : > { %9051 = vst [vmem:[#allocation50_spill] sm:$0xff] %v8180_v57  ;;  %9052 = vst [vmem:[#allocation59_spill] sm:$0xff] %v8184_v8  ;;  %v3966_v3 = vadd.f32 %v7965_v52, %v9055_v56  ;;  %v3967_v2 = vadd.f32 %v7968_v17, %v9056_v20  ;;  %v3968_v57 = vadd.f32 %v7971_v10, %v9057_v6  ;;  %v9059_v8 = vld [vmem:[#allocation85_spill] sm:$0xff]  ;;  %v9064_v20 = vld [vmem:[#allocation88_spill] sm:$0xff] }
 0x51e   : > { %9053 = vst [vmem:[#allocation12_spill] sm:$0xff] %v8188_v34  ;;  %9054 = vst [vmem:[#allocation20_spill] sm:$0xff] %v8192_v49  ;;  %v3970_v21 = vadd.f32 %v7977_v18, %v9059_v8  ;;  %v9060_v34 = vld [vmem:[#allocation83_spill] sm:$0xff]  ;;  %v9062_v49 = vld [vmem:[#allocation86_spill] sm:$0xff]  ;;  %v3975_v10 = vadd.f32 %v7993_v58, %v9064_v20 }
 0x51f   : > { %v3971_v23 = vadd.f32 %v7980_v30, %v9060_v34  ;;  %v3973_v52 = vadd.f32 %v7986_v28, %v9062_v49  ;;  %v9063_v56 = vld [vmem:[#allocation93_spill] sm:$0xff]  ;;  %v9065_v6 = vld [vmem:[#allocation95_spill] sm:$0xff]  ;;  %v9066_v37 = vld [vmem:[#allocation94_spill] sm:$0xff]  ;;  %4030 = vst.msk [vmem:[%s8218_s12] sm:$0xff] %vm2943_vm3, %v3966_v3 }
 0x520   : > { %v3974_v17 = vadd.f32 %v7990_v19, %v9063_v56  ;;  %v3976_v22 = vadd.f32 %v7997_v29, %v9065_v6  ;;  %v3977_v18 = vadd.f32 %v8000_v7, %v9066_v37  ;;  %4031 = vst.msk [vmem:[%s8218_s12 + $0x8] sm:$0xff] %vm2943_vm3, %v3967_v2  ;;  %4032 = vst.msk [vmem:[%s8218_s12 + $0x10] sm:$0xff] %vm2943_vm3, %v3968_v57  ;;  %v9067_v30 = vld [vmem:[#allocation97_spill] sm:$0xff]  ;;  %v9068_v28 = vld [vmem:[#allocation96_spill] sm:$0xff] }
 0x521   : > { %4033 = vst.msk [vmem:[%s8218_s12 + $0x18] sm:$0xff] %vm2943_vm3, %v3969_v41  ;;  %v3978_v63 = vadd.f32 %v8003_v27, %v9067_v30  ;;  %v3979_v19 = vadd.f32 %v8006_v0, %v9068_v28  ;;  %v9069_v58 = vld [vmem:[#allocation99_spill] sm:$0xff]  ;;  %v9070_v7 = vld [vmem:[#allocation98_spill] sm:$0xff]  ;;  %4034 = vst.msk [vmem:[%s8218_s12 + $0x20] sm:$0xff] %vm2943_vm3, %v3970_v21 }
 0x522   : > { %v3980_v29 = vadd.f32 %v8009_v43, %v9069_v58  ;;  %v3981_v8 = vadd.f32 %v8012_v15, %v9070_v7  ;;  %4035 = vst.msk [vmem:[%s8218_s12 + $0x28] sm:$0xff] %vm2943_vm3, %v3971_v23  ;;  %4036 = vst.msk [vmem:[%s8218_s12 + $0x30] sm:$0xff] %vm2943_vm3, %v3972_v24  ;;  %v9071_v27 = vld [vmem:[#allocation101_spill] sm:$0xff]  ;;  %v9072_v2 = vld [vmem:[#allocation100_spill] sm:$0xff] }
 0x523   : > { %4037 = vst.msk [vmem:[%s8218_s12 + $0x38] sm:$0xff] %vm2943_vm3, %v3973_v52  ;;  %v3982_v0 = vadd.f32 %v8016_v26, %v9071_v27  ;;  %v3983_v43 = vadd.f32 %v8020_v44, %v9072_v2  ;;  %v9073_v57 = vld [vmem:[#allocation103_spill] sm:$0xff]  ;;  %v9074_v34 = vld [vmem:[#allocation102_spill] sm:$0xff]  ;;  %4038 = vst.msk [vmem:[%s8218_s12 + $0x40] sm:$0xff] %vm2943_vm3, %v3974_v17 }
 0x524   : > { %v3984_v15 = vadd.f32 %v8024_v45, %v9073_v57  ;;  %v3985_v49 = vadd.f32 %v8027_v46, %v9074_v34  ;;  %4039 = vst.msk [vmem:[%s8218_s12 + $0x48] sm:$0xff] %vm2943_vm3, %v3975_v10  ;;  %4040 = vst.msk [vmem:[%s8218_s12 + $0x50] sm:$0xff] %vm2943_vm3, %v3976_v22  ;;  %v9075_v26 = vld [vmem:[#allocation105_spill] sm:$0xff]  ;;  %v9076_v23 = vld [vmem:[#allocation104_spill] sm:$0xff] }
 0x525   : > { %4041 = vst.msk [vmem:[%s8218_s12 + $0x58] sm:$0xff] %vm2943_vm3, %v3977_v18  ;;  %v3986_v44 = vadd.f32 %v8030_v61, %v9075_v26  ;;  %v3987_v45 = vadd.f32 %v8033_v62, %v9076_v23  ;;  %v9077_v3 = vld [vmem:[#allocation107_spill] sm:$0xff]  ;;  %v9078_v41 = vld [vmem:[#allocation106_spill] sm:$0xff]  ;;  %4042 = vst.msk [vmem:[%s8218_s12 + $0x60] sm:$0xff] %vm2943_vm3, %v3978_v63 }
 0x526   : > { %v3988_v46 = vadd.f32 %v8036_v36, %v9077_v3  ;;  %v3989_v21 = vadd.f32 %v8039_v31, %v9078_v41  ;;  %4043 = vst.msk [vmem:[%s8218_s12 + $0x68] sm:$0xff] %vm2943_vm3, %v3979_v19  ;;  %4044 = vst.msk [vmem:[%s8218_s12 + $0x70] sm:$0xff] %vm2943_vm3, %v3980_v29  ;;  %v9079_v61 = vld [vmem:[#allocation109_spill] sm:$0xff]  ;;  %v3991_v36 = vadd.f32 %v8047_v54, %v9080_v14  ;;  %v9081_v24 = vld [vmem:[#allocation111_spill] sm:$0xff] }
 0x527   : > { %4045 = vst.msk [vmem:[%s8218_s12 + $0x78] sm:$0xff] %vm2943_vm3, %v3981_v8  ;;  %v3990_v62 = vadd.f32 %v8043_v60, %v9079_v61  ;;  %v3992_v31 = vadd.f32 %v8051_v42, %v9081_v24  ;;  %v9082_v52 = vld [vmem:[#allocation110_spill] sm:$0xff]  ;;  %4046 = vst.msk [vmem:[%s8218_s12 + $0x80] sm:$0xff] %vm2943_vm3, %v3982_v0  ;;  %v9083_v60 = vld [vmem:[#allocation113_spill] sm:$0xff] }
 0x528   : > { %v3993_v56 = vadd.f32 %v8055_v50, %v9082_v52  ;;  %4047 = vst.msk [vmem:[%s8218_s12 + $0x88] sm:$0xff] %vm2943_vm3, %v3983_v43  ;;  %4048 = vst.msk [vmem:[%s8218_s12 + $0x90] sm:$0xff] %vm2943_vm3, %v3984_v15  ;;  %v3994_v54 = vadd.f32 %v8058_v35, %v9083_v60  ;;  %v9084_v17 = vld [vmem:[#allocation112_spill] sm:$0xff]  ;;  %v9085_v20 = vld [vmem:[#allocation115_spill] sm:$0xff] }
 0x529   : > { %4049 = vst.msk [vmem:[%s8218_s12 + $0x98] sm:$0xff] %vm2943_vm3, %v3985_v49  ;;  %v3995_v42 = vadd.f32 %v8061_v5, %v9084_v17  ;;  %v3996_v50 = vadd.f32 %v8064_v55, %v9085_v20  ;;  %v9086_v10 = vld [vmem:[#allocation114_spill] sm:$0xff]  ;;  %4050 = vst.msk [vmem:[%s8218_s12 + $0xa0] sm:$0xff] %vm2943_vm3, %v3986_v44  ;;  %v9087_v35 = vld [vmem:[#allocation117_spill] sm:$0xff] }
 0x52a   : > { %v3997_v6 = vadd.f32 %v8067_v38, %v9086_v10  ;;  %4051 = vst.msk [vmem:[%s8218_s12 + $0xa8] sm:$0xff] %vm2943_vm3, %v3987_v45  ;;  %4052 = vst.msk [vmem:[%s8218_s12 + $0xb0] sm:$0xff] %vm2943_vm3, %v3988_v46  ;;  %v3998_v5 = vadd.f32 %v8071_v48, %v9087_v35  ;;  %v9088_v22 = vld [vmem:[#allocation116_spill] sm:$0xff]  ;;  %v9089_v37 = vld [vmem:[#allocation119_spill] sm:$0xff] }
 0x52b   : > { %4053 = vst.msk [vmem:[%s8218_s12 + $0xb8] sm:$0xff] %vm2943_vm3, %v3989_v21  ;;  %v3999_v55 = vadd.f32 %v8075_v16, %v9088_v22  ;;  %v4000_v38 = vadd.f32 %v8079_v1, %v9089_v37  ;;  %v9090_v18 = vld [vmem:[#allocation118_spill] sm:$0xff]  ;;  %4054 = vst.msk [vmem:[%s8218_s12 + $0xc0] sm:$0xff] %vm2943_vm3, %v3990_v62  ;;  %v9091_v48 = vld [vmem:[#allocation121_spill] sm:$0xff] }
 0x52c   : > { %v4001_v30 = vadd.f32 %v8083_v51, %v9090_v18  ;;  %4055 = vst.msk [vmem:[%s8218_s12 + $0xc8] sm:$0xff] %vm2943_vm3, %v3991_v36  ;;  %4056 = vst.msk [vmem:[%s8218_s12 + $0xd0] sm:$0xff] %vm2943_vm3, %v3992_v31  ;;  %v4002_v16 = vadd.f32 %v8088_v39, %v9091_v48  ;;  %v9092_v63 = vld [vmem:[#allocation120_spill] sm:$0xff]  ;;  %v9093_v28 = vld [vmem:[#allocation123_spill] sm:$0xff] }
 0x52d   : > { %4057 = vst.msk [vmem:[%s8218_s12 + $0xd8] sm:$0xff] %vm2943_vm3, %v3993_v56  ;;  %v4003_v1 = vadd.f32 %v8091_v25, %v9092_v63  ;;  %v4004_v51 = vadd.f32 %v8094_v4, %v9093_v28  ;;  %v9094_v19 = vld [vmem:[#allocation122_spill] sm:$0xff]  ;;  %4058 = vst.msk [vmem:[%s8218_s12 + $0xe0] sm:$0xff] %vm2943_vm3, %v3994_v54  ;;  %v9095_v39 = vld [vmem:[#allocation125_spill] sm:$0xff] }
 0x52e   : > { %v4005_v58 = vadd.f32 %v8097_v9, %v9094_v19  ;;  %4059 = vst.msk [vmem:[%s8218_s12 + $0xe8] sm:$0xff] %vm2943_vm3, %v3995_v42  ;;  %4060 = vst.msk [vmem:[%s8218_s12 + $0xf0] sm:$0xff] %vm2943_vm3, %v3996_v50  ;;  %v4006_v25 = vadd.f32 %v8101_v53, %v9095_v39  ;;  %v9096_v29 = vld [vmem:[#allocation124_spill] sm:$0xff]  ;;  %v9097_v9 = vld [vmem:[#allocation127_spill] sm:$0xff] }
 0x52f   : > { %4061 = vst.msk [vmem:[%s8218_s12 + $0xf8] sm:$0xff] %vm2943_vm3, %v3997_v6  ;;  %v4007_v4 = vadd.f32 %v8105_v59, %v9096_v29  ;;  %v4008_v7 = vadd.f32 %v8109_v40, %v9097_v9  ;;  %v9098_v8 = vld [vmem:[#allocation126_spill] sm:$0xff]  ;;  %4062 = vst.msk [vmem:[%s8218_s12 + $0x100] sm:$0xff] %vm2943_vm3, %v3998_v5  ;;  %v9099_v53 = vld [vmem:[#allocation129_spill] sm:$0xff] }
 0x530   : > { %v4009_v27 = vadd.f32 %v8113_v13, %v9098_v8  ;;  %4063 = vst.msk [vmem:[%s8218_s12 + $0x108] sm:$0xff] %vm2943_vm3, %v3999_v55  ;;  %4064 = vst.msk [vmem:[%s8218_s12 + $0x110] sm:$0xff] %vm2943_vm3, %v4000_v38  ;;  %v4010_v59 = vadd.f32 %v8117_v33, %v9099_v53  ;;  %v9100_v0 = vld [vmem:[#allocation128_spill] sm:$0xff]  ;;  %v9101_v2 = vld [vmem:[#allocation131_spill] sm:$0xff] }
 0x531   : > { %4065 = vst.msk [vmem:[%s8218_s12 + $0x118] sm:$0xff] %vm2943_vm3, %v4001_v30  ;;  %v4011_v40 = vadd.f32 %v8121_v47, %v9100_v0  ;;  %v4012_v13 = vadd.f32 %v8124_v11, %v9101_v2  ;;  %v9102_v43 = vld [vmem:[#allocation130_spill] sm:$0xff]  ;;  %v9103_v57 = vld [vmem:[#allocation39_spill] sm:$0xff]  ;;  %4066 = vst.msk [vmem:[%s8218_s12 + $0x120] sm:$0xff] %vm2943_vm3, %v4002_v16 }
 0x532   : > { %v4013_v15 = vadd.f32 %v9103_v57, %v9102_v43  ;;  %4067 = vst.msk [vmem:[%s8218_s12 + $0x128] sm:$0xff] %vm2943_vm3, %v4003_v1  ;;  %4068 = vst.msk [vmem:[%s8218_s12 + $0x130] sm:$0xff] %vm2943_vm3, %v4004_v51  ;;  %v9104_v33 = vld [vmem:[#allocation27_spill] sm:$0xff]  ;;  %v9105_v11 = vld [vmem:[#allocation132_spill] sm:$0xff] }
 0x533   : > { %4069 = vst.msk [vmem:[%s8218_s12 + $0x138] sm:$0xff] %vm2943_vm3, %v4005_v58  ;;  %v4014_v47 = vadd.f32 %v8133_v12, %v9104_v33  ;;  %v9106_v34 = vld [vmem:[#allocation55_spill] sm:$0xff]  ;;  %v9109_v45 = vld [vmem:[#allocation30_spill] sm:$0xff]  ;;  %v9110_v3 = vld [vmem:[#allocation48_spill] sm:$0xff] }
 0x534   : > { %v4015_v49 = vadd.f32 %v9106_v34, %v9105_v11  ;;  %v9107_v26 = vld [vmem:[#allocation31_spill] sm:$0xff]  ;;  %v4017_v46 = vadd.f32 %v9110_v3, %v9109_v45  ;;  %4070 = vst.msk [vmem:[%s8218_s12 + $0x140] sm:$0xff] %vm2943_vm3, %v4006_v25  ;;  %4071 = vst.msk [vmem:[%s8218_s12 + $0x148] sm:$0xff] %vm2943_vm3, %v4007_v4  ;;  %v9112_v41 = vld [vmem:[#allocation57_spill] sm:$0xff] }
 0x535   : > { %v9108_v44 = vld [vmem:[#allocation75_spill] sm:$0xff]  ;;  %4072 = vst.msk [vmem:[%s8218_s12 + $0x150] sm:$0xff] %vm2943_vm3, %v4008_v7  ;;  %4073 = vst.msk [vmem:[%s8218_s12 + $0x158] sm:$0xff] %vm2943_vm3, %v4009_v27  ;;  %v9113_v61 = vld [vmem:[#allocation34_spill] sm:$0xff] }
 0x536   : > { %v4016_v23 = vadd.f32 %v9108_v44, %v9107_v26  ;;  %v9111_v12 = vld [vmem:[#allocation35_spill] sm:$0xff]  ;;  %v9115_v36 = vld [vmem:[#allocation68_spill] sm:$0xff]  ;;  %v9116_v31 = vld [vmem:[#allocation65_spill] sm:$0xff]  ;;  %4074 = vst.msk [vmem:[%s8218_s12 + $0x160] sm:$0xff] %vm2943_vm3, %v4010_v59 }
 0x537   : > { %v4018_v21 = vadd.f32 %v9112_v41, %v9111_v12  ;;  %v9114_v62 = vld [vmem:[#allocation11_spill] sm:$0xff]  ;;  %v4020_v24 = vadd.f32 %v8157_v32, %v9115_v36  ;;  %4075 = vst.msk [vmem:[%s8218_s12 + $0x168] sm:$0xff] %vm2943_vm3, %v4011_v40  ;;  %4076 = vst.msk [vmem:[%s8218_s12 + $0x170] sm:$0xff] %vm2943_vm3, %v4012_v13  ;;  %v9118_v60 = vld [vmem:[#allocation72_spill] sm:$0xff] }
 0x538   : > { %v4019_v14 = vadd.f32 %v9114_v62, %v9113_v61  ;;  %v9117_v52 = vld [vmem:[#allocation19_spill] sm:$0xff]  ;;  %4077 = vst.msk [vmem:[%s8218_s12 + $0x178] sm:$0xff] %vm2943_vm3, %v4013_v15  ;;  %v9119_v54 = vld [vmem:[#allocation28_spill] sm:$0xff]  ;;  %v9120_v42 = vld [vmem:[#allocation66_spill] sm:$0xff] }
 0x539   : > { %v4021_v56 = vadd.f32 %v9117_v52, %v9116_v31  ;;  %v4022_v17 = vadd.f32 %v9119_v54, %v9118_v60  ;;  %v9121_v20 = vld [vmem:[#allocation40_spill] sm:$0xff]  ;;  %v9122_v50 = vld [vmem:[#allocation77_spill] sm:$0xff]  ;;  %v9125_v5 = vld [vmem:[#allocation78_spill] sm:$0xff]  ;;  %4078 = vst.msk [vmem:[%s8218_s12 + $0x180] sm:$0xff] %vm2943_vm3, %v4014_v47 }
 0x53a   : > { %v4023_v32 = vadd.f32 %v9121_v20, %v9120_v42  ;;  %v9123_v10 = vld [vmem:[#allocation60_spill] sm:$0xff]  ;;  %v9124_v35 = vld [vmem:[#allocation73_spill] sm:$0xff]  ;;  %4079 = vst.msk [vmem:[%s8218_s12 + $0x188] sm:$0xff] %vm2943_vm3, %v4015_v49  ;;  %4080 = vst.msk [vmem:[%s8218_s12 + $0x190] sm:$0xff] %vm2943_vm3, %v4016_v23 }
 0x53b   : > { %v4024_v6 = vadd.f32 %v9123_v10, %v9122_v50  ;;  %v4025_v22 = vadd.f32 %v9125_v5, %v9124_v35  ;;  %4081 = vst.msk [vmem:[%s8218_s12 + $0x198] sm:$0xff] %vm2943_vm3, %v4017_v46  ;;  %v9126_v55 = vld [vmem:[#allocation90_spill] sm:$0xff]  ;;  %v9128_v18 = vld [vmem:[#allocation89_spill] sm:$0xff]  ;;  %v9129_v30 = vld [vmem:[#allocation59_spill] sm:$0xff] }
 0x53c   : > { %v9127_v37 = vld [vmem:[#allocation50_spill] sm:$0xff]  ;;  %v4027_v48 = vadd.f32 %v9129_v30, %v9128_v18  ;;  %v9130_v16 = vld [vmem:[#allocation92_spill] sm:$0xff]  ;;  %v9132_v28 = vld [vmem:[#allocation91_spill] sm:$0xff]  ;;  %4082 = vst.msk [vmem:[%s8218_s12 + $0x1a0] sm:$0xff] %vm2943_vm3, %v4018_v21 }
 0x53d   : > { %v4026_v38 = vadd.f32 %v9127_v37, %v9126_v55  ;;  %v9131_v63 = vld [vmem:[#allocation12_spill] sm:$0xff]  ;;  %4083 = vst.msk [vmem:[%s8218_s12 + $0x1a8] sm:$0xff] %vm2943_vm3, %v4019_v14  ;;  %4084 = vst.msk [vmem:[%s8218_s12 + $0x1b0] sm:$0xff] %vm2943_vm3, %v4020_v24 }
 0x53e   : > { %v4028_v1 = vadd.f32 %v9131_v63, %v9130_v16  ;;  %v9133_v51 = vld [vmem:[#allocation20_spill] sm:$0xff]  ;;  %4085 = vst.msk [vmem:[%s8218_s12 + $0x1b8] sm:$0xff] %vm2943_vm3, %v4021_v56  ;;  %4086 = vst.msk [vmem:[%s8218_s12 + $0x1c0] sm:$0xff] %vm2943_vm3, %v4022_v17 }
 0x53f   : > { %v4029_v19 = vadd.f32 %v9133_v51, %v9132_v28  ;;  %4087 = vst.msk [vmem:[%s8218_s12 + $0x1c8] sm:$0xff] %vm2943_vm3, %v4023_v32  ;;  %4088 = vst.msk [vmem:[%s8218_s12 + $0x1d0] sm:$0xff] %vm2943_vm3, %v4024_v6 }
 0x540   : > { %4089 = vst.msk [vmem:[%s8218_s12 + $0x1d8] sm:$0xff] %vm2943_vm3, %v4025_v22  ;;  %4090 = vst.msk [vmem:[%s8218_s12 + $0x1e0] sm:$0xff] %vm2943_vm3, %v4026_v38 }
 0x541   : > { %4091 = vst.msk [vmem:[%s8218_s12 + $0x1e8] sm:$0xff] %vm2943_vm3, %v4027_v48  ;;  %4092 = vst.msk [vmem:[%s8218_s12 + $0x1f0] sm:$0xff] %vm2943_vm3, %v4028_v1 }
 0x542   : > { %4093 = vst.msk [vmem:[%s8218_s12 + $0x1f8] sm:$0xff] %vm2943_vm3, %v4029_v19 }
 0x543   : > { %5264 = shalt.err (!%p5261_p3)
}
 0x544   : > { %s5265_s22 = scalar_lea.hbm %s8425_s24, 8192  ;;  %s5269_s16 = scalar_lea.hbm %s8515_s11, 16384 }
 0x545   : > { %p5266_p4 = scmp.ne.s32.totalorder %s8425_s24, %s5265_s22  ;;  %p5270_p9 = scmp.lt.u32.totalorder %s8425_s24, %s8515_s11 }
 0x546   : > { %p5271_p10 = scmp.lt.u32.totalorder %s5269_s16, %s5265_s22  ;;  %p5273_p12 = scmp.lt.u32.totalorder %s5265_s22, %s8425_s24 }
 0x547   : > { %p5267_p7 = pnand %p5266_p4, %p5422_p5 }
 0x548   : > { %p5272_p11 = por %p5271_p10, %p5270_p9 }
 0x549   : > { %p5268_p8 = pneg %p5267_p7 }
 0x54a   : > { %p5274_p13 = por %p5273_p12, %p5272_p11 }
 0x54c   : > { %p5275_p0 = pnand %p5274_p13, %p5268_p8 }
 0x54e   : > { %5278 = shalt.err (!%p5275_p0)
}
 0x54f   : > { %s5322_s30 = smov 128   ;;  %s5323_s13 = smov 8  }
 0x550   : > { %4875 = dma.vmem_to_hbm [thread:$0]  (%p5422_p5), %s8427_s15, 8192, %s8425_s24, %s8463_s29, %s5322_s30, %s5322_s30, %s5323_s13  }
 0x551 PF: > { %p4881_p1 = scmp.ge.s32.totalorder %s5313_s20, 2  ;;  %s4123_s12 = sand.u32 1, %s5301_s17  }
 0x552   : > { %s4124_s22 = scalar_lea.sflag [#allocation3], %s4123_s12 }
 0x553   : > { %p4878_p2 = pnand %p4881_p1, %p5426_p6 }
 0x555   : > { %5296 = dma.done.wait (!%p4878_p2), %s4124_s22, 8192  }
 0x556   : > { %5298 = vsyncadd (!%p4878_p2), %s4124_s22, 4294959104  ;;  %p21_p3 = scmp.ge.s32.totalorder %s5409_s23, 4   ;;  %s9134_s17 = smov %s5305_s18 }
 0x557   : > { %s9135_s18 = smov %s5309_s19  ;;  %s9136_s19 = smov %s5420_s26 }
 0x558   : > { %s9137_s20 = smov %s5409_s23  ;;  %23 = sbr.rel (!%p21_p3) target bundleno = 3 (0x3), region = 102 }
 0x55f   :  { %4129 = vsyncpa [#allocation3], 1 }
 0x560   :  { %4131 = vsyncpa [#allocation3 + $0x1], 1 }

</bundles_post_ra>
